<compile_context>
chip_gen: v6e
topology: v6e:2x2x1
jax: 0.10.0
libtpu: 0.0.40
codegen_flags: <defaults>
</compile_context>

<pallas_src>
import jax
import jax.numpy as jnp
import numpy as np
from jax import lax
from jax.experimental import pallas as pl
from jax.experimental.pallas import tpu as pltpu


# --------------------------------------------------------------------------------------
# Host-side constant builders (pure numpy, data-independent structure)
# --------------------------------------------------------------------------------------
def _bilinear_matrix(out_size, in_size):
    """Row-stochastic interpolation matrix matching F.interpolate(mode='bilinear',
    align_corners=False)."""
    scale = in_size / out_size
    src = (np.arange(out_size, dtype=np.float64) + 0.5) * scale - 0.5
    src = np.maximum(src, 0.0)
    i0 = np.minimum(np.floor(src).astype(np.int64), in_size - 1)
    i1 = np.minimum(i0 + 1, in_size - 1)
    frac = src - i0
    m = np.zeros((out_size, in_size), np.float64)
    np.add.at(m, (np.arange(out_size), i0), 1.0 - frac)
    np.add.at(m, (np.arange(out_size), i1), frac)
    return m.astype(np.float32)


def _shift_taps(h, w, k):
    """Flat-index offsets and zero-padding validity masks for a kxk 'same' conv.
    mask[t, q] == 1 iff output pixel q's tap t reads inside the image; in that case the
    source pixel's flat index is exactly q + offset[t]."""
    pad = k // 2
    n = h * w
    offsets = []
    masks = np.zeros((k * k, n), np.float32)
    for dy in range(k):
        for dx in range(k):
            t = dy * k + dx
            offsets.append((dy - pad) * w + (dx - pad))
            for y in range(h):
                ys = y + dy - pad
                if not 0 <= ys < h:
                    continue
                for x in range(w):
                    xs = x + dx - pad
                    if 0 <= xs < w:
                        masks[t, y * w + x] = 1.0
    return offsets, masks


def _pick_batch_block(n):
    # B examples per grid step.  Bigger B -> wider lane-dense blocks (amortizes the
    # ~0.35us/step overhead); keep >= 2 grid steps so both v7x TensorCores get work, and
    # cap at 4 so the (B*Sh, B*Sl) upsample operator + scratch stay tiny on v5e's 16 MiB
    # default scoped VMEM.
    for b in (4, 2):
        if n % b == 0 and n // b >= 2:
            return b
    return 1


# --------------------------------------------------------------------------------------
# Pallas kernel (B examples per grid step, everything in (C, B*S) flat lane-dense layout)
# --------------------------------------------------------------------------------------
def _make_csf_kernel(B, Sl, Co, offs7, offs3):
    cols = B * Sl

    def kernel(high_ref, low_ref, ubd_ref, wa_ref, wm_ref, mask9_ref,
               w_high_ref, w_low_ref, b_hl_ref, w_ca1_ref, w_ca2_ref,
               w_f_ref, b_f_ref, out_ref, stack_ref):
        f32 = jnp.float32

        # --- 1x1(high) + bilinear upsample, REASSOCIATED: upsample in the narrow Ch
        #     channel domain first, then project to Co.  Valid because the 1x1 conv is
        #     linear; the bias rides through since the bilinear matrix is row-stochastic
        #     (align_corners=False with edge clamp) and is folded into b_hl. -------------
        up_ch = jnp.dot(high_ref[...], ubd_ref[...],
                        preferred_element_type=f32)                        # (Ch, B*Sl)
        up = jnp.dot(w_high_ref[...], up_ch, preferred_element_type=f32)   # (Co, B*Sl)
        lp = jnp.dot(w_low_ref[...], low_ref[...],
                     preferred_element_type=f32)                           # (Co, B*Sl)
        fused = up + lp + b_hl_ref[...]

        # --- CGA channel attention, per example: GAP -> 1x1 -> ReLU -> 1x1 -> sigmoid ---
        # Static lane slices (Sl is a multiple of 128) instead of block-diagonal kron
        # operators; the channel-weight broadcast is a plain (Co,1)x(Co,Sl) VPU broadcast.
        pieces = []
        for b in range(B):
            fb = fused[:, b * Sl:(b + 1) * Sl]                             # lane view
            gap_b = jnp.mean(fb, axis=1, keepdims=True)                    # (Co, 1)
            hid_b = jnp.maximum(
                jnp.dot(w_ca1_ref[...], gap_b, preferred_element_type=f32), 0.0)
            cw_b = jax.nn.sigmoid(
                jnp.dot(w_ca2_ref[...], hid_b, preferred_element_type=f32))  # (Co, 1)
            pieces.append(fb * cw_b)
        x_ch = pieces[0] if B == 1 else jnp.concatenate(pieces, axis=1)    # (Co, B*Sl)

        # --- CGA spatial attention: 7x7 conv on [avg;max] via XLU rolls + weighted masks.
        #     wa/wm already carry w_sa's per-tap weight * zero-pad validity mask, so each
        #     tap is one roll + one FMA on a (1, B*Sl) row.  Rolls may wrap across row /
        #     example boundaries, but every wrapped tap is an out-of-image tap and the
        #     mask zeroes it. ------------------------------------------------------------
        avg_p = jnp.mean(x_ch, axis=0, keepdims=True)                      # (1, B*Sl)
        max_p = jnp.max(x_ch, axis=0, keepdims=True)                       # (1, B*Sl)
        sa = jnp.zeros((1, cols), f32)
        for t, off in enumerate(offs7):
            shift = (-off) % cols
            a_t = avg_p if shift == 0 else pltpu.roll(avg_p, shift, axis=1)
            m_t = max_p if shift == 0 else pltpu.roll(max_p, shift, axis=1)
            sa = sa + a_t * wa_ref[pl.ds(t, 1), :] + m_t * wm_ref[pl.ds(t, 1), :]
        x_sa = x_ch * jax.nn.sigmoid(sa)                                   # (Co, B*Sl)

        # --- fusion 3x3 conv: 9 rolled views, masked (mask broadcast over Co), written
        #     straight into VMEM scratch, then one (Co, 9*Co)@(9*Co, B*Sl) MXU matmul. ---
        for t, off in enumerate(offs3):
            shift = (-off) % cols
            v = x_sa if shift == 0 else pltpu.roll(x_sa, shift, axis=1)
            stack_ref[pl.ds(t * Co, Co), :] = v * mask9_ref[pl.ds(t, 1), :]
        out = jnp.dot(w_f_ref[...], stack_ref[...],
                      preferred_element_type=f32) + b_f_ref[...]
        out_ref[...] = out.astype(out_ref.dtype)

    return kernel


# --------------------------------------------------------------------------------------
# Host-side wrapper
# --------------------------------------------------------------------------------------
def cross_scale_fusion(high, low, params):
    (w_high, b_high, w_low, b_low, w_ca1, w_ca2, w_sa, w_f, b_f) = params
    N, Ch, Hh, Wh = high.shape
    _, Cl, Hl, Wl = low.shape
    Co = w_high.shape[0]
    f32 = jnp.float32

    Sh, Sl = Hh * Wh, Hl * Wl
    # TODO(synk): generalize to low-res spatial sizes that are not a multiple of 128
    # lanes (needs padded columns masked through the attention/conv chain).
    assert Sl % 128 == 0, "low-res H*W must be a multiple of 128"

    B = _pick_batch_block(N)
    nb = N // B
    grid = (nb,)

    # Pack the B examples' high-res maps into one lane block; pad only the block tail.
    BSh = B * Sh
    BShp = ((BSh + 127) // 128) * 128

    # ---- bilinear operator (align_corners=False). Rows sum to 1, which is what makes
    #      folding b_high into b_hl (post-upsample bias) exact. ------------------------
    uh = _bilinear_matrix(Hl, Hh)
    uw = _bilinear_matrix(Wl, Wh)
    u_full = np.kron(uh, uw)                                        # (Sl, Sh)
    assert np.allclose(u_full.sum(axis=1), 1.0, atol=1e-5)
    ubd_np = np.zeros((BShp, B * Sl), np.float32)
    for b in range(B):
        ubd_np[b * Sh:(b + 1) * Sh, b * Sl:(b + 1) * Sl] = u_full.T
    ubd = jnp.asarray(ubd_np)

    # ---- 7x7 spatial-attention conv: per-tap weighted zero-pad masks (w_sa folded in) --
    offs7, mask7 = _shift_taps(Hl, Wl, 7)                           # offsets, (49, Sl)
    mask7_t = jnp.asarray(np.tile(mask7, (1, B)))                   # (49, B*Sl)
    w_sa2 = w_sa.reshape(2, 49).astype(f32)
    wa = w_sa2[0].reshape(49, 1) * mask7_t                          # avg-channel weights
    wm = w_sa2[1].reshape(49, 1) * mask7_t                          # max-channel weights

    # ---- 3x3 fusion conv taps + small (9, B*Sl) validity mask -------------------------
    offs3, mask9 = _shift_taps(Hl, Wl, 3)                           # offsets, (9, Sl)
    mask9_t = jnp.asarray(np.tile(mask9, (1, B)))                   # (9, B*Sl)
    w_f_flat = jnp.transpose(w_f, (0, 2, 3, 1)).reshape(Co, 9 * Co).astype(f32)

    b_hl = (b_high + b_low).reshape(Co, 1).astype(f32)              # row-stochastic fold
    b_f_k = b_f.reshape(Co, 1).astype(f32)
    w_high_k = w_high.astype(f32)
    w_low_k = w_low.astype(f32)
    w_ca1_k = w_ca1.astype(f32)
    w_ca2_k = w_ca2.astype(f32)

    # ---- lane-dense activation layout: (C, N*S), spatial on the lane axis --------------
    high_flat = high.astype(f32).reshape(nb, B, Ch, Sh).transpose(2, 0, 1, 3)
    high_flat = high_flat.reshape(Ch, nb, BSh)
    if BShp != BSh:
        high_flat = jnp.pad(high_flat, ((0, 0), (0, 0), (0, BShp - BSh)))
    high_flat = high_flat.reshape(Ch, nb * BShp)
    low_flat = low.astype(f32).reshape(N, Cl, Sl).transpose(1, 0, 2).reshape(Cl, N * Sl)

    def _const(a):
        # Unchanging index map -> the pipeline fetches the block once (no per-step DMA).
        return pl.BlockSpec(a.shape, lambda n: (0, 0))

    in_specs = [
        pl.BlockSpec((Ch, BShp), lambda n: (0, n)),                 # high (packed block)
        pl.BlockSpec((Cl, B * Sl), lambda n: (0, n)),               # low
        _const(ubd), _const(wa), _const(wm), _const(mask9_t),
        _const(w_high_k), _const(w_low_k), _const(b_hl),
        _const(w_ca1_k), _const(w_ca2_k), _const(w_f_flat), _const(b_f_k),
    ]
    out_specs = pl.BlockSpec((Co, B * Sl), lambda n: (0, n))

    kernel = _make_csf_kernel(B, Sl, Co, tuple(offs7), tuple(offs3))
    out_flat = pl.pallas_call(
        kernel,
        out_shape=jax.ShapeDtypeStruct((Co, N * Sl), f32),
        grid=grid,
        in_specs=in_specs,
        out_specs=out_specs,
        scratch_shapes=[pltpu.VMEM((9 * Co, B * Sl), jnp.float32)],
        compiler_params=pltpu.CompilerParams(dimension_semantics=("parallel",)),
    )(high_flat, low_flat, ubd, wa, wm, mask9_t,
      w_high_k, w_low_k, b_hl, w_ca1_k, w_ca2_k, w_f_flat, b_f_k)

    return out_flat.reshape(Co, N, Hl, Wl).transpose(1, 0, 2, 3)    # back to NCHW


# --------------------------------------------------------------------------------------
# Pure-JAX reference (PyTorch semantics) for the self-check
# --------------------------------------------------------------------------------------
def reference(high, low, params):
    (w_high, b_high, w_low, b_low, w_ca1, w_ca2, w_sa, w_f, b_f) = params
    N, Ch, Hh, Wh = high.shape
    _, Cl, Hl, Wl = low.shape
    uh = jnp.asarray(_bilinear_matrix(Hl, Hh))
    uw = jnp.asarray(_bilinear_matrix(Wl, Wh))

    hp = jnp.einsum('oc,nchw->nohw', w_high, high) + b_high[None, :, None, None]
    up = jnp.einsum('ip,ncpq,jq->ncij', uh, hp, uw)
    lp = jnp.einsum('oc,nchw->nohw', w_low, low) + b_low[None, :, None, None]
    fused = up + lp

    gap = fused.mean(axis=(2, 3))
    hid = jax.nn.relu(gap @ w_ca1.T)
    cw = jax.nn.sigmoid(hid @ w_ca2.T)
    x_ch = fused * cw[:, :, None, None]

    avg_p = x_ch.mean(axis=1, keepdims=True)
    max_p = x_ch.max(axis=1, keepdims=True)
    si = jnp.concatenate([avg_p, max_p], axis=1)
    sa = lax.conv_general_dilated(si, w_sa, (1, 1), ((3, 3), (3, 3)))
    x_sa = x_ch * jax.nn.sigmoid(sa)

    out = lax.conv_general_dilated(x_sa, w_f, (1, 1), ((1, 1), (1, 1)))
    return out + b_f[None, :, None, None]


if __name__ == "__main__":
    # high scale (N, 8, 8, 8) -> low scale (N, 4, 16, 16), out_channels = 32
    # (reduction=16 gives a channel-attention hidden width of 2).
    N, Ch, Cl, Co = 2, 8, 4, 32
    Hh = Wh = 8
    Hl = Wl = 16
    Cmid = Co // 16

    key = jax.random.PRNGKey(0)
    ks = jax.random.split(key, 12)
    f32 = jnp.float32
    high = jax.random.normal(ks[0], (N, Ch, Hh, Wh), f32)
    low = jax.random.normal(ks[1], (N, Cl, Hl, Wl), f32)

    params = (
        jax.random.normal(ks[2], (Co, Ch), f32) * 0.2,        # conv_high weight (1x1)
        jax.random.normal(ks[3], (Co,), f32) * 0.05,          # conv_high bias
        jax.random.normal(ks[4], (Co, Cl), f32) * 0.2,        # conv_low weight (1x1)
        jax.random.normal(ks[5], (Co,), f32) * 0.05,          # conv_low bias
        jax.random.normal(ks[6], (Cmid, Co), f32) * 0.2,      # CGA channel conv1 (no bias)
        jax.random.normal(ks[7], (Co, Cmid), f32) * 0.2,      # CGA channel conv2 (no bias)
        jax.random.normal(ks[8], (1, 2, 7, 7), f32) * 0.1,    # CGA spatial 7x7 conv (no bias)
        jax.random.normal(ks[9], (Co, Co, 3, 3), f32) * 0.1,  # fusion 3x3 conv weight
        jax.random.normal(ks[10], (Co,), f32) * 0.05,         # fusion bias
    )

    out = cross_scale_fusion(high, low, params)
    out = jax.block_until_ready(out)

    ref = jax.block_until_ready(reference(high, low, params))
    np.testing.assert_allclose(np.asarray(out), np.asarray(ref), rtol=1e-3, atol=1e-3)

    print("KERNEL_OK")
</pallas_src>

<mosaic_0001>
module attributes {stable_mosaic.version = 11 : i64} {
  func.func @kernel(%arg0: i32, %arg1: memref<8x128xf32, #tpu.memory_space<vmem>>, %arg2: memref<4x256xf32, #tpu.memory_space<vmem>>, %arg3: memref<128x256xf32, #tpu.memory_space<vmem>>, %arg4: memref<49x256xf32, #tpu.memory_space<vmem>>, %arg5: memref<49x256xf32, #tpu.memory_space<vmem>>, %arg6: memref<9x256xf32, #tpu.memory_space<vmem>>, %arg7: memref<32x8xf32, #tpu.memory_space<vmem>>, %arg8: memref<32x4xf32, #tpu.memory_space<vmem>>, %arg9: memref<32x1xf32, #tpu.memory_space<vmem>>, %arg10: memref<2x32xf32, #tpu.memory_space<vmem>>, %arg11: memref<32x2xf32, #tpu.memory_space<vmem>>, %arg12: memref<32x288xf32, #tpu.memory_space<vmem>>, %arg13: memref<32x1xf32, #tpu.memory_space<vmem>>, %arg14: memref<32x256xf32, #tpu.memory_space<vmem>>, %arg15: memref<288x256xf32, #tpu.memory_space<vmem>>) attributes {dimension_semantics = [#tpu.dimension_semantics<parallel>], iteration_bounds = array<i64: 2>, scalar_prefetch = 0 : i64, scratch_operands = 1 : i64, tpu.core_type = #tpu.core_type<tc>, window_params = [{transform_indices = @transform_0, window_bounds = array<i64: 8, 128>}, {transform_indices = @transform_1, window_bounds = array<i64: 4, 256>}, {pipeline_mode = #tpu.pipeline_mode<synchronous>, transform_indices = @transform_2, window_bounds = array<i64: 128, 256>}, {pipeline_mode = #tpu.pipeline_mode<synchronous>, transform_indices = @transform_3, window_bounds = array<i64: 49, 256>}, {pipeline_mode = #tpu.pipeline_mode<synchronous>, transform_indices = @transform_4, window_bounds = array<i64: 49, 256>}, {pipeline_mode = #tpu.pipeline_mode<synchronous>, transform_indices = @transform_5, window_bounds = array<i64: 9, 256>}, {pipeline_mode = #tpu.pipeline_mode<synchronous>, transform_indices = @transform_6, window_bounds = array<i64: 32, 8>}, {pipeline_mode = #tpu.pipeline_mode<synchronous>, transform_indices = @transform_7, window_bounds = array<i64: 32, 4>}, {pipeline_mode = #tpu.pipeline_mode<synchronous>, transform_indices = @transform_8, window_bounds = array<i64: 32, 1>}, {pipeline_mode = #tpu.pipeline_mode<synchronous>, transform_indices = @transform_9, window_bounds = array<i64: 2, 32>}, {pipeline_mode = #tpu.pipeline_mode<synchronous>, transform_indices = @transform_10, window_bounds = array<i64: 32, 2>}, {pipeline_mode = #tpu.pipeline_mode<synchronous>, transform_indices = @transform_11, window_bounds = array<i64: 32, 288>}, {pipeline_mode = #tpu.pipeline_mode<synchronous>, transform_indices = @transform_12, window_bounds = array<i64: 32, 1>}, {transform_indices = @transform_13, window_bounds = array<i64: 32, 256>}]} {
    %c0 = arith.constant 0 : index
    %c0_0 = arith.constant 0 : index
    %0 = vector.load %arg1[%c0, %c0_0] : memref<8x128xf32, #tpu.memory_space<vmem>>, vector<8x128xf32>
    %c0_1 = arith.constant 0 : index
    %c0_2 = arith.constant 0 : index
    %1 = vector.load %arg3[%c0_1, %c0_2] : memref<128x256xf32, #tpu.memory_space<vmem>>, vector<128x256xf32>
    %cst = arith.constant dense<0.000000e+00> : vector<8x256xf32>
    %2 = tpu.matmul %0, %1, %cst {dimension_numbers = #tpu.dot_dimension_numbers<[1], [0], [0], [1], [0, 0, 1, 1], [], []>} : vector<8x128xf32>, vector<128x256xf32>, vector<8x256xf32> -> vector<8x256xf32>
    %c0_3 = arith.constant 0 : index
    %c0_4 = arith.constant 0 : index
    %3 = vector.load %arg7[%c0_3, %c0_4] : memref<32x8xf32, #tpu.memory_space<vmem>>, vector<32x8xf32>
    %cst_5 = arith.constant dense<0.000000e+00> : vector<32x256xf32>
    %4 = tpu.matmul %3, %2, %cst_5 {dimension_numbers = #tpu.dot_dimension_numbers<[1], [0], [0], [1], [0, 0, 1, 1], [], []>} : vector<32x8xf32>, vector<8x256xf32>, vector<32x256xf32> -> vector<32x256xf32>
    %c0_6 = arith.constant 0 : index
    %c0_7 = arith.constant 0 : index
    %5 = vector.load %arg8[%c0_6, %c0_7] : memref<32x4xf32, #tpu.memory_space<vmem>>, vector<32x4xf32>
    %c0_8 = arith.constant 0 : index
    %c0_9 = arith.constant 0 : index
    %6 = vector.load %arg2[%c0_8, %c0_9] : memref<4x256xf32, #tpu.memory_space<vmem>>, vector<4x256xf32>
    %cst_10 = arith.constant dense<0.000000e+00> : vector<32x256xf32>
    %7 = tpu.matmul %5, %6, %cst_10 {dimension_numbers = #tpu.dot_dimension_numbers<[1], [0], [0], [1], [0, 0, 1, 1], [], []>} : vector<32x4xf32>, vector<4x256xf32>, vector<32x256xf32> -> vector<32x256xf32>
    %8 = arith.addf %4, %7 : vector<32x256xf32>
    %c0_11 = arith.constant 0 : index
    %c0_12 = arith.constant 0 : index
    %9 = vector.load %arg9[%c0_11, %c0_12] : memref<32x1xf32, #tpu.memory_space<vmem>>, vector<32x1xf32>
    %10 = vector.broadcast %9 : vector<32x1xf32> to vector<32x256xf32>
    %11 = arith.addf %8, %10 : vector<32x256xf32>
    %cst_13 = arith.constant dense<0.000000e+00> : vector<32xf32>
    %12 = vector.multi_reduction <add>, %11, %cst_13 [1] : vector<32x256xf32> to vector<32xf32>
    %13 = vector.shape_cast %12 : vector<32xf32> to vector<32x1xf32>
    %cst_14 = arith.constant 2.560000e+02 : f32
    %14 = vector.broadcast %cst_14 : f32 to vector<32x1xf32>
    %15 = arith.divf %13, %14 : vector<32x1xf32>
    %c0_15 = arith.constant 0 : index
    %c0_16 = arith.constant 0 : index
    %16 = vector.load %arg10[%c0_15, %c0_16] : memref<2x32xf32, #tpu.memory_space<vmem>>, vector<2x32xf32>
    %cst_17 = arith.constant dense<0.000000e+00> : vector<2x1xf32>
    %17 = tpu.matmul %16, %15, %cst_17 {dimension_numbers = #tpu.dot_dimension_numbers<[1], [0], [0], [1], [0, 0, 1, 1], [], []>} : vector<2x32xf32>, vector<32x1xf32>, vector<2x1xf32> -> vector<2x1xf32>
    %cst_18 = arith.constant 0.000000e+00 : f32
    %18 = vector.broadcast %cst_18 : f32 to vector<2x1xf32>
    %19 = arith.maximumf %17, %18 : vector<2x1xf32>
    %c0_19 = arith.constant 0 : index
    %c0_20 = arith.constant 0 : index
    %20 = vector.load %arg11[%c0_19, %c0_20] : memref<32x2xf32, #tpu.memory_space<vmem>>, vector<32x2xf32>
    %cst_21 = arith.constant dense<0.000000e+00> : vector<32x1xf32>
    %21 = tpu.matmul %20, %19, %cst_21 {dimension_numbers = #tpu.dot_dimension_numbers<[1], [0], [0], [1], [0, 0, 1, 1], [], []>} : vector<32x2xf32>, vector<2x1xf32>, vector<32x1xf32> -> vector<32x1xf32>
    %22 = arith.negf %21 : vector<32x1xf32>
    %23 = math.exp %22 : vector<32x1xf32>
    %cst_22 = arith.constant 1.000000e+00 : f32
    %24 = vector.broadcast %cst_22 : f32 to vector<32x1xf32>
    %25 = arith.addf %24, %23 : vector<32x1xf32>
    %26 = arith.divf %24, %25 : vector<32x1xf32>
    %27 = vector.broadcast %26 : vector<32x1xf32> to vector<32x256xf32>
    %28 = arith.mulf %11, %27 : vector<32x256xf32>
    %cst_23 = arith.constant dense<0.000000e+00> : vector<256xf32>
    %29 = vector.multi_reduction <add>, %28, %cst_23 [0] : vector<32x256xf32> to vector<256xf32>
    %30 = vector.shape_cast %29 : vector<256xf32> to vector<1x256xf32>
    %cst_24 = arith.constant 3.200000e+01 : f32
    %31 = vector.broadcast %cst_24 : f32 to vector<1x256xf32>
    %32 = arith.divf %30, %31 : vector<1x256xf32>
    %cst_25 = arith.constant dense<0xFF800000> : vector<256xf32>
    %33 = vector.multi_reduction <maximumf>, %28, %cst_25 [0] : vector<32x256xf32> to vector<256xf32>
    %34 = vector.shape_cast %33 : vector<256xf32> to vector<1x256xf32>
    %cst_26 = arith.constant 0.000000e+00 : f32
    %35 = vector.broadcast %cst_26 : f32 to vector<1x256xf32>
    %c51_i32 = arith.constant 51 : i32
    %36 = tpu.dynamic_rotate %32 by %c51_i32 dim 1 : vector<1x256xf32>, i32 -> vector<1x256xf32>
    %c51_i32_27 = arith.constant 51 : i32
    %37 = tpu.dynamic_rotate %34 by %c51_i32_27 dim 1 : vector<1x256xf32>, i32 -> vector<1x256xf32>
    %c0_28 = arith.constant 0 : index
    %c0_29 = arith.constant 0 : index
    %38 = vector.load %arg4[%c0_28, %c0_29] : memref<49x256xf32, #tpu.memory_space<vmem>>, vector<1x256xf32>
    %39 = arith.mulf %36, %38 : vector<1x256xf32>
    %40 = arith.addf %35, %39 : vector<1x256xf32>
    %c0_30 = arith.constant 0 : index
    %c0_31 = arith.constant 0 : index
    %41 = vector.load %arg5[%c0_30, %c0_31] : memref<49x256xf32, #tpu.memory_space<vmem>>, vector<1x256xf32>
    %42 = arith.mulf %37, %41 : vector<1x256xf32>
    %43 = arith.addf %40, %42 : vector<1x256xf32>
    %c50_i32 = arith.constant 50 : i32
    %44 = tpu.dynamic_rotate %32 by %c50_i32 dim 1 : vector<1x256xf32>, i32 -> vector<1x256xf32>
    %c50_i32_32 = arith.constant 50 : i32
    %45 = tpu.dynamic_rotate %34 by %c50_i32_32 dim 1 : vector<1x256xf32>, i32 -> vector<1x256xf32>
    %c1 = arith.constant 1 : index
    %c0_33 = arith.constant 0 : index
    %46 = vector.load %arg4[%c1, %c0_33] : memref<49x256xf32, #tpu.memory_space<vmem>>, vector<1x256xf32>
    %47 = arith.mulf %44, %46 : vector<1x256xf32>
    %48 = arith.addf %43, %47 : vector<1x256xf32>
    %c1_34 = arith.constant 1 : index
    %c0_35 = arith.constant 0 : index
    %49 = vector.load %arg5[%c1_34, %c0_35] : memref<49x256xf32, #tpu.memory_space<vmem>>, vector<1x256xf32>
    %50 = arith.mulf %45, %49 : vector<1x256xf32>
    %51 = arith.addf %48, %50 : vector<1x256xf32>
    %c49_i32 = arith.constant 49 : i32
    %52 = tpu.dynamic_rotate %32 by %c49_i32 dim 1 : vector<1x256xf32>, i32 -> vector<1x256xf32>
    %c49_i32_36 = arith.constant 49 : i32
    %53 = tpu.dynamic_rotate %34 by %c49_i32_36 dim 1 : vector<1x256xf32>, i32 -> vector<1x256xf32>
    %c2 = arith.constant 2 : index
    %c0_37 = arith.constant 0 : index
    %54 = vector.load %arg4[%c2, %c0_37] : memref<49x256xf32, #tpu.memory_space<vmem>>, vector<1x256xf32>
    %55 = arith.mulf %52, %54 : vector<1x256xf32>
    %56 = arith.addf %51, %55 : vector<1x256xf32>
    %c2_38 = arith.constant 2 : index
    %c0_39 = arith.constant 0 : index
    %57 = vector.load %arg5[%c2_38, %c0_39] : memref<49x256xf32, #tpu.memory_space<vmem>>, vector<1x256xf32>
    %58 = arith.mulf %53, %57 : vector<1x256xf32>
    %59 = arith.addf %56, %58 : vector<1x256xf32>
    %c48_i32 = arith.constant 48 : i32
    %60 = tpu.dynamic_rotate %32 by %c48_i32 dim 1 : vector<1x256xf32>, i32 -> vector<1x256xf32>
    %c48_i32_40 = arith.constant 48 : i32
    %61 = tpu.dynamic_rotate %34 by %c48_i32_40 dim 1 : vector<1x256xf32>, i32 -> vector<1x256xf32>
    %c3 = arith.constant 3 : index
    %c0_41 = arith.constant 0 : index
    %62 = vector.load %arg4[%c3, %c0_41] : memref<49x256xf32, #tpu.memory_space<vmem>>, vector<1x256xf32>
    %63 = arith.mulf %60, %62 : vector<1x256xf32>
    %64 = arith.addf %59, %63 : vector<1x256xf32>
    %c3_42 = arith.constant 3 : index
    %c0_43 = arith.constant 0 : index
    %65 = vector.load %arg5[%c3_42, %c0_43] : memref<49x256xf32, #tpu.memory_space<vmem>>, vector<1x256xf32>
    %66 = arith.mulf %61, %65 : vector<1x256xf32>
    %67 = arith.addf %64, %66 : vector<1x256xf32>
    %c47_i32 = arith.constant 47 : i32
    %68 = tpu.dynamic_rotate %32 by %c47_i32 dim 1 : vector<1x256xf32>, i32 -> vector<1x256xf32>
    %c47_i32_44 = arith.constant 47 : i32
    %69 = tpu.dynamic_rotate %34 by %c47_i32_44 dim 1 : vector<1x256xf32>, i32 -> vector<1x256xf32>
    %c4 = arith.constant 4 : index
    %c0_45 = arith.constant 0 : index
    %70 = vector.load %arg4[%c4, %c0_45] : memref<49x256xf32, #tpu.memory_space<vmem>>, vector<1x256xf32>
    %71 = arith.mulf %68, %70 : vector<1x256xf32>
    %72 = arith.addf %67, %71 : vector<1x256xf32>
    %c4_46 = arith.constant 4 : index
    %c0_47 = arith.constant 0 : index
    %73 = vector.load %arg5[%c4_46, %c0_47] : memref<49x256xf32, #tpu.memory_space<vmem>>, vector<1x256xf32>
    %74 = arith.mulf %69, %73 : vector<1x256xf32>
    %75 = arith.addf %72, %74 : vector<1x256xf32>
    %c46_i32 = arith.constant 46 : i32
    %76 = tpu.dynamic_rotate %32 by %c46_i32 dim 1 : vector<1x256xf32>, i32 -> vector<1x256xf32>
    %c46_i32_48 = arith.constant 46 : i32
    %77 = tpu.dynamic_rotate %34 by %c46_i32_48 dim 1 : vector<1x256xf32>, i32 -> vector<1x256xf32>
    %c5 = arith.constant 5 : index
    %c0_49 = arith.constant 0 : index
    %78 = vector.load %arg4[%c5, %c0_49] : memref<49x256xf32, #tpu.memory_space<vmem>>, vector<1x256xf32>
    %79 = arith.mulf %76, %78 : vector<1x256xf32>
    %80 = arith.addf %75, %79 : vector<1x256xf32>
    %c5_50 = arith.constant 5 : index
    %c0_51 = arith.constant 0 : index
    %81 = vector.load %arg5[%c5_50, %c0_51] : memref<49x256xf32, #tpu.memory_space<vmem>>, vector<1x256xf32>
    %82 = arith.mulf %77, %81 : vector<1x256xf32>
    %83 = arith.addf %80, %82 : vector<1x256xf32>
    %c45_i32 = arith.constant 45 : i32
    %84 = tpu.dynamic_rotate %32 by %c45_i32 dim 1 : vector<1x256xf32>, i32 -> vector<1x256xf32>
    %c45_i32_52 = arith.constant 45 : i32
    %85 = tpu.dynamic_rotate %34 by %c45_i32_52 dim 1 : vector<1x256xf32>, i32 -> vector<1x256xf32>
    %c6 = arith.constant 6 : index
    %c0_53 = arith.constant 0 : index
    %86 = vector.load %arg4[%c6, %c0_53] : memref<49x256xf32, #tpu.memory_space<vmem>>, vector<1x256xf32>
    %87 = arith.mulf %84, %86 : vector<1x256xf32>
    %88 = arith.addf %83, %87 : vector<1x256xf32>
    %c6_54 = arith.constant 6 : index
    %c0_55 = arith.constant 0 : index
    %89 = vector.load %arg5[%c6_54, %c0_55] : memref<49x256xf32, #tpu.memory_space<vmem>>, vector<1x256xf32>
    %90 = arith.mulf %85, %89 : vector<1x256xf32>
    %91 = arith.addf %88, %90 : vector<1x256xf32>
    %c35_i32 = arith.constant 35 : i32
    %92 = tpu.dynamic_rotate %32 by %c35_i32 dim 1 : vector<1x256xf32>, i32 -> vector<1x256xf32>
    %c35_i32_56 = arith.constant 35 : i32
    %93 = tpu.dynamic_rotate %34 by %c35_i32_56 dim 1 : vector<1x256xf32>, i32 -> vector<1x256xf32>
    %c7 = arith.constant 7 : index
    %c0_57 = arith.constant 0 : index
    %94 = vector.load %arg4[%c7, %c0_57] : memref<49x256xf32, #tpu.memory_space<vmem>>, vector<1x256xf32>
    %95 = arith.mulf %92, %94 : vector<1x256xf32>
    %96 = arith.addf %91, %95 : vector<1x256xf32>
    %c7_58 = arith.constant 7 : index
    %c0_59 = arith.constant 0 : index
    %97 = vector.load %arg5[%c7_58, %c0_59] : memref<49x256xf32, #tpu.memory_space<vmem>>, vector<1x256xf32>
    %98 = arith.mulf %93, %97 : vector<1x256xf32>
    %99 = arith.addf %96, %98 : vector<1x256xf32>
    %c34_i32 = arith.constant 34 : i32
    %100 = tpu.dynamic_rotate %32 by %c34_i32 dim 1 : vector<1x256xf32>, i32 -> vector<1x256xf32>
    %c34_i32_60 = arith.constant 34 : i32
    %101 = tpu.dynamic_rotate %34 by %c34_i32_60 dim 1 : vector<1x256xf32>, i32 -> vector<1x256xf32>
    %c8 = arith.constant 8 : index
    %c0_61 = arith.constant 0 : index
    %102 = vector.load %arg4[%c8, %c0_61] : memref<49x256xf32, #tpu.memory_space<vmem>>, vector<1x256xf32>
    %103 = arith.mulf %100, %102 : vector<1x256xf32>
    %104 = arith.addf %99, %103 : vector<1x256xf32>
    %c8_62 = arith.constant 8 : index
    %c0_63 = arith.constant 0 : index
    %105 = vector.load %arg5[%c8_62, %c0_63] : memref<49x256xf32, #tpu.memory_space<vmem>>, vector<1x256xf32>
    %106 = arith.mulf %101, %105 : vector<1x256xf32>
    %107 = arith.addf %104, %106 : vector<1x256xf32>
    %c33_i32 = arith.constant 33 : i32
    %108 = tpu.dynamic_rotate %32 by %c33_i32 dim 1 : vector<1x256xf32>, i32 -> vector<1x256xf32>
    %c33_i32_64 = arith.constant 33 : i32
    %109 = tpu.dynamic_rotate %34 by %c33_i32_64 dim 1 : vector<1x256xf32>, i32 -> vector<1x256xf32>
    %c9 = arith.constant 9 : index
    %c0_65 = arith.constant 0 : index
    %110 = vector.load %arg4[%c9, %c0_65] : memref<49x256xf32, #tpu.memory_space<vmem>>, vector<1x256xf32>
    %111 = arith.mulf %108, %110 : vector<1x256xf32>
    %112 = arith.addf %107, %111 : vector<1x256xf32>
    %c9_66 = arith.constant 9 : index
    %c0_67 = arith.constant 0 : index
    %113 = vector.load %arg5[%c9_66, %c0_67] : memref<49x256xf32, #tpu.memory_space<vmem>>, vector<1x256xf32>
    %114 = arith.mulf %109, %113 : vector<1x256xf32>
    %115 = arith.addf %112, %114 : vector<1x256xf32>
    %c32_i32 = arith.constant 32 : i32
    %116 = tpu.dynamic_rotate %32 by %c32_i32 dim 1 : vector<1x256xf32>, i32 -> vector<1x256xf32>
    %c32_i32_68 = arith.constant 32 : i32
    %117 = tpu.dynamic_rotate %34 by %c32_i32_68 dim 1 : vector<1x256xf32>, i32 -> vector<1x256xf32>
    %c10 = arith.constant 10 : index
    %c0_69 = arith.constant 0 : index
    %118 = vector.load %arg4[%c10, %c0_69] : memref<49x256xf32, #tpu.memory_space<vmem>>, vector<1x256xf32>
    %119 = arith.mulf %116, %118 : vector<1x256xf32>
    %120 = arith.addf %115, %119 : vector<1x256xf32>
    %c10_70 = arith.constant 10 : index
    %c0_71 = arith.constant 0 : index
    %121 = vector.load %arg5[%c10_70, %c0_71] : memref<49x256xf32, #tpu.memory_space<vmem>>, vector<1x256xf32>
    %122 = arith.mulf %117, %121 : vector<1x256xf32>
    %123 = arith.addf %120, %122 : vector<1x256xf32>
    %c31_i32 = arith.constant 31 : i32
    %124 = tpu.dynamic_rotate %32 by %c31_i32 dim 1 : vector<1x256xf32>, i32 -> vector<1x256xf32>
    %c31_i32_72 = arith.constant 31 : i32
    %125 = tpu.dynamic_rotate %34 by %c31_i32_72 dim 1 : vector<1x256xf32>, i32 -> vector<1x256xf32>
    %c11 = arith.constant 11 : index
    %c0_73 = arith.constant 0 : index
    %126 = vector.load %arg4[%c11, %c0_73] : memref<49x256xf32, #tpu.memory_space<vmem>>, vector<1x256xf32>
    %127 = arith.mulf %124, %126 : vector<1x256xf32>
    %128 = arith.addf %123, %127 : vector<1x256xf32>
    %c11_74 = arith.constant 11 : index
    %c0_75 = arith.constant 0 : index
    %129 = vector.load %arg5[%c11_74, %c0_75] : memref<49x256xf32, #tpu.memory_space<vmem>>, vector<1x256xf32>
    %130 = arith.mulf %125, %129 : vector<1x256xf32>
    %131 = arith.addf %128, %130 : vector<1x256xf32>
    %c30_i32 = arith.constant 30 : i32
    %132 = tpu.dynamic_rotate %32 by %c30_i32 dim 1 : vector<1x256xf32>, i32 -> vector<1x256xf32>
    %c30_i32_76 = arith.constant 30 : i32
    %133 = tpu.dynamic_rotate %34 by %c30_i32_76 dim 1 : vector<1x256xf32>, i32 -> vector<1x256xf32>
    %c12 = arith.constant 12 : index
    %c0_77 = arith.constant 0 : index
    %134 = vector.load %arg4[%c12, %c0_77] : memref<49x256xf32, #tpu.memory_space<vmem>>, vector<1x256xf32>
    %135 = arith.mulf %132, %134 : vector<1x256xf32>
    %136 = arith.addf %131, %135 : vector<1x256xf32>
    %c12_78 = arith.constant 12 : index
    %c0_79 = arith.constant 0 : index
    %137 = vector.load %arg5[%c12_78, %c0_79] : memref<49x256xf32, #tpu.memory_space<vmem>>, vector<1x256xf32>
    %138 = arith.mulf %133, %137 : vector<1x256xf32>
    %139 = arith.addf %136, %138 : vector<1x256xf32>
    %c29_i32 = arith.constant 29 : i32
    %140 = tpu.dynamic_rotate %32 by %c29_i32 dim 1 : vector<1x256xf32>, i32 -> vector<1x256xf32>
    %c29_i32_80 = arith.constant 29 : i32
    %141 = tpu.dynamic_rotate %34 by %c29_i32_80 dim 1 : vector<1x256xf32>, i32 -> vector<1x256xf32>
    %c13 = arith.constant 13 : index
    %c0_81 = arith.constant 0 : index
    %142 = vector.load %arg4[%c13, %c0_81] : memref<49x256xf32, #tpu.memory_space<vmem>>, vector<1x256xf32>
    %143 = arith.mulf %140, %142 : vector<1x256xf32>
    %144 = arith.addf %139, %143 : vector<1x256xf32>
    %c13_82 = arith.constant 13 : index
    %c0_83 = arith.constant 0 : index
    %145 = vector.load %arg5[%c13_82, %c0_83] : memref<49x256xf32, #tpu.memory_space<vmem>>, vector<1x256xf32>
    %146 = arith.mulf %141, %145 : vector<1x256xf32>
    %147 = arith.addf %144, %146 : vector<1x256xf32>
    %c19_i32 = arith.constant 19 : i32
    %148 = tpu.dynamic_rotate %32 by %c19_i32 dim 1 : vector<1x256xf32>, i32 -> vector<1x256xf32>
    %c19_i32_84 = arith.constant 19 : i32
    %149 = tpu.dynamic_rotate %34 by %c19_i32_84 dim 1 : vector<1x256xf32>, i32 -> vector<1x256xf32>
    %c14 = arith.constant 14 : index
    %c0_85 = arith.constant 0 : index
    %150 = vector.load %arg4[%c14, %c0_85] : memref<49x256xf32, #tpu.memory_space<vmem>>, vector<1x256xf32>
    %151 = arith.mulf %148, %150 : vector<1x256xf32>
    %152 = arith.addf %147, %151 : vector<1x256xf32>
    %c14_86 = arith.constant 14 : index
    %c0_87 = arith.constant 0 : index
    %153 = vector.load %arg5[%c14_86, %c0_87] : memref<49x256xf32, #tpu.memory_space<vmem>>, vector<1x256xf32>
    %154 = arith.mulf %149, %153 : vector<1x256xf32>
    %155 = arith.addf %152, %154 : vector<1x256xf32>
    %c18_i32 = arith.constant 18 : i32
    %156 = tpu.dynamic_rotate %32 by %c18_i32 dim 1 : vector<1x256xf32>, i32 -> vector<1x256xf32>
    %c18_i32_88 = arith.constant 18 : i32
    %157 = tpu.dynamic_rotate %34 by %c18_i32_88 dim 1 : vector<1x256xf32>, i32 -> vector<1x256xf32>
    %c15 = arith.constant 15 : index
    %c0_89 = arith.constant 0 : index
    %158 = vector.load %arg4[%c15, %c0_89] : memref<49x256xf32, #tpu.memory_space<vmem>>, vector<1x256xf32>
    %159 = arith.mulf %156, %158 : vector<1x256xf32>
    %160 = arith.addf %155, %159 : vector<1x256xf32>
    %c15_90 = arith.constant 15 : index
    %c0_91 = arith.constant 0 : index
    %161 = vector.load %arg5[%c15_90, %c0_91] : memref<49x256xf32, #tpu.memory_space<vmem>>, vector<1x256xf32>
    %162 = arith.mulf %157, %161 : vector<1x256xf32>
    %163 = arith.addf %160, %162 : vector<1x256xf32>
    %c17_i32 = arith.constant 17 : i32
    %164 = tpu.dynamic_rotate %32 by %c17_i32 dim 1 : vector<1x256xf32>, i32 -> vector<1x256xf32>
    %c17_i32_92 = arith.constant 17 : i32
    %165 = tpu.dynamic_rotate %34 by %c17_i32_92 dim 1 : vector<1x256xf32>, i32 -> vector<1x256xf32>
    %c16 = arith.constant 16 : index
    %c0_93 = arith.constant 0 : index
    %166 = vector.load %arg4[%c16, %c0_93] : memref<49x256xf32, #tpu.memory_space<vmem>>, vector<1x256xf32>
    %167 = arith.mulf %164, %166 : vector<1x256xf32>
    %168 = arith.addf %163, %167 : vector<1x256xf32>
    %c16_94 = arith.constant 16 : index
    %c0_95 = arith.constant 0 : index
    %169 = vector.load %arg5[%c16_94, %c0_95] : memref<49x256xf32, #tpu.memory_space<vmem>>, vector<1x256xf32>
    %170 = arith.mulf %165, %169 : vector<1x256xf32>
    %171 = arith.addf %168, %170 : vector<1x256xf32>
    %c16_i32 = arith.constant 16 : i32
    %172 = tpu.dynamic_rotate %32 by %c16_i32 dim 1 : vector<1x256xf32>, i32 -> vector<1x256xf32>
    %c16_i32_96 = arith.constant 16 : i32
    %173 = tpu.dynamic_rotate %34 by %c16_i32_96 dim 1 : vector<1x256xf32>, i32 -> vector<1x256xf32>
    %c17 = arith.constant 17 : index
    %c0_97 = arith.constant 0 : index
    %174 = vector.load %arg4[%c17, %c0_97] : memref<49x256xf32, #tpu.memory_space<vmem>>, vector<1x256xf32>
    %175 = arith.mulf %172, %174 : vector<1x256xf32>
    %176 = arith.addf %171, %175 : vector<1x256xf32>
    %c17_98 = arith.constant 17 : index
    %c0_99 = arith.constant 0 : index
    %177 = vector.load %arg5[%c17_98, %c0_99] : memref<49x256xf32, #tpu.memory_space<vmem>>, vector<1x256xf32>
    %178 = arith.mulf %173, %177 : vector<1x256xf32>
    %179 = arith.addf %176, %178 : vector<1x256xf32>
    %c15_i32 = arith.constant 15 : i32
    %180 = tpu.dynamic_rotate %32 by %c15_i32 dim 1 : vector<1x256xf32>, i32 -> vector<1x256xf32>
    %c15_i32_100 = arith.constant 15 : i32
    %181 = tpu.dynamic_rotate %34 by %c15_i32_100 dim 1 : vector<1x256xf32>, i32 -> vector<1x256xf32>
    %c18 = arith.constant 18 : index
    %c0_101 = arith.constant 0 : index
    %182 = vector.load %arg4[%c18, %c0_101] : memref<49x256xf32, #tpu.memory_space<vmem>>, vector<1x256xf32>
    %183 = arith.mulf %180, %182 : vector<1x256xf32>
    %184 = arith.addf %179, %183 : vector<1x256xf32>
    %c18_102 = arith.constant 18 : index
    %c0_103 = arith.constant 0 : index
    %185 = vector.load %arg5[%c18_102, %c0_103] : memref<49x256xf32, #tpu.memory_space<vmem>>, vector<1x256xf32>
    %186 = arith.mulf %181, %185 : vector<1x256xf32>
    %187 = arith.addf %184, %186 : vector<1x256xf32>
    %c14_i32 = arith.constant 14 : i32
    %188 = tpu.dynamic_rotate %32 by %c14_i32 dim 1 : vector<1x256xf32>, i32 -> vector<1x256xf32>
    %c14_i32_104 = arith.constant 14 : i32
    %189 = tpu.dynamic_rotate %34 by %c14_i32_104 dim 1 : vector<1x256xf32>, i32 -> vector<1x256xf32>
    %c19 = arith.constant 19 : index
    %c0_105 = arith.constant 0 : index
    %190 = vector.load %arg4[%c19, %c0_105] : memref<49x256xf32, #tpu.memory_space<vmem>>, vector<1x256xf32>
    %191 = arith.mulf %188, %190 : vector<1x256xf32>
    %192 = arith.addf %187, %191 : vector<1x256xf32>
    %c19_106 = arith.constant 19 : index
    %c0_107 = arith.constant 0 : index
    %193 = vector.load %arg5[%c19_106, %c0_107] : memref<49x256xf32, #tpu.memory_space<vmem>>, vector<1x256xf32>
    %194 = arith.mulf %189, %193 : vector<1x256xf32>
    %195 = arith.addf %192, %194 : vector<1x256xf32>
    %c13_i32 = arith.constant 13 : i32
    %196 = tpu.dynamic_rotate %32 by %c13_i32 dim 1 : vector<1x256xf32>, i32 -> vector<1x256xf32>
    %c13_i32_108 = arith.constant 13 : i32
    %197 = tpu.dynamic_rotate %34 by %c13_i32_108 dim 1 : vector<1x256xf32>, i32 -> vector<1x256xf32>
    %c20 = arith.constant 20 : index
    %c0_109 = arith.constant 0 : index
    %198 = vector.load %arg4[%c20, %c0_109] : memref<49x256xf32, #tpu.memory_space<vmem>>, vector<1x256xf32>
    %199 = arith.mulf %196, %198 : vector<1x256xf32>
    %200 = arith.addf %195, %199 : vector<1x256xf32>
    %c20_110 = arith.constant 20 : index
    %c0_111 = arith.constant 0 : index
    %201 = vector.load %arg5[%c20_110, %c0_111] : memref<49x256xf32, #tpu.memory_space<vmem>>, vector<1x256xf32>
    %202 = arith.mulf %197, %201 : vector<1x256xf32>
    %203 = arith.addf %200, %202 : vector<1x256xf32>
    %c3_i32 = arith.constant 3 : i32
    %204 = tpu.dynamic_rotate %32 by %c3_i32 dim 1 : vector<1x256xf32>, i32 -> vector<1x256xf32>
    %c3_i32_112 = arith.constant 3 : i32
    %205 = tpu.dynamic_rotate %34 by %c3_i32_112 dim 1 : vector<1x256xf32>, i32 -> vector<1x256xf32>
    %c21 = arith.constant 21 : index
    %c0_113 = arith.constant 0 : index
    %206 = vector.load %arg4[%c21, %c0_113] : memref<49x256xf32, #tpu.memory_space<vmem>>, vector<1x256xf32>
    %207 = arith.mulf %204, %206 : vector<1x256xf32>
    %208 = arith.addf %203, %207 : vector<1x256xf32>
    %c21_114 = arith.constant 21 : index
    %c0_115 = arith.constant 0 : index
    %209 = vector.load %arg5[%c21_114, %c0_115] : memref<49x256xf32, #tpu.memory_space<vmem>>, vector<1x256xf32>
    %210 = arith.mulf %205, %209 : vector<1x256xf32>
    %211 = arith.addf %208, %210 : vector<1x256xf32>
    %c2_i32 = arith.constant 2 : i32
    %212 = tpu.dynamic_rotate %32 by %c2_i32 dim 1 : vector<1x256xf32>, i32 -> vector<1x256xf32>
    %c2_i32_116 = arith.constant 2 : i32
    %213 = tpu.dynamic_rotate %34 by %c2_i32_116 dim 1 : vector<1x256xf32>, i32 -> vector<1x256xf32>
    %c22 = arith.constant 22 : index
    %c0_117 = arith.constant 0 : index
    %214 = vector.load %arg4[%c22, %c0_117] : memref<49x256xf32, #tpu.memory_space<vmem>>, vector<1x256xf32>
    %215 = arith.mulf %212, %214 : vector<1x256xf32>
    %216 = arith.addf %211, %215 : vector<1x256xf32>
    %c22_118 = arith.constant 22 : index
    %c0_119 = arith.constant 0 : index
    %217 = vector.load %arg5[%c22_118, %c0_119] : memref<49x256xf32, #tpu.memory_space<vmem>>, vector<1x256xf32>
    %218 = arith.mulf %213, %217 : vector<1x256xf32>
    %219 = arith.addf %216, %218 : vector<1x256xf32>
    %c1_i32 = arith.constant 1 : i32
    %220 = tpu.dynamic_rotate %32 by %c1_i32 dim 1 : vector<1x256xf32>, i32 -> vector<1x256xf32>
    %c1_i32_120 = arith.constant 1 : i32
    %221 = tpu.dynamic_rotate %34 by %c1_i32_120 dim 1 : vector<1x256xf32>, i32 -> vector<1x256xf32>
    %c23 = arith.constant 23 : index
    %c0_121 = arith.constant 0 : index
    %222 = vector.load %arg4[%c23, %c0_121] : memref<49x256xf32, #tpu.memory_space<vmem>>, vector<1x256xf32>
    %223 = arith.mulf %220, %222 : vector<1x256xf32>
    %224 = arith.addf %219, %223 : vector<1x256xf32>
    %c23_122 = arith.constant 23 : index
    %c0_123 = arith.constant 0 : index
    %225 = vector.load %arg5[%c23_122, %c0_123] : memref<49x256xf32, #tpu.memory_space<vmem>>, vector<1x256xf32>
    %226 = arith.mulf %221, %225 : vector<1x256xf32>
    %227 = arith.addf %224, %226 : vector<1x256xf32>
    %c24 = arith.constant 24 : index
    %c0_124 = arith.constant 0 : index
    %228 = vector.load %arg4[%c24, %c0_124] : memref<49x256xf32, #tpu.memory_space<vmem>>, vector<1x256xf32>
    %229 = arith.mulf %32, %228 : vector<1x256xf32>
    %230 = arith.addf %227, %229 : vector<1x256xf32>
    %c24_125 = arith.constant 24 : index
    %c0_126 = arith.constant 0 : index
    %231 = vector.load %arg5[%c24_125, %c0_126] : memref<49x256xf32, #tpu.memory_space<vmem>>, vector<1x256xf32>
    %232 = arith.mulf %34, %231 : vector<1x256xf32>
    %233 = arith.addf %230, %232 : vector<1x256xf32>
    %c255_i32 = arith.constant 255 : i32
    %234 = tpu.dynamic_rotate %32 by %c255_i32 dim 1 : vector<1x256xf32>, i32 -> vector<1x256xf32>
    %c255_i32_127 = arith.constant 255 : i32
    %235 = tpu.dynamic_rotate %34 by %c255_i32_127 dim 1 : vector<1x256xf32>, i32 -> vector<1x256xf32>
    %c25 = arith.constant 25 : index
    %c0_128 = arith.constant 0 : index
    %236 = vector.load %arg4[%c25, %c0_128] : memref<49x256xf32, #tpu.memory_space<vmem>>, vector<1x256xf32>
    %237 = arith.mulf %234, %236 : vector<1x256xf32>
    %238 = arith.addf %233, %237 : vector<1x256xf32>
    %c25_129 = arith.constant 25 : index
    %c0_130 = arith.constant 0 : index
    %239 = vector.load %arg5[%c25_129, %c0_130] : memref<49x256xf32, #tpu.memory_space<vmem>>, vector<1x256xf32>
    %240 = arith.mulf %235, %239 : vector<1x256xf32>
    %241 = arith.addf %238, %240 : vector<1x256xf32>
    %c254_i32 = arith.constant 254 : i32
    %242 = tpu.dynamic_rotate %32 by %c254_i32 dim 1 : vector<1x256xf32>, i32 -> vector<1x256xf32>
    %c254_i32_131 = arith.constant 254 : i32
    %243 = tpu.dynamic_rotate %34 by %c254_i32_131 dim 1 : vector<1x256xf32>, i32 -> vector<1x256xf32>
    %c26 = arith.constant 26 : index
    %c0_132 = arith.constant 0 : index
    %244 = vector.load %arg4[%c26, %c0_132] : memref<49x256xf32, #tpu.memory_space<vmem>>, vector<1x256xf32>
    %245 = arith.mulf %242, %244 : vector<1x256xf32>
    %246 = arith.addf %241, %245 : vector<1x256xf32>
    %c26_133 = arith.constant 26 : index
    %c0_134 = arith.constant 0 : index
    %247 = vector.load %arg5[%c26_133, %c0_134] : memref<49x256xf32, #tpu.memory_space<vmem>>, vector<1x256xf32>
    %248 = arith.mulf %243, %247 : vector<1x256xf32>
    %249 = arith.addf %246, %248 : vector<1x256xf32>
    %c253_i32 = arith.constant 253 : i32
    %250 = tpu.dynamic_rotate %32 by %c253_i32 dim 1 : vector<1x256xf32>, i32 -> vector<1x256xf32>
    %c253_i32_135 = arith.constant 253 : i32
    %251 = tpu.dynamic_rotate %34 by %c253_i32_135 dim 1 : vector<1x256xf32>, i32 -> vector<1x256xf32>
    %c27 = arith.constant 27 : index
    %c0_136 = arith.constant 0 : index
    %252 = vector.load %arg4[%c27, %c0_136] : memref<49x256xf32, #tpu.memory_space<vmem>>, vector<1x256xf32>
    %253 = arith.mulf %250, %252 : vector<1x256xf32>
    %254 = arith.addf %249, %253 : vector<1x256xf32>
    %c27_137 = arith.constant 27 : index
    %c0_138 = arith.constant 0 : index
    %255 = vector.load %arg5[%c27_137, %c0_138] : memref<49x256xf32, #tpu.memory_space<vmem>>, vector<1x256xf32>
    %256 = arith.mulf %251, %255 : vector<1x256xf32>
    %257 = arith.addf %254, %256 : vector<1x256xf32>
    %c243_i32 = arith.constant 243 : i32
    %258 = tpu.dynamic_rotate %32 by %c243_i32 dim 1 : vector<1x256xf32>, i32 -> vector<1x256xf32>
    %c243_i32_139 = arith.constant 243 : i32
    %259 = tpu.dynamic_rotate %34 by %c243_i32_139 dim 1 : vector<1x256xf32>, i32 -> vector<1x256xf32>
    %c28 = arith.constant 28 : index
    %c0_140 = arith.constant 0 : index
    %260 = vector.load %arg4[%c28, %c0_140] : memref<49x256xf32, #tpu.memory_space<vmem>>, vector<1x256xf32>
    %261 = arith.mulf %258, %260 : vector<1x256xf32>
    %262 = arith.addf %257, %261 : vector<1x256xf32>
    %c28_141 = arith.constant 28 : index
    %c0_142 = arith.constant 0 : index
    %263 = vector.load %arg5[%c28_141, %c0_142] : memref<49x256xf32, #tpu.memory_space<vmem>>, vector<1x256xf32>
    %264 = arith.mulf %259, %263 : vector<1x256xf32>
    %265 = arith.addf %262, %264 : vector<1x256xf32>
    %c242_i32 = arith.constant 242 : i32
    %266 = tpu.dynamic_rotate %32 by %c242_i32 dim 1 : vector<1x256xf32>, i32 -> vector<1x256xf32>
    %c242_i32_143 = arith.constant 242 : i32
    %267 = tpu.dynamic_rotate %34 by %c242_i32_143 dim 1 : vector<1x256xf32>, i32 -> vector<1x256xf32>
    %c29 = arith.constant 29 : index
    %c0_144 = arith.constant 0 : index
    %268 = vector.load %arg4[%c29, %c0_144] : memref<49x256xf32, #tpu.memory_space<vmem>>, vector<1x256xf32>
    %269 = arith.mulf %266, %268 : vector<1x256xf32>
    %270 = arith.addf %265, %269 : vector<1x256xf32>
    %c29_145 = arith.constant 29 : index
    %c0_146 = arith.constant 0 : index
    %271 = vector.load %arg5[%c29_145, %c0_146] : memref<49x256xf32, #tpu.memory_space<vmem>>, vector<1x256xf32>
    %272 = arith.mulf %267, %271 : vector<1x256xf32>
    %273 = arith.addf %270, %272 : vector<1x256xf32>
    %c241_i32 = arith.constant 241 : i32
    %274 = tpu.dynamic_rotate %32 by %c241_i32 dim 1 : vector<1x256xf32>, i32 -> vector<1x256xf32>
    %c241_i32_147 = arith.constant 241 : i32
    %275 = tpu.dynamic_rotate %34 by %c241_i32_147 dim 1 : vector<1x256xf32>, i32 -> vector<1x256xf32>
    %c30 = arith.constant 30 : index
    %c0_148 = arith.constant 0 : index
    %276 = vector.load %arg4[%c30, %c0_148] : memref<49x256xf32, #tpu.memory_space<vmem>>, vector<1x256xf32>
    %277 = arith.mulf %274, %276 : vector<1x256xf32>
    %278 = arith.addf %273, %277 : vector<1x256xf32>
    %c30_149 = arith.constant 30 : index
    %c0_150 = arith.constant 0 : index
    %279 = vector.load %arg5[%c30_149, %c0_150] : memref<49x256xf32, #tpu.memory_space<vmem>>, vector<1x256xf32>
    %280 = arith.mulf %275, %279 : vector<1x256xf32>
    %281 = arith.addf %278, %280 : vector<1x256xf32>
    %c240_i32 = arith.constant 240 : i32
    %282 = tpu.dynamic_rotate %32 by %c240_i32 dim 1 : vector<1x256xf32>, i32 -> vector<1x256xf32>
    %c240_i32_151 = arith.constant 240 : i32
    %283 = tpu.dynamic_rotate %34 by %c240_i32_151 dim 1 : vector<1x256xf32>, i32 -> vector<1x256xf32>
    %c31 = arith.constant 31 : index
    %c0_152 = arith.constant 0 : index
    %284 = vector.load %arg4[%c31, %c0_152] : memref<49x256xf32, #tpu.memory_space<vmem>>, vector<1x256xf32>
    %285 = arith.mulf %282, %284 : vector<1x256xf32>
    %286 = arith.addf %281, %285 : vector<1x256xf32>
    %c31_153 = arith.constant 31 : index
    %c0_154 = arith.constant 0 : index
    %287 = vector.load %arg5[%c31_153, %c0_154] : memref<49x256xf32, #tpu.memory_space<vmem>>, vector<1x256xf32>
    %288 = arith.mulf %283, %287 : vector<1x256xf32>
    %289 = arith.addf %286, %288 : vector<1x256xf32>
    %c239_i32 = arith.constant 239 : i32
    %290 = tpu.dynamic_rotate %32 by %c239_i32 dim 1 : vector<1x256xf32>, i32 -> vector<1x256xf32>
    %c239_i32_155 = arith.constant 239 : i32
    %291 = tpu.dynamic_rotate %34 by %c239_i32_155 dim 1 : vector<1x256xf32>, i32 -> vector<1x256xf32>
    %c32 = arith.constant 32 : index
    %c0_156 = arith.constant 0 : index
    %292 = vector.load %arg4[%c32, %c0_156] : memref<49x256xf32, #tpu.memory_space<vmem>>, vector<1x256xf32>
    %293 = arith.mulf %290, %292 : vector<1x256xf32>
    %294 = arith.addf %289, %293 : vector<1x256xf32>
    %c32_157 = arith.constant 32 : index
    %c0_158 = arith.constant 0 : index
    %295 = vector.load %arg5[%c32_157, %c0_158] : memref<49x256xf32, #tpu.memory_space<vmem>>, vector<1x256xf32>
    %296 = arith.mulf %291, %295 : vector<1x256xf32>
    %297 = arith.addf %294, %296 : vector<1x256xf32>
    %c238_i32 = arith.constant 238 : i32
    %298 = tpu.dynamic_rotate %32 by %c238_i32 dim 1 : vector<1x256xf32>, i32 -> vector<1x256xf32>
    %c238_i32_159 = arith.constant 238 : i32
    %299 = tpu.dynamic_rotate %34 by %c238_i32_159 dim 1 : vector<1x256xf32>, i32 -> vector<1x256xf32>
    %c33 = arith.constant 33 : index
    %c0_160 = arith.constant 0 : index
    %300 = vector.load %arg4[%c33, %c0_160] : memref<49x256xf32, #tpu.memory_space<vmem>>, vector<1x256xf32>
    %301 = arith.mulf %298, %300 : vector<1x256xf32>
    %302 = arith.addf %297, %301 : vector<1x256xf32>
    %c33_161 = arith.constant 33 : index
    %c0_162 = arith.constant 0 : index
    %303 = vector.load %arg5[%c33_161, %c0_162] : memref<49x256xf32, #tpu.memory_space<vmem>>, vector<1x256xf32>
    %304 = arith.mulf %299, %303 : vector<1x256xf32>
    %305 = arith.addf %302, %304 : vector<1x256xf32>
    %c237_i32 = arith.constant 237 : i32
    %306 = tpu.dynamic_rotate %32 by %c237_i32 dim 1 : vector<1x256xf32>, i32 -> vector<1x256xf32>
    %c237_i32_163 = arith.constant 237 : i32
    %307 = tpu.dynamic_rotate %34 by %c237_i32_163 dim 1 : vector<1x256xf32>, i32 -> vector<1x256xf32>
    %c34 = arith.constant 34 : index
    %c0_164 = arith.constant 0 : index
    %308 = vector.load %arg4[%c34, %c0_164] : memref<49x256xf32, #tpu.memory_space<vmem>>, vector<1x256xf32>
    %309 = arith.mulf %306, %308 : vector<1x256xf32>
    %310 = arith.addf %305, %309 : vector<1x256xf32>
    %c34_165 = arith.constant 34 : index
    %c0_166 = arith.constant 0 : index
    %311 = vector.load %arg5[%c34_165, %c0_166] : memref<49x256xf32, #tpu.memory_space<vmem>>, vector<1x256xf32>
    %312 = arith.mulf %307, %311 : vector<1x256xf32>
    %313 = arith.addf %310, %312 : vector<1x256xf32>
    %c227_i32 = arith.constant 227 : i32
    %314 = tpu.dynamic_rotate %32 by %c227_i32 dim 1 : vector<1x256xf32>, i32 -> vector<1x256xf32>
    %c227_i32_167 = arith.constant 227 : i32
    %315 = tpu.dynamic_rotate %34 by %c227_i32_167 dim 1 : vector<1x256xf32>, i32 -> vector<1x256xf32>
    %c35 = arith.constant 35 : index
    %c0_168 = arith.constant 0 : index
    %316 = vector.load %arg4[%c35, %c0_168] : memref<49x256xf32, #tpu.memory_space<vmem>>, vector<1x256xf32>
    %317 = arith.mulf %314, %316 : vector<1x256xf32>
    %318 = arith.addf %313, %317 : vector<1x256xf32>
    %c35_169 = arith.constant 35 : index
    %c0_170 = arith.constant 0 : index
    %319 = vector.load %arg5[%c35_169, %c0_170] : memref<49x256xf32, #tpu.memory_space<vmem>>, vector<1x256xf32>
    %320 = arith.mulf %315, %319 : vector<1x256xf32>
    %321 = arith.addf %318, %320 : vector<1x256xf32>
    %c226_i32 = arith.constant 226 : i32
    %322 = tpu.dynamic_rotate %32 by %c226_i32 dim 1 : vector<1x256xf32>, i32 -> vector<1x256xf32>
    %c226_i32_171 = arith.constant 226 : i32
    %323 = tpu.dynamic_rotate %34 by %c226_i32_171 dim 1 : vector<1x256xf32>, i32 -> vector<1x256xf32>
    %c36 = arith.constant 36 : index
    %c0_172 = arith.constant 0 : index
    %324 = vector.load %arg4[%c36, %c0_172] : memref<49x256xf32, #tpu.memory_space<vmem>>, vector<1x256xf32>
    %325 = arith.mulf %322, %324 : vector<1x256xf32>
    %326 = arith.addf %321, %325 : vector<1x256xf32>
    %c36_173 = arith.constant 36 : index
    %c0_174 = arith.constant 0 : index
    %327 = vector.load %arg5[%c36_173, %c0_174] : memref<49x256xf32, #tpu.memory_space<vmem>>, vector<1x256xf32>
    %328 = arith.mulf %323, %327 : vector<1x256xf32>
    %329 = arith.addf %326, %328 : vector<1x256xf32>
    %c225_i32 = arith.constant 225 : i32
    %330 = tpu.dynamic_rotate %32 by %c225_i32 dim 1 : vector<1x256xf32>, i32 -> vector<1x256xf32>
    %c225_i32_175 = arith.constant 225 : i32
    %331 = tpu.dynamic_rotate %34 by %c225_i32_175 dim 1 : vector<1x256xf32>, i32 -> vector<1x256xf32>
    %c37 = arith.constant 37 : index
    %c0_176 = arith.constant 0 : index
    %332 = vector.load %arg4[%c37, %c0_176] : memref<49x256xf32, #tpu.memory_space<vmem>>, vector<1x256xf32>
    %333 = arith.mulf %330, %332 : vector<1x256xf32>
    %334 = arith.addf %329, %333 : vector<1x256xf32>
    %c37_177 = arith.constant 37 : index
    %c0_178 = arith.constant 0 : index
    %335 = vector.load %arg5[%c37_177, %c0_178] : memref<49x256xf32, #tpu.memory_space<vmem>>, vector<1x256xf32>
    %336 = arith.mulf %331, %335 : vector<1x256xf32>
    %337 = arith.addf %334, %336 : vector<1x256xf32>
    %c224_i32 = arith.constant 224 : i32
    %338 = tpu.dynamic_rotate %32 by %c224_i32 dim 1 : vector<1x256xf32>, i32 -> vector<1x256xf32>
    %c224_i32_179 = arith.constant 224 : i32
    %339 = tpu.dynamic_rotate %34 by %c224_i32_179 dim 1 : vector<1x256xf32>, i32 -> vector<1x256xf32>
    %c38 = arith.constant 38 : index
    %c0_180 = arith.constant 0 : index
    %340 = vector.load %arg4[%c38, %c0_180] : memref<49x256xf32, #tpu.memory_space<vmem>>, vector<1x256xf32>
    %341 = arith.mulf %338, %340 : vector<1x256xf32>
    %342 = arith.addf %337, %341 : vector<1x256xf32>
    %c38_181 = arith.constant 38 : index
    %c0_182 = arith.constant 0 : index
    %343 = vector.load %arg5[%c38_181, %c0_182] : memref<49x256xf32, #tpu.memory_space<vmem>>, vector<1x256xf32>
    %344 = arith.mulf %339, %343 : vector<1x256xf32>
    %345 = arith.addf %342, %344 : vector<1x256xf32>
    %c223_i32 = arith.constant 223 : i32
    %346 = tpu.dynamic_rotate %32 by %c223_i32 dim 1 : vector<1x256xf32>, i32 -> vector<1x256xf32>
    %c223_i32_183 = arith.constant 223 : i32
    %347 = tpu.dynamic_rotate %34 by %c223_i32_183 dim 1 : vector<1x256xf32>, i32 -> vector<1x256xf32>
    %c39 = arith.constant 39 : index
    %c0_184 = arith.constant 0 : index
    %348 = vector.load %arg4[%c39, %c0_184] : memref<49x256xf32, #tpu.memory_space<vmem>>, vector<1x256xf32>
    %349 = arith.mulf %346, %348 : vector<1x256xf32>
    %350 = arith.addf %345, %349 : vector<1x256xf32>
    %c39_185 = arith.constant 39 : index
    %c0_186 = arith.constant 0 : index
    %351 = vector.load %arg5[%c39_185, %c0_186] : memref<49x256xf32, #tpu.memory_space<vmem>>, vector<1x256xf32>
    %352 = arith.mulf %347, %351 : vector<1x256xf32>
    %353 = arith.addf %350, %352 : vector<1x256xf32>
    %c222_i32 = arith.constant 222 : i32
    %354 = tpu.dynamic_rotate %32 by %c222_i32 dim 1 : vector<1x256xf32>, i32 -> vector<1x256xf32>
    %c222_i32_187 = arith.constant 222 : i32
    %355 = tpu.dynamic_rotate %34 by %c222_i32_187 dim 1 : vector<1x256xf32>, i32 -> vector<1x256xf32>
    %c40 = arith.constant 40 : index
    %c0_188 = arith.constant 0 : index
    %356 = vector.load %arg4[%c40, %c0_188] : memref<49x256xf32, #tpu.memory_space<vmem>>, vector<1x256xf32>
    %357 = arith.mulf %354, %356 : vector<1x256xf32>
    %358 = arith.addf %353, %357 : vector<1x256xf32>
    %c40_189 = arith.constant 40 : index
    %c0_190 = arith.constant 0 : index
    %359 = vector.load %arg5[%c40_189, %c0_190] : memref<49x256xf32, #tpu.memory_space<vmem>>, vector<1x256xf32>
    %360 = arith.mulf %355, %359 : vector<1x256xf32>
    %361 = arith.addf %358, %360 : vector<1x256xf32>
    %c221_i32 = arith.constant 221 : i32
    %362 = tpu.dynamic_rotate %32 by %c221_i32 dim 1 : vector<1x256xf32>, i32 -> vector<1x256xf32>
    %c221_i32_191 = arith.constant 221 : i32
    %363 = tpu.dynamic_rotate %34 by %c221_i32_191 dim 1 : vector<1x256xf32>, i32 -> vector<1x256xf32>
    %c41 = arith.constant 41 : index
    %c0_192 = arith.constant 0 : index
    %364 = vector.load %arg4[%c41, %c0_192] : memref<49x256xf32, #tpu.memory_space<vmem>>, vector<1x256xf32>
    %365 = arith.mulf %362, %364 : vector<1x256xf32>
    %366 = arith.addf %361, %365 : vector<1x256xf32>
    %c41_193 = arith.constant 41 : index
    %c0_194 = arith.constant 0 : index
    %367 = vector.load %arg5[%c41_193, %c0_194] : memref<49x256xf32, #tpu.memory_space<vmem>>, vector<1x256xf32>
    %368 = arith.mulf %363, %367 : vector<1x256xf32>
    %369 = arith.addf %366, %368 : vector<1x256xf32>
    %c211_i32 = arith.constant 211 : i32
    %370 = tpu.dynamic_rotate %32 by %c211_i32 dim 1 : vector<1x256xf32>, i32 -> vector<1x256xf32>
    %c211_i32_195 = arith.constant 211 : i32
    %371 = tpu.dynamic_rotate %34 by %c211_i32_195 dim 1 : vector<1x256xf32>, i32 -> vector<1x256xf32>
    %c42 = arith.constant 42 : index
    %c0_196 = arith.constant 0 : index
    %372 = vector.load %arg4[%c42, %c0_196] : memref<49x256xf32, #tpu.memory_space<vmem>>, vector<1x256xf32>
    %373 = arith.mulf %370, %372 : vector<1x256xf32>
    %374 = arith.addf %369, %373 : vector<1x256xf32>
    %c42_197 = arith.constant 42 : index
    %c0_198 = arith.constant 0 : index
    %375 = vector.load %arg5[%c42_197, %c0_198] : memref<49x256xf32, #tpu.memory_space<vmem>>, vector<1x256xf32>
    %376 = arith.mulf %371, %375 : vector<1x256xf32>
    %377 = arith.addf %374, %376 : vector<1x256xf32>
    %c210_i32 = arith.constant 210 : i32
    %378 = tpu.dynamic_rotate %32 by %c210_i32 dim 1 : vector<1x256xf32>, i32 -> vector<1x256xf32>
    %c210_i32_199 = arith.constant 210 : i32
    %379 = tpu.dynamic_rotate %34 by %c210_i32_199 dim 1 : vector<1x256xf32>, i32 -> vector<1x256xf32>
    %c43 = arith.constant 43 : index
    %c0_200 = arith.constant 0 : index
    %380 = vector.load %arg4[%c43, %c0_200] : memref<49x256xf32, #tpu.memory_space<vmem>>, vector<1x256xf32>
    %381 = arith.mulf %378, %380 : vector<1x256xf32>
    %382 = arith.addf %377, %381 : vector<1x256xf32>
    %c43_201 = arith.constant 43 : index
    %c0_202 = arith.constant 0 : index
    %383 = vector.load %arg5[%c43_201, %c0_202] : memref<49x256xf32, #tpu.memory_space<vmem>>, vector<1x256xf32>
    %384 = arith.mulf %379, %383 : vector<1x256xf32>
    %385 = arith.addf %382, %384 : vector<1x256xf32>
    %c209_i32 = arith.constant 209 : i32
    %386 = tpu.dynamic_rotate %32 by %c209_i32 dim 1 : vector<1x256xf32>, i32 -> vector<1x256xf32>
    %c209_i32_203 = arith.constant 209 : i32
    %387 = tpu.dynamic_rotate %34 by %c209_i32_203 dim 1 : vector<1x256xf32>, i32 -> vector<1x256xf32>
    %c44 = arith.constant 44 : index
    %c0_204 = arith.constant 0 : index
    %388 = vector.load %arg4[%c44, %c0_204] : memref<49x256xf32, #tpu.memory_space<vmem>>, vector<1x256xf32>
    %389 = arith.mulf %386, %388 : vector<1x256xf32>
    %390 = arith.addf %385, %389 : vector<1x256xf32>
    %c44_205 = arith.constant 44 : index
    %c0_206 = arith.constant 0 : index
    %391 = vector.load %arg5[%c44_205, %c0_206] : memref<49x256xf32, #tpu.memory_space<vmem>>, vector<1x256xf32>
    %392 = arith.mulf %387, %391 : vector<1x256xf32>
    %393 = arith.addf %390, %392 : vector<1x256xf32>
    %c208_i32 = arith.constant 208 : i32
    %394 = tpu.dynamic_rotate %32 by %c208_i32 dim 1 : vector<1x256xf32>, i32 -> vector<1x256xf32>
    %c208_i32_207 = arith.constant 208 : i32
    %395 = tpu.dynamic_rotate %34 by %c208_i32_207 dim 1 : vector<1x256xf32>, i32 -> vector<1x256xf32>
    %c45 = arith.constant 45 : index
    %c0_208 = arith.constant 0 : index
    %396 = vector.load %arg4[%c45, %c0_208] : memref<49x256xf32, #tpu.memory_space<vmem>>, vector<1x256xf32>
    %397 = arith.mulf %394, %396 : vector<1x256xf32>
    %398 = arith.addf %393, %397 : vector<1x256xf32>
    %c45_209 = arith.constant 45 : index
    %c0_210 = arith.constant 0 : index
    %399 = vector.load %arg5[%c45_209, %c0_210] : memref<49x256xf32, #tpu.memory_space<vmem>>, vector<1x256xf32>
    %400 = arith.mulf %395, %399 : vector<1x256xf32>
    %401 = arith.addf %398, %400 : vector<1x256xf32>
    %c207_i32 = arith.constant 207 : i32
    %402 = tpu.dynamic_rotate %32 by %c207_i32 dim 1 : vector<1x256xf32>, i32 -> vector<1x256xf32>
    %c207_i32_211 = arith.constant 207 : i32
    %403 = tpu.dynamic_rotate %34 by %c207_i32_211 dim 1 : vector<1x256xf32>, i32 -> vector<1x256xf32>
    %c46 = arith.constant 46 : index
    %c0_212 = arith.constant 0 : index
    %404 = vector.load %arg4[%c46, %c0_212] : memref<49x256xf32, #tpu.memory_space<vmem>>, vector<1x256xf32>
    %405 = arith.mulf %402, %404 : vector<1x256xf32>
    %406 = arith.addf %401, %405 : vector<1x256xf32>
    %c46_213 = arith.constant 46 : index
    %c0_214 = arith.constant 0 : index
    %407 = vector.load %arg5[%c46_213, %c0_214] : memref<49x256xf32, #tpu.memory_space<vmem>>, vector<1x256xf32>
    %408 = arith.mulf %403, %407 : vector<1x256xf32>
    %409 = arith.addf %406, %408 : vector<1x256xf32>
    %c206_i32 = arith.constant 206 : i32
    %410 = tpu.dynamic_rotate %32 by %c206_i32 dim 1 : vector<1x256xf32>, i32 -> vector<1x256xf32>
    %c206_i32_215 = arith.constant 206 : i32
    %411 = tpu.dynamic_rotate %34 by %c206_i32_215 dim 1 : vector<1x256xf32>, i32 -> vector<1x256xf32>
    %c47 = arith.constant 47 : index
    %c0_216 = arith.constant 0 : index
    %412 = vector.load %arg4[%c47, %c0_216] : memref<49x256xf32, #tpu.memory_space<vmem>>, vector<1x256xf32>
    %413 = arith.mulf %410, %412 : vector<1x256xf32>
    %414 = arith.addf %409, %413 : vector<1x256xf32>
    %c47_217 = arith.constant 47 : index
    %c0_218 = arith.constant 0 : index
    %415 = vector.load %arg5[%c47_217, %c0_218] : memref<49x256xf32, #tpu.memory_space<vmem>>, vector<1x256xf32>
    %416 = arith.mulf %411, %415 : vector<1x256xf32>
    %417 = arith.addf %414, %416 : vector<1x256xf32>
    %c205_i32 = arith.constant 205 : i32
    %418 = tpu.dynamic_rotate %32 by %c205_i32 dim 1 : vector<1x256xf32>, i32 -> vector<1x256xf32>
    %c205_i32_219 = arith.constant 205 : i32
    %419 = tpu.dynamic_rotate %34 by %c205_i32_219 dim 1 : vector<1x256xf32>, i32 -> vector<1x256xf32>
    %c48 = arith.constant 48 : index
    %c0_220 = arith.constant 0 : index
    %420 = vector.load %arg4[%c48, %c0_220] : memref<49x256xf32, #tpu.memory_space<vmem>>, vector<1x256xf32>
    %421 = arith.mulf %418, %420 : vector<1x256xf32>
    %422 = arith.addf %417, %421 : vector<1x256xf32>
    %c48_221 = arith.constant 48 : index
    %c0_222 = arith.constant 0 : index
    %423 = vector.load %arg5[%c48_221, %c0_222] : memref<49x256xf32, #tpu.memory_space<vmem>>, vector<1x256xf32>
    %424 = arith.mulf %419, %423 : vector<1x256xf32>
    %425 = arith.addf %422, %424 : vector<1x256xf32>
    %426 = arith.negf %425 : vector<1x256xf32>
    %427 = math.exp %426 : vector<1x256xf32>
    %cst_223 = arith.constant 1.000000e+00 : f32
    %428 = vector.broadcast %cst_223 : f32 to vector<1x256xf32>
    %429 = arith.addf %428, %427 : vector<1x256xf32>
    %430 = arith.divf %428, %429 : vector<1x256xf32>
    %431 = vector.broadcast %430 : vector<1x256xf32> to vector<32x256xf32>
    %432 = arith.mulf %28, %431 : vector<32x256xf32>
    %c17_i32_224 = arith.constant 17 : i32
    %433 = tpu.dynamic_rotate %432 by %c17_i32_224 dim 1 : vector<32x256xf32>, i32 -> vector<32x256xf32>
    %c0_225 = arith.constant 0 : index
    %c0_226 = arith.constant 0 : index
    %434 = vector.load %arg6[%c0_225, %c0_226] : memref<9x256xf32, #tpu.memory_space<vmem>>, vector<1x256xf32>
    %435 = vector.broadcast %434 : vector<1x256xf32> to vector<32x256xf32>
    %436 = arith.mulf %433, %435 : vector<32x256xf32>
    %c0_227 = arith.constant 0 : index
    %c0_228 = arith.constant 0 : index
    %437 = vector.load %arg15[%c0_227, %c0_228] : memref<288x256xf32, #tpu.memory_space<vmem>>, vector<32x256xf32>
    tpu.vector_store %arg15[%c0_227, %c0_228], %436 {strides = array<i32>} : memref<288x256xf32, #tpu.memory_space<vmem>>, vector<32x256xf32>,
    %c16_i32_229 = arith.constant 16 : i32
    %438 = tpu.dynamic_rotate %432 by %c16_i32_229 dim 1 : vector<32x256xf32>, i32 -> vector<32x256xf32>
    %c1_230 = arith.constant 1 : index
    %c0_231 = arith.constant 0 : index
    %439 = vector.load %arg6[%c1_230, %c0_231] : memref<9x256xf32, #tpu.memory_space<vmem>>, vector<1x256xf32>
    %440 = vector.broadcast %439 : vector<1x256xf32> to vector<32x256xf32>
    %441 = arith.mulf %438, %440 : vector<32x256xf32>
    %c32_232 = arith.constant 32 : index
    %c0_233 = arith.constant 0 : index
    %442 = vector.load %arg15[%c32_232, %c0_233] : memref<288x256xf32, #tpu.memory_space<vmem>>, vector<32x256xf32>
    tpu.vector_store %arg15[%c32_232, %c0_233], %441 {strides = array<i32>} : memref<288x256xf32, #tpu.memory_space<vmem>>, vector<32x256xf32>,
    %c15_i32_234 = arith.constant 15 : i32
    %443 = tpu.dynamic_rotate %432 by %c15_i32_234 dim 1 : vector<32x256xf32>, i32 -> vector<32x256xf32>
    %c2_235 = arith.constant 2 : index
    %c0_236 = arith.constant 0 : index
    %444 = vector.load %arg6[%c2_235, %c0_236] : memref<9x256xf32, #tpu.memory_space<vmem>>, vector<1x256xf32>
    %445 = vector.broadcast %444 : vector<1x256xf32> to vector<32x256xf32>
    %446 = arith.mulf %443, %445 : vector<32x256xf32>
    %c64 = arith.constant 64 : index
    %c0_237 = arith.constant 0 : index
    %447 = vector.load %arg15[%c64, %c0_237] : memref<288x256xf32, #tpu.memory_space<vmem>>, vector<32x256xf32>
    tpu.vector_store %arg15[%c64, %c0_237], %446 {strides = array<i32>} : memref<288x256xf32, #tpu.memory_space<vmem>>, vector<32x256xf32>,
    %c1_i32_238 = arith.constant 1 : i32
    %448 = tpu.dynamic_rotate %432 by %c1_i32_238 dim 1 : vector<32x256xf32>, i32 -> vector<32x256xf32>
    %c3_239 = arith.constant 3 : index
    %c0_240 = arith.constant 0 : index
    %449 = vector.load %arg6[%c3_239, %c0_240] : memref<9x256xf32, #tpu.memory_space<vmem>>, vector<1x256xf32>
    %450 = vector.broadcast %449 : vector<1x256xf32> to vector<32x256xf32>
    %451 = arith.mulf %448, %450 : vector<32x256xf32>
    %c96 = arith.constant 96 : index
    %c0_241 = arith.constant 0 : index
    %452 = vector.load %arg15[%c96, %c0_241] : memref<288x256xf32, #tpu.memory_space<vmem>>, vector<32x256xf32>
    tpu.vector_store %arg15[%c96, %c0_241], %451 {strides = array<i32>} : memref<288x256xf32, #tpu.memory_space<vmem>>, vector<32x256xf32>,
    %c4_242 = arith.constant 4 : index
    %c0_243 = arith.constant 0 : index
    %453 = vector.load %arg6[%c4_242, %c0_243] : memref<9x256xf32, #tpu.memory_space<vmem>>, vector<1x256xf32>
    %454 = vector.broadcast %453 : vector<1x256xf32> to vector<32x256xf32>
    %455 = arith.mulf %432, %454 : vector<32x256xf32>
    %c128 = arith.constant 128 : index
    %c0_244 = arith.constant 0 : index
    %456 = vector.load %arg15[%c128, %c0_244] : memref<288x256xf32, #tpu.memory_space<vmem>>, vector<32x256xf32>
    tpu.vector_store %arg15[%c128, %c0_244], %455 {strides = array<i32>} : memref<288x256xf32, #tpu.memory_space<vmem>>, vector<32x256xf32>,
    %c255_i32_245 = arith.constant 255 : i32
    %457 = tpu.dynamic_rotate %432 by %c255_i32_245 dim 1 : vector<32x256xf32>, i32 -> vector<32x256xf32>
    %c5_246 = arith.constant 5 : index
    %c0_247 = arith.constant 0 : index
    %458 = vector.load %arg6[%c5_246, %c0_247] : memref<9x256xf32, #tpu.memory_space<vmem>>, vector<1x256xf32>
    %459 = vector.broadcast %458 : vector<1x256xf32> to vector<32x256xf32>
    %460 = arith.mulf %457, %459 : vector<32x256xf32>
    %c160 = arith.constant 160 : index
    %c0_248 = arith.constant 0 : index
    %461 = vector.load %arg15[%c160, %c0_248] : memref<288x256xf32, #tpu.memory_space<vmem>>, vector<32x256xf32>
    tpu.vector_store %arg15[%c160, %c0_248], %460 {strides = array<i32>} : memref<288x256xf32, #tpu.memory_space<vmem>>, vector<32x256xf32>,
    %c241_i32_249 = arith.constant 241 : i32
    %462 = tpu.dynamic_rotate %432 by %c241_i32_249 dim 1 : vector<32x256xf32>, i32 -> vector<32x256xf32>
    %c6_250 = arith.constant 6 : index
    %c0_251 = arith.constant 0 : index
    %463 = vector.load %arg6[%c6_250, %c0_251] : memref<9x256xf32, #tpu.memory_space<vmem>>, vector<1x256xf32>
    %464 = vector.broadcast %463 : vector<1x256xf32> to vector<32x256xf32>
    %465 = arith.mulf %462, %464 : vector<32x256xf32>
    %c192 = arith.constant 192 : index
    %c0_252 = arith.constant 0 : index
    %466 = vector.load %arg15[%c192, %c0_252] : memref<288x256xf32, #tpu.memory_space<vmem>>, vector<32x256xf32>
    tpu.vector_store %arg15[%c192, %c0_252], %465 {strides = array<i32>} : memref<288x256xf32, #tpu.memory_space<vmem>>, vector<32x256xf32>,
    %c240_i32_253 = arith.constant 240 : i32
    %467 = tpu.dynamic_rotate %432 by %c240_i32_253 dim 1 : vector<32x256xf32>, i32 -> vector<32x256xf32>
    %c7_254 = arith.constant 7 : index
    %c0_255 = arith.constant 0 : index
    %468 = vector.load %arg6[%c7_254, %c0_255] : memref<9x256xf32, #tpu.memory_space<vmem>>, vector<1x256xf32>
    %469 = vector.broadcast %468 : vector<1x256xf32> to vector<32x256xf32>
    %470 = arith.mulf %467, %469 : vector<32x256xf32>
    %c224 = arith.constant 224 : index
    %c0_256 = arith.constant 0 : index
    %471 = vector.load %arg15[%c224, %c0_256] : memref<288x256xf32, #tpu.memory_space<vmem>>, vector<32x256xf32>
    tpu.vector_store %arg15[%c224, %c0_256], %470 {strides = array<i32>} : memref<288x256xf32, #tpu.memory_space<vmem>>, vector<32x256xf32>,
    %c239_i32_257 = arith.constant 239 : i32
    %472 = tpu.dynamic_rotate %432 by %c239_i32_257 dim 1 : vector<32x256xf32>, i32 -> vector<32x256xf32>
    %c8_258 = arith.constant 8 : index
    %c0_259 = arith.constant 0 : index
    %473 = vector.load %arg6[%c8_258, %c0_259] : memref<9x256xf32, #tpu.memory_space<vmem>>, vector<1x256xf32>
    %474 = vector.broadcast %473 : vector<1x256xf32> to vector<32x256xf32>
    %475 = arith.mulf %472, %474 : vector<32x256xf32>
    %c256 = arith.constant 256 : index
    %c0_260 = arith.constant 0 : index
    %476 = vector.load %arg15[%c256, %c0_260] : memref<288x256xf32, #tpu.memory_space<vmem>>, vector<32x256xf32>
    tpu.vector_store %arg15[%c256, %c0_260], %475 {strides = array<i32>} : memref<288x256xf32, #tpu.memory_space<vmem>>, vector<32x256xf32>,
    %c0_261 = arith.constant 0 : index
    %c0_262 = arith.constant 0 : index
    %477 = vector.load %arg12[%c0_261, %c0_262] : memref<32x288xf32, #tpu.memory_space<vmem>>, vector<32x288xf32>
    %c0_263 = arith.constant 0 : index
    %c0_264 = arith.constant 0 : index
    %478 = vector.load %arg15[%c0_263, %c0_264] : memref<288x256xf32, #tpu.memory_space<vmem>>, vector<288x256xf32>
    %cst_265 = arith.constant dense<0.000000e+00> : vector<32x256xf32>
    %479 = tpu.matmul %477, %478, %cst_265 {dimension_numbers = #tpu.dot_dimension_numbers<[1], [0], [0], [1], [0, 0, 1, 1], [], []>} : vector<32x288xf32>, vector<288x256xf32>, vector<32x256xf32> -> vector<32x256xf32>
    %c0_266 = arith.constant 0 : index
    %c0_267 = arith.constant 0 : index
    %480 = vector.load %arg13[%c0_266, %c0_267] : memref<32x1xf32, #tpu.memory_space<vmem>>, vector<32x1xf32>
    %481 = vector.broadcast %480 : vector<32x1xf32> to vector<32x256xf32>
    %482 = arith.addf %479, %481 : vector<32x256xf32>
    %c0_268 = arith.constant 0 : index
    %c0_269 = arith.constant 0 : index
    %483 = vector.load %arg14[%c0_268, %c0_269] : memref<32x256xf32, #tpu.memory_space<vmem>>, vector<32x256xf32>
    tpu.vector_store %arg14[%c0_268, %c0_269], %482 {strides = array<i32>} : memref<32x256xf32, #tpu.memory_space<vmem>>, vector<32x256xf32>,
    return
  }
  func.func @transform_0(%arg0: i32) -> (i32, i32) {
    %c0_i32 = arith.constant 0 : i32
    %c0_i32_0 = arith.constant 0 : i32
    return %c0_i32, %arg0 : i32, i32
  }
  func.func @transform_1(%arg0: i32) -> (i32, i32) {
    %c0_i32 = arith.constant 0 : i32
    %c0_i32_0 = arith.constant 0 : i32
    return %c0_i32, %arg0 : i32, i32
  }
  func.func @transform_2(%arg0: i32) -> (i32, i32) {
    %c0_i32 = arith.constant 0 : i32
    %c0_i32_0 = arith.constant 0 : i32
    %c0_i32_1 = arith.constant 0 : i32
    return %c0_i32, %c0_i32_0 : i32, i32
  }
  func.func @transform_3(%arg0: i32) -> (i32, i32) {
    %c0_i32 = arith.constant 0 : i32
    %c0_i32_0 = arith.constant 0 : i32
    %c0_i32_1 = arith.constant 0 : i32
    return %c0_i32, %c0_i32_0 : i32, i32
  }
  func.func @transform_4(%arg0: i32) -> (i32, i32) {
    %c0_i32 = arith.constant 0 : i32
    %c0_i32_0 = arith.constant 0 : i32
    %c0_i32_1 = arith.constant 0 : i32
    return %c0_i32, %c0_i32_0 : i32, i32
  }
  func.func @transform_5(%arg0: i32) -> (i32, i32) {
    %c0_i32 = arith.constant 0 : i32
    %c0_i32_0 = arith.constant 0 : i32
    %c0_i32_1 = arith.constant 0 : i32
    return %c0_i32, %c0_i32_0 : i32, i32
  }
  func.func @transform_6(%arg0: i32) -> (i32, i32) {
    %c0_i32 = arith.constant 0 : i32
    %c0_i32_0 = arith.constant 0 : i32
    %c0_i32_1 = arith.constant 0 : i32
    return %c0_i32, %c0_i32_0 : i32, i32
  }
  func.func @transform_7(%arg0: i32) -> (i32, i32) {
    %c0_i32 = arith.constant 0 : i32
    %c0_i32_0 = arith.constant 0 : i32
    %c0_i32_1 = arith.constant 0 : i32
    return %c0_i32, %c0_i32_0 : i32, i32
  }
  func.func @transform_8(%arg0: i32) -> (i32, i32) {
    %c0_i32 = arith.constant 0 : i32
    %c0_i32_0 = arith.constant 0 : i32
    %c0_i32_1 = arith.constant 0 : i32
    return %c0_i32, %c0_i32_0 : i32, i32
  }
  func.func @transform_9(%arg0: i32) -> (i32, i32) {
    %c0_i32 = arith.constant 0 : i32
    %c0_i32_0 = arith.constant 0 : i32
    %c0_i32_1 = arith.constant 0 : i32
    return %c0_i32, %c0_i32_0 : i32, i32
  }
  func.func @transform_10(%arg0: i32) -> (i32, i32) {
    %c0_i32 = arith.constant 0 : i32
    %c0_i32_0 = arith.constant 0 : i32
    %c0_i32_1 = arith.constant 0 : i32
    return %c0_i32, %c0_i32_0 : i32, i32
  }
  func.func @transform_11(%arg0: i32) -> (i32, i32) {
    %c0_i32 = arith.constant 0 : i32
    %c0_i32_0 = arith.constant 0 : i32
    %c0_i32_1 = arith.constant 0 : i32
    return %c0_i32, %c0_i32_0 : i32, i32
  }
  func.func @transform_12(%arg0: i32) -> (i32, i32) {
    %c0_i32 = arith.constant 0 : i32
    %c0_i32_0 = arith.constant 0 : i32
    %c0_i32_1 = arith.constant 0 : i32
    return %c0_i32, %c0_i32_0 : i32, i32
  }
  func.func @transform_13(%arg0: i32) -> (i32, i32) {
    %c0_i32 = arith.constant 0 : i32
    %c0_i32_0 = arith.constant 0 : i32
    return %c0_i32, %arg0 : i32, i32
  }
}

</mosaic_0001>

<bundles_post_ra>
// kernel: tpu_custom_call.1
= control target key start
LH: loop header
LB: loop body
LE: loop exit
PB: predicated region body
PF: predicated region fallthrough
CT: control target
= control target key end

     0   :  { %18 = vsyncpa [#allocation4], 0  ;;  %s7468_s0 = inlined_call_operand.vmem [shape: f32[8,256], index: 0, kind: input, shape index: {}]   ;;  %s7469_s1 = inlined_call_operand.vmem [shape: f32[4,512], index: 1, kind: input, shape index: {}]   ;;  %s7470_s2 = inlined_call_operand.hbm [shape: f32[128,256], index: 2, kind: input, shape index: {}]   ;;  %s7471_s3 = inlined_call_operand.vmem [shape: f32[49,256], index: 3, kind: input, shape index: {}]   ;;  %s7472_s4 = inlined_call_operand.hbm [shape: f32[49,256], index: 4, kind: input, shape index: {}]   ;;  %s7473_s5 = inlined_call_operand.vmem [shape: f32[9,256], index: 5, kind: input, shape index: {}]   ;;  %s7474_s6 = inlined_call_operand.vmem [shape: f32[32,8], index: 6, kind: input, shape index: {}]   ;;  %s7475_s7 = inlined_call_operand.vmem [shape: f32[32,4], index: 7, kind: input, shape index: {}]   ;;  %s7476_s8 = inlined_call_operand.vmem [shape: f32[32,1], index: 8, kind: input, shape index: {}]   ;;  %s7477_s9 = inlined_call_operand.hbm [shape: f32[2,32], index: 9, kind: input, shape index: {}]   ;;  %s7478_s10 = inlined_call_operand.vmem [shape: f32[32,2], index: 10, kind: input, shape index: {}]   ;;  %s7479_s11 = inlined_call_operand.hbm [shape: f32[32,288], index: 11, kind: input, shape index: {}]   ;;  %s7480_s12 = inlined_call_operand.vmem [shape: f32[32,1], index: 12, kind: input, shape index: {}]   ;;  %s7481_s13 = inlined_call_operand.hbm [shape: f32[32,512], index: 13, kind: output, shape index: {}]  }
   0x1   :  { %19 = vsyncpa [#allocation7], 0 }
   0x2   :  { %20 = vsyncpa [#allocation10], 0 }
   0x3   :  { %21 = vsyncpa [#allocation5], 0 }
   0x4   :  { %23 = vsyncpa [#allocation5 + $0x1], 0  ;;  %s4975_s25 = smov 0   ;;  %s4977_s26 = smov 0  }
   0x5   :  { %s4979_s27 = smov 0   ;;  %s4981_s28 = smov 0  }
   0x6 LB: > { %7634 = sst [smem:[#allocation16_spill]] %s4837_s27  ;;  %s4996_s29 = sadd.s32 4294967295, %s4841_s28   ;;  %s4841_s28 = sphi %s4981_s28, %s7830_s28   ;;  %s4837_s27 = sphi %s4979_s27, %s7832_s27   ;;  %s4833_s26 = sphi %s4977_s26, %s7834_s26   ;;  %s4829_s25 = sphi %s4975_s25, %s7833_s25  }
   0x7   : > { %s4367_s30 = sadd.s32 4294967294, %s4841_s28   ;;  %s5000_s14 = sadd.s32 1, %s4841_s28  }
   0x8   : > { %7635 = sst [smem:[#allocation17_spill]] %s5000_s14  ;;  %s319_s15 = sadd.s32 1, %s4837_s27 }
   0x9   : > { %s316_s16 = ssub.s32 %s4841_s28, %s5000_s14  ;;  %p329_p0 = scmp.ne.s32.totalorder %s4837_s27, %s4833_s26 }
   0xa   : > { %p317_p1 = scmp.eq.s32.totalorder %s316_s16, 0  ;;  %p330_p2 = scmp.eq.s32.totalorder %s4996_s29, 1 }
   0xb   : > { %p335_p3 = scmp.ne.s32.totalorder %s4833_s26, %s4829_s25  ;;  %p336_p4 = scmp.eq.s32.totalorder %s4367_s30, 1 }
   0xc   : > { %s5011_s17 = scalar_select %p317_p1, %s4837_s27, %s319_s15  }
   0xd   : > { %p5013_p5 = por %p330_p2, %p329_p0  ;;  %p5017_p6 = por %p336_p4, %p335_p3 }
   0xe   : > { %7636 = sst [smem:[#allocation18_spill]] %s5011_s17  ;;  %p4368_p7 = scmp.ge.s32.totalorder %s4841_s28, 1 }
   0xf   : > { %s7637_s18 = scalar_select %p5013_p5, 1, 0 }
  0x10   : > { %s7638_s19 = scalar_select %p5017_p6, 1, 0 }
  0x11   : > { %p343_p8 = scmp.lt.s32.totalorder %s4841_s28, 3  ;;  %p7485_p9 = scmp.eq.s32.totalorder %s4996_s29, 0 }
  0x12   : > { %7639 = sst [smem:[#allocation19_spill]] %s7638_s19  ;;  %s4843_s21 = smov [#allocation6]  }
  0x13   : > { %p5024_p10 = pnand %p4368_p7, %p343_p8  ;;  %s371_s22 = sshll.u32 %s4843_s21, 4  ;;  %s372_s22 = int_to_ptr.vmem [resolvable:$true] %s371_s22 }
  0x14   : > { %s4844_s24 = smov [#allocation3]   ;;  %s4845_s15 = smov [#allocation8]  }
  0x15   : > { %p4518_p11 = pneg %p5024_p10  ;;  %s355_s30 = sshll.u32 %s4844_s24, 4  ;;  %s356_s30 = int_to_ptr.vmem [resolvable:$true] %s355_s30 }
  0x16   : > { %s397_s16 = sshll.u32 %s4845_s15, 4  ;;  %s4676_s17 = scalar_lea.vmem %s372_s22, 1792  ;;  %s398_s16 = int_to_ptr.vmem [resolvable:$true] %s397_s16 }
  0x17   : > { %p5032_p12 = pnand %p7485_p9, %p4518_p11  ;;  %p4677_p0 = scmp.ne.s32.totalorder %s372_s22, %s4676_s17 }
  0x18   : > { %p4684_p3 = scmp.lt.s32.totalorder %s372_s22, %s372_s22  ;;  %p4685_p4 = scmp.lt.s32.totalorder %s4676_s17, %s4676_s17 }
  0x19   : > { %p4667_p13 = pneg %p5032_p12 }
  0x1a   : > { %p4686_p7 = por %p4685_p4, %p4684_p3 }
  0x1b   : > { %p4679_p1 = pnand %p4677_p0, %p4667_p13 }
  0x1d   : > { %p4680_p2 = pneg %p4679_p1 }
  0x1f   : > { %p4687_p8 = pnand %p4686_p7, %p4680_p2 }
  0x21   : > { %4690 = shalt.err (!%p4687_p8)
}
  0x22   : > { %s4846_s21 = smov 256   ;;  %s4847_s24 = smov 16  }
  0x23   : > { %4524 = dma.hbm_to_vmem [thread:$0]  (!%p5032_p12), %s7472_s4, 1792, %s372_s22, [#allocation7], %s4846_s21, %s4846_s21, %s4847_s24  }
  0x24   : > { %s4702_s14 = scalar_lea.vmem %s356_s30, 4096  ;;  %p4710_p9 = scmp.lt.s32.totalorder %s356_s30, %s356_s30 }
  0x25   : > { %p4703_p11 = scmp.ne.s32.totalorder %s356_s30, %s4702_s14  ;;  %p4711_p6 = scmp.lt.s32.totalorder %s4702_s14, %s4702_s14 }
  0x27   : > { %p4705_p0 = pnand %p4703_p11, %p4667_p13  ;;  %p4712_p3 = por %p4711_p6, %p4710_p9 }
  0x29   : > { %p4706_p1 = pneg %p4705_p0 }
  0x2b   : > { %p4713_p2 = pnand %p4712_p3, %p4706_p1 }
  0x2d   : > { %4716 = shalt.err (!%p4713_p2)
}
  0x2e   : > { %4521 = dma.hbm_to_vmem [thread:$0]  (!%p5032_p12), %s7470_s2, 4096, %s356_s30, [#allocation4], %s4846_s21, %s4846_s21, %s4847_s24  }
  0x2f   : > { %s4728_s27 = scalar_lea.vmem %s398_s16, 32  ;;  %p4736_p11 = scmp.lt.s32.totalorder %s398_s16, %s398_s16 }
  0x30   : > { %p4729_p4 = scmp.ne.s32.totalorder %s398_s16, %s4728_s27  ;;  %p4737_p0 = scmp.lt.s32.totalorder %s4728_s27, %s4728_s27 }
  0x32   : > { %p4731_p7 = pnand %p4729_p4, %p4667_p13  ;;  %p4738_p5 = por %p4737_p0, %p4736_p11 }
  0x34   : > { %p4732_p8 = pneg %p4731_p7 }
  0x36   : > { %p4739_p6 = pnand %p4738_p5, %p4732_p8 }
  0x38   : > { %4742 = shalt.err (!%p4739_p6)
}
  0x39   : > { %4527 = dma.hbm_to_vmem [thread:$0]  (!%p5032_p12), %s7477_s9, 32, %s398_s16, [#allocation7]  }
  0x3a   : > { %s4848_s19 = smov [#allocation9]  }
  0x3b   : > { %s410_s30 = sshll.u32 %s4848_s19, 4  ;;  %s411_s30 = int_to_ptr.vmem [resolvable:$true] %s410_s30 }
  0x3c   : > { %s4754_s21 = scalar_lea.vmem %s411_s30, 1536  ;;  %p4762_p2 = scmp.lt.s32.totalorder %s411_s30, %s411_s30 }
  0x3d   : > { %p4755_p9 = scmp.ne.s32.totalorder %s411_s30, %s4754_s21  ;;  %p4763_p4 = scmp.lt.s32.totalorder %s4754_s21, %s4754_s21 }
  0x3f   : > { %p4757_p1 = pnand %p4755_p9, %p4667_p13  ;;  %p4764_p5 = por %p4763_p4, %p4762_p2 }
  0x41   : > { %p4758_p3 = pneg %p4757_p1 }
  0x43   : > { %p4765_p7 = pnand %p4764_p5, %p4758_p3 }
  0x45   : > { %4768 = shalt.err (!%p4765_p7)
}
  0x46   : > { %s4849_s24 = smov 384   ;;  %s4850_s15 = smov 24  }
  0x47   : > { %4530 = dma.hbm_to_vmem [thread:$0]  (!%p5032_p12), %s7479_s11, 1536, %s411_s30, [#allocation10], %s4849_s24, %s4849_s24, %s4850_s15  }
  0x48   : > { %445 = sbr.rel (%p5024_p10) target bundleno = 2263 (0x8d7), region = 72 }
  0x4d   : > { %p7642_p8 = scmp.eq.s32.totalorder %s4996_s29, 0 }
  0x4f   : > { %4812 = dma.done.wait (%p7642_p8), [#allocation4], 4096   ;;  %p7643_p13 = pmov %p7642_p8 }
  0x50   : > { %p7644_p11 = pmov %p7642_p8 }
  0x51   : > { %4814 = vsyncadd (%p7643_p13), [#allocation4], 4294963200 }
  0x52   : > { %4816 = dma.done.wait (%p7644_p11), [#allocation7], 1824   ;;  %p7645_p0 = pmov %p7642_p8 }
  0x54   : > { %4818 = vsyncadd (%p7645_p0), [#allocation7], 4294965472  ;;  %p7646_p6 = pmov %p7645_p0 }
  0x55   : > { %p7647_p12 = pmov %p7645_p0 }
  0x56   : > { %4820 = dma.done.wait (%p7646_p6), [#allocation10], 1536  }
  0x57   : > { %4822 = vsyncadd (%p7647_p12), [#allocation10], 4294965760  ;;  %v7556_v0 = vmov 0.0   ;;  %v548_v1 = vld [vmem:[#allocation3 + $0xf8] sm:$0xff]  ;;  %v547_v2 = vld [vmem:[#allocation3 + $0xf0] sm:$0xff]  ;;  %p505_p10 = scmp.lt.s32.totalorder %s4996_s29, 1 }
  0x58   : > { %613 = vmatprep.mubr.f32.mxu0 %v7556_v0  ;;  %815 = vmatprep.mubr.f32.mxu1 %v7556_v0  ;;  %v546_v3 = vld [vmem:[#allocation3 + $0xe8] sm:$0xff]  ;;  %v545_v4 = vld [vmem:[#allocation3 + $0xe0] sm:$0xff]  ;;  %v544_v5 = vld [vmem:[#allocation3 + $0xd8] sm:$0xff]  ;;  %s4381_s19 = sshll.u32 %s4996_s29, 1  ;;  %vm644_vm0 = vcmask 1043456   ;;  %vm631_vm1 = vcmask 31744  }
  0x59   : > { %549 = vmatprep.subr.mxu0 %v548_v1  ;;  %v543_v6 = vld [vmem:[#allocation3 + $0xd0] sm:$0xff]  ;;  %v542_v7 = vld [vmem:[#allocation3 + $0xc8] sm:$0xff]  ;;  %v541_v8 = vld [vmem:[#allocation3 + $0xc0] sm:$0xff]  ;;  %s506_s20 = scalar_select %p505_p10, %s4996_s29, 1  ;;  %v4852_v42 = vmov 0   ;;  %vm738_vm2 = vcmask 64512  }
  0x5a   : > { %550 = vmatpush1.msra.mxu0 %v547_v2  ;;  %v540_v9 = vld [vmem:[#allocation3 + $0xb8] sm:$0xff]  ;;  %v539_v10 = vld [vmem:[#allocation3 + $0xb0] sm:$0xff]  ;;  %v538_v11 = vld [vmem:[#allocation3 + $0xa8] sm:$0xff]  ;;  %p510_p9 = scmp.lt.s32.totalorder %s4381_s19, 3  ;;  %4638 = vset.pattern.permute.xlu1 %v4852_v42  ;;  %vm4853_vm3 = vmmov 0   ;;  %vm890_vm4 = vcmask 261120  }
  0x5b   : > { %551 = vmatprep.subr.mxu0 %v546_v3  ;;  %v537_v12 = vld [vmem:[#allocation3 + $0xa0] sm:$0xff]  ;;  %v536_v13 = vld [vmem:[#allocation3 + $0x98] sm:$0xff]  ;;  %v535_v14 = vld [vmem:[#allocation3 + $0x90] sm:$0xff]  ;;  %s4380_s23 = sshll.u32 %s506_s20, 3  ;;  %4637 = vset.pattern.permute.xlu0 %v4852_v42  ;;  %vm969_vm5 = vcmask 15360   ;;  %vm982_vm6 = vcmask 1041408  }
  0x5c   : > { %552 = vmatpush1.msra.mxu0 %v545_v4  ;;  %v534_v15 = vld [vmem:[#allocation3 + $0x88] sm:$0xff]  ;;  %v533_v16 = vld [vmem:[#allocation3 + $0x80] sm:$0xff]  ;;  %v532_v17 = vld [vmem:[#allocation3 + $0x78] sm:$0xff]  ;;  %s508_s22 = scalar_lea.vmem %s7468_s0, %s4380_s23  ;;  %s7836_s19 = smov (!%p510_p9, %s4381_s19), 3 }
  0x5d   : > { %553 = vmatprep.subr.mxu0 %v544_v5  ;;  %v531_v18 = vld [vmem:[#allocation3 + $0x70] sm:$0xff]  ;;  %v530_v19 = vld [vmem:[#allocation3 + $0x68] sm:$0xff]  ;;  %v529_v20 = vld [vmem:[#allocation3 + $0x60] sm:$0xff]  ;;  %s4382_s30 = sshll.u32 %s7836_s19, 2  ;;  %s4855_s21 = smov 50  }
  0x5e   : > { %554 = vmatpush1.msra.mxu0 %v543_v6  ;;  %v528_v21 = vld [vmem:[#allocation3 + $0x58] sm:$0xff]  ;;  %v527_v22 = vld [vmem:[#allocation3 + $0x50] sm:$0xff]  ;;  %v526_v23 = vld [vmem:[#allocation3 + $0x48] sm:$0xff]  ;;  %s513_s15 = scalar_lea.vmem %s7469_s1, %s4382_s30  ;;  %s4854_s30 = smov 51  }
  0x5f   : > { %555 = vmatprep.subr.mxu0 %v542_v7  ;;  %v525_v24 = vld [vmem:[#allocation3 + $0x40] sm:$0xff]  ;;  %v524_v25 = vld [vmem:[#allocation3 + $0x38] sm:$0xff]  ;;  %v523_v26 = vld [vmem:[#allocation3 + $0x30] sm:$0xff]  ;;  %s4856_s24 = smov 49   ;;  %s4858_s17 = smov 47  }
  0x60   : > { %556 = vmatpush1.msra.mxu0 %v541_v8  ;;  %v522_v27 = vld [vmem:[#allocation3 + $0x28] sm:$0xff]  ;;  %v521_v28 = vld [vmem:[#allocation3 + $0x20] sm:$0xff]  ;;  %v520_v29 = vld [vmem:[#allocation3 + $0x18] sm:$0xff]  ;;  %s4859_s16 = smov 46   ;;  %s4860_s20 = smov 45  }
  0x61   : > { %557 = vmatprep.subr.mxu0 %v540_v9  ;;  %v519_v30 = vld [vmem:[#allocation3 + $0x10] sm:$0xff]  ;;  %v518_v31 = vld [vmem:[#allocation3 + $0x8] sm:$0xff]  ;;  %v517_v32 = vld [vmem:[#allocation3] sm:$0xff]  ;;  %s4861_s23 = smov 35   ;;  %s7488_s27 = smov 34  }
  0x62   : > { %558 = vmatpush1.msra.mxu0 %v539_v10  ;;  %v516_v33 = vld [vmem:[%s508_s22] sm:$0xff]  ;;  %v625_v37 = vld [vmem:[%s7475_s7 + $0x8] sm:$0xff]  ;;  %v626_v38 = vld [vmem:[%s7475_s7 + $0x10] sm:$0xff]  ;;  %s7490_s14 = smov 33   ;;  %s7492_s22 = smov 32  }
  0x63   : > { %559 = vmatprep.subr.mxu0 %v538_v11  ;;  %v628_v34 = vld [vmem:[%s513_s15] sm:$0xff]  ;;  %v627_v39 = vld [vmem:[%s7475_s7 + $0x18] sm:$0xff]  ;;  %v841_v40 = vld [vmem:[%s7476_s8 + $0x8] sm:$0xff]  ;;  %s4857_s15 = smov 48   ;;  %s7494_s19 = smov 31  }
  0x64   : > { %560 = vmatpush1.msra.mxu0 %v537_v12  ;;  %v630_v35 = vcombine.high %v628_v34, %v628_v34  ;;  %v624_v36 = vld [vmem:[%s7475_s7] sm:$0xff]  ;;  %v843_v41 = vld [vmem:[%s7476_s8 + $0x18] sm:$0xff]  ;;  %851 = vperm.xlu1 %4638, %v841_v40   ;;  %v842_v44 = vld [vmem:[%s7476_s8 + $0x10] sm:$0xff]  ;;  %p7827_p3 = scmp.ne.s32.totalorder %s7637_s18, 0 }
  0x65   : > { %561 = vmatprep.subr.mxu0 %v536_v13  ;;  %861 = vperm.xlu0 %4637, %v843_v41   ;;  %v840_v43 = vld [vmem:[%s7476_s8] sm:$0xff]  ;;  %v621_v48 = vld [vmem:[%s7474_s6 + $0x8] sm:$0xff]  ;;  %v622_v49 = vld [vmem:[%s7474_s6 + $0x10] sm:$0xff] }
  0x66   : > { %562 = vmatpush1.msra.mxu0 %v535_v14  ;;  %v620_v47 = vld [vmem:[%s7474_s6] sm:$0xff]  ;;  %v623_v50 = vld [vmem:[%s7474_s6 + $0x18] sm:$0xff]  ;;  %v966_v41 = vld [vmem:[%s7478_s10 + $0x8] sm:$0xff] }
  0x67   : > { %563 = vmatprep.subr.mxu0 %v534_v15  ;;  %v967_v42 = vld [vmem:[%s7478_s10 + $0x10] sm:$0xff] }
  0x68   : > { %564 = vmatpush1.msra.mxu0 %v533_v16  ;;  %846 = vperm.xlu1 %4638, %v840_v43   ;;  %v968_v43 = vld [vmem:[%s7478_s10 + $0x18] sm:$0xff] }
  0x69   : > { %565 = vmatprep.subr.mxu0 %v532_v17  ;;  %856 = vperm.xlu0 %4637, %v842_v44  }
  0x6a   : > { %566 = vmatpush1.msra.mxu0 %v531_v18 }
  0x6b   : > { %567 = vmatprep.subr.mxu0 %v530_v19 }
  0x6c   : > { %568 = vmatpush1.msra.mxu0 %v529_v20 }
  0x6d   : > { %569 = vmatprep.subr.mxu0 %v528_v21 }
  0x6e   : > { %570 = vmatpush1.msra.mxu0 %v527_v22 }
  0x6f   : > { %571 = vmatprep.subr.mxu0 %v526_v23 }
  0x70   : > { %572 = vmatpush1.msra.mxu0 %v525_v24 }
  0x71   : > { %573 = vmatprep.subr.mxu0 %v524_v25 }
  0x72   : > { %574 = vmatpush1.msra.mxu0 %v523_v26 }
  0x73   : > { %575 = vmatprep.subr.mxu0 %v522_v27 }
  0x74   : > { %576 = vmatpush1.msra.mxu0 %v521_v28 }
  0x75   : > { %577 = vmatprep.subr.mxu0 %v520_v29 }
  0x76   : > { %578 = vmatpush1.msra.mxu0 %v519_v30 }
  0x77   : > { %579 = vmatprep.subr.mxu0 %v518_v31 }
  0x78   : > { %580 = vmatpush1.msra.mxu0 %v517_v32 }
  0x79   : > { %614 = vmatmul.mubr.f32.vlgmr.msra.gmra.mxu0 %v516_v33  ;;  %4383 = vmatprep.subr.msk.mxu0 %vm644_vm0, %v630_v35 }
  0x7a   : > { %713 = vmatprep.mubr.f32.mxu0 %v7556_v0  ;;  %4384 = vmatpush1.msk.msra.mxu0 %vm644_vm0, %v628_v34 }
  0x7b   : > { %4481 = vmatprep.subr.mxu0 %v7556_v0 }
  0x7d   : > { %4385 = vmatmul.mubr.msk.f32.vlgmr.msra.gmra.mxu0 %vm631_vm1, %v624_v36  ;;  %v889_v36 = vld [vmem:[#allocation8] sm:$0x3] }
  0x7e   : > { %719 = vmatprep.mubr.f32.mxu0 %v7556_v0 }
  0x81   : > { %4386 = vmatmul.mubr.msk.f32.gmra.mxu0 %vm631_vm1, %v625_v37  ;;  %v965_v37 = vld [vmem:[%s7478_s10] sm:$0xff] }
  0x82   : > { %725 = vmatprep.mubr.f32.mxu0 %v7556_v0 }
  0x85   : > { %4387 = vmatmul.mubr.msk.f32.gmra.mxu0 %vm631_vm1, %v626_v38 }
  0x86   : > { %731 = vmatprep.mubr.f32.mxu0 %v7556_v0 }
  0x89   : > { %4388 = vmatmul.mubr.msk.f32.gmra.mxu0 %vm631_vm1, %v627_v39 }
  0x8a   : > { %4489 = vmatprep.mubr.msk.f32.mxu0 %vm4853_vm3, %v7556_v0 }
  0xdf   : > { %v852_v14 = vpop.permute.xlu1 %851 }
  0xe0   : > { %v862_v58 = vpop.permute.xlu0 %861 }
  0xe3   : > { %v847_v23 = vpop.permute.xlu1 %846 }
  0xe4   : > { %v857_v1 = vpop.permute.xlu0 %856 }
 0x139   : > { %v615_v45 = vpop.f32.mrf.mxu0 }
 0x13b   : > { %v617_v46 = vpop.f32.mrf.mxu0 }
 0x13c   : > { %781 = vmatprep.subr.mxu1 %v617_v46 }
 0x13d   : > { %782 = vmatpush1.msra.mxu1 %v615_v45  ;;  %v715_v51 = vpop.f32.mrf.mxu0 }
 0x13e   : > { %4389 = vmatmul.mubr.msk.f32.vlgmr.msra.gmra.mxu1 %vm738_vm2, %v620_v47 }
 0x13f   : > { %821 = vmatprep.mubr.f32.mxu1 %v7556_v0  ;;  %v717_v52 = vpop.f32.mrf.mxu0 }
 0x141   : > { %v721_v53 = vpop.f32.mrf.mxu0 }
 0x142   : > { %4390 = vmatmul.mubr.msk.f32.gmra.mxu1 %vm738_vm2, %v621_v48 }
 0x143   : > { %827 = vmatprep.mubr.f32.mxu1 %v7556_v0  ;;  %v723_v54 = vpop.f32.mrf.mxu0 }
 0x145   : > { %v727_v57 = vpop.f32.mrf.mxu0 }
 0x146   : > { %4391 = vmatmul.mubr.msk.f32.gmra.mxu1 %vm738_vm2, %v622_v49 }
 0x147   : > { %833 = vmatprep.mubr.f32.mxu1 %v7556_v0  ;;  %v729_v61 = vpop.f32.mrf.mxu0 }
 0x149   : > { %v733_v2 = vpop.f32.mrf.mxu0 }
 0x14a   : > { %4392 = vmatmul.mubr.msk.f32.gmra.mxu1 %vm738_vm2, %v623_v50 }
 0x14b   : > { %v735_v9 = vpop.f32.mrf.mxu0 }
 0x1fe   : > { %v817_v55 = vpop.f32.mrf.mxu1 }
 0x1ff   : > { %v818_v21 = vadd.f32 %v817_v55, %v715_v51 }
 0x200   : > { %v819_v56 = vpop.f32.mrf.mxu1 }
 0x201   : > { %v820_v18 = vadd.f32 %v819_v56, %v717_v52  ;;  %v5159_v26 = vadd.f32 %v847_v23, %v818_v21 }
 0x202   : > { %v823_v59 = vpop.f32.mrf.mxu1 }
 0x203   : > { %v824_v15 = vadd.f32 %v823_v59, %v721_v53  ;;  %v5155_v24 = vadd.f32 %v847_v23, %v820_v18 }
 0x204   : > { %v825_v60 = vpop.f32.mrf.mxu1 }
 0x205   : > { %v826_v11 = vadd.f32 %v825_v60, %v723_v54  ;;  %v5153_v22 = vadd.f32 %v852_v14, %v824_v15  ;;  %v872_v27 = vadd.f32 %v5155_v24, %v5159_v26 }
 0x206   : > { %v829_v62 = vpop.f32.mrf.mxu1 }
 0x207   : > { %v830_v63 = vadd.f32 %v829_v62, %v727_v57  ;;  %v5149_v19 = vadd.f32 %v852_v14, %v826_v11 }
 0x208   : > { %v831_v3 = vpop.f32.mrf.mxu1 }
 0x209   : > { %v832_v4 = vadd.f32 %v831_v3, %v729_v61  ;;  %v5141_v8 = vadd.f32 %v857_v1, %v830_v63  ;;  %v875_v25 = vadd.f32 %v5149_v19, %v5153_v22 }
 0x20a   : > { %v835_v5 = vpop.f32.mrf.mxu1 }
 0x20b   : > { %v5139_v6 = vadd.f32 %v857_v1, %v832_v4  ;;  %v836_v7 = vadd.f32 %v835_v5, %v733_v2 }
 0x20c   : > { %v837_v10 = vpop.f32.mrf.mxu1 }
 0x20d   : > { %v838_v12 = vadd.f32 %v837_v10, %v735_v9  ;;  %v878_v13 = vadd.f32 %v5139_v6, %v5141_v8  ;;  %v5145_v16 = vadd.f32 %v862_v58, %v836_v7 }
 0x20f   : > { %v5147_v17 = vadd.f32 %v862_v58, %v838_v12  ;;  %879 = vadd.xlane.f32.xlu1 %v878_v13 }
 0x211   : > { %v881_v20 = vadd.f32 %v5147_v17, %v5145_v16 }
 0x213   : > { %882 = vadd.xlane.f32.xlu0 %v881_v20 }
 0x217   : > { %876 = vadd.xlane.f32.xlu0 %v875_v25 }
 0x21b   : > { %873 = vadd.xlane.f32.xlu0 %v872_v27 }
 0x298   : > { %v880_v28 = vpop.xlane.xlu1 %879 }
 0x299   : > { %v887_v31 = vmul.f32 0.00390625, %v880_v28 }
 0x29c   : > { %v883_v29 = vpop.xlane.xlu0 %882 }
 0x29d   : > { %v888_v30 = vmul.f32 0.00390625, %v883_v29 }
 0x29f   : > { %4482 = vmatpush3.msra.mxu0 %v888_v30 }
 0x2a0   : > { %4483 = vmatprep.subr.mxu0 %v7556_v0  ;;  %v877_v32 = vpop.xlane.xlu0 %876 }
 0x2a1   : > { %v886_v33 = vmul.f32 0.00390625, %v877_v32  ;;  %4484 = vmatpush3.msra.mxu0 %v887_v31 }
 0x2a2   : > { %4485 = vmatprep.subr.mxu0 %v7556_v0 }
 0x2a3   : > { %4486 = vmatpush3.msra.mxu0 %v886_v33 }
 0x2a4   : > { %v874_v34 = vpop.xlane.xlu0 %873  ;;  %4487 = vmatprep.subr.mxu0 %v7556_v0 }
 0x2a5   : > { %v885_v35 = vmul.f32 0.00390625, %v874_v34 }
 0x2a7   : > { %4488 = vmatpush3.msra.mxu0 %v885_v35 }
 0x2a8   : > { %4490 = vmatmul.mubr.msk.f32.vlgmr.msra.gmra.mxu0 %vm890_vm4, %v889_v36 }
 0x2a9   : > { %4494 = vmatprep.mubr.msk.f32.mxu0 %vm969_vm5, %v965_v37 }
 0x368   : > { %v960_v38 = vpop.f32.mrf.mxu0 }
 0x369   : > { %v964_v39 = vmax.f32 %v960_v38, 0.0 }
 0x36a   : > { %v4491_v40 = vpop.f32.mrf.mxu0 }
 0x36b   : > { %4492 = vmatprep.subr.msk.mxu0 %vm982_vm6, %v964_v39 }
 0x36c   : > { %4493 = vmatpush3.msk.msra.mxu0 %vm982_vm6, %v964_v39 }
 0x36d   : > { %4495 = vmatmul.mubr.msk.f32.vlgmr.msra.gmra.mxu0 %vm969_vm5, %v966_v41 }
 0x36e   : > { %4497 = vmatprep.mubr.msk.f32.mxu0 %vm969_vm5, %v967_v42 }
 0x371   : > { %4498 = vmatmul.mubr.msk.f32.gmra.mxu0 %vm969_vm5, %v968_v43 }
 0x372   : > { %4205 = vmatprep.mubr.f32.mxu0 %v7556_v0 }
 0x42d   : > { %v4496_v44 = vpop.f32.mrf.mxu0 }
 0x42e   : > { %v4400_v45 = vmul.f32 -1.442695, %v4496_v44 }
 0x42f   : > { %v1052_v46 = vpop.f32.mrf.mxu0 }
 0x430   : > { %4640 = vpow2.f32 %v4400_v45  ;;  %v4399_v47 = vmul.f32 -1.442695, %v1052_v46 }
 0x431   : > { %v4499_v48 = vpop.f32.mrf.mxu0 }
 0x432   : > { %4642 = vpow2.f32 %v4399_v47  ;;  %v4402_v49 = vmul.f32 -1.442695, %v4499_v48 }
 0x433   : > { %v1062_v50 = vpop.f32.mrf.mxu0 }
 0x434   : > { %4644 = vpow2.f32 %v4402_v49  ;;  %v4401_v51 = vmul.f32 -1.442695, %v1062_v50 }
 0x436   : > { %4646 = vpow2.f32 %v4401_v51 }
 0x43d   : > { %v4641_v52 = vpop.eup %4640 }
 0x43e   : > { %v1084_v53 = vadd.f32 1.0, %v4641_v52 }
 0x43f   : > { %v4643_v54 = vpop.eup %4642 }
 0x440   : > { %4648 = vrcp.f32 %v1084_v53  ;;  %v1083_v55 = vadd.f32 1.0, %v4643_v54 }
 0x441   : > { %v4645_v56 = vpop.eup %4644 }
 0x442   : > { %4650 = vrcp.f32 %v1083_v55  ;;  %v1086_v57 = vadd.f32 1.0, %v4645_v56 }
 0x443   : > { %v4647_v58 = vpop.eup %4646 }
 0x444   : > { %4652 = vrcp.f32 %v1086_v57  ;;  %v1085_v59 = vadd.f32 1.0, %v4647_v58 }
 0x446   : > { %4654 = vrcp.f32 %v1085_v59 }
 0x44d   : > { %v4649_v60 = vpop.eup %4648 }
 0x44e   : > { %1102 = vperm.xlu0 %4637, %v4649_v60  }
 0x44f   : > { %v4651_v61 = vpop.eup %4650 }
 0x450   : > { %1097 = vperm.xlu1 %4638, %v4651_v61  }
 0x451   : > { %v4653_v62 = vpop.eup %4652 }
 0x453   : > { %v4655_v63 = vpop.eup %4654 }
 0x454   : > { %1112 = vperm.xlu1 %4638, %v4653_v62  }
 0x458   : > { %1107 = vperm.xlu1 %4638, %v4655_v63  }
 0x4c9   : > { %v1103_v3 = vpop.permute.xlu0 %1102 }
 0x4ca   : > { %v5188_v7 = vmul.f32 %v1103_v3, %v5153_v22  ;;  %v5191_v9 = vmul.f32 %v1103_v3, %v5149_v19 }
 0x4cb   : > { %v1098_v1 = vpop.permute.xlu1 %1097 }
 0x4cc   : > { %7650 = vst [vmem:[#allocation22_spill] sm:$0xff] %v5188_v7  ;;  %7651 = vst [vmem:[#allocation23_spill] sm:$0xff] %v5191_v9  ;;  %v5194_v11 = vmul.f32 %v1098_v1, %v5159_v26  ;;  %v5197_v12 = vmul.f32 %v1098_v1, %v5155_v24 }
 0x4ce   : > { %7652 = vst [vmem:[#allocation24_spill] sm:$0xff] %v5194_v11  ;;  %7653 = vst [vmem:[#allocation25_spill] sm:$0xff] %v5197_v12  ;;  %v1123_v49 = vadd.f32 %v5188_v7, %v5194_v11  ;;  %v1132_v50 = vadd.f32 %v5191_v9, %v5197_v12 }
 0x4cf   : > { %v1113_v2 = vpop.permute.xlu1 %1112 }
 0x4d0   : > { %v5182_v4 = vmul.f32 %v1113_v2, %v5145_v16  ;;  %v5185_v5 = vmul.f32 %v1113_v2, %v5147_v17 }
 0x4d2   : > { %7648 = vst [vmem:[#allocation20_spill] sm:$0xff] %v5182_v4  ;;  %7649 = vst [vmem:[#allocation21_spill] sm:$0xff] %v5185_v5  ;;  %v1145_v15 = vmax.f32 %v5188_v7, %v5182_v4  ;;  %v1154_v16 = vmax.f32 %v5191_v9, %v5185_v5 }
 0x4d3   : > { %v1108_v10 = vpop.permute.xlu1 %1107 }
 0x4d4   : > { %v5200_v13 = vmul.f32 %v1108_v10, %v5141_v8  ;;  %v5203_v14 = vmul.f32 %v1108_v10, %v5139_v6 }
 0x4d6   : > { %7654 = vst [vmem:[#allocation26_spill] sm:$0xff] %v5200_v13  ;;  %7655 = vst [vmem:[#allocation27_spill] sm:$0xff] %v5203_v14  ;;  %v1144_v17 = vmax.f32 %v5194_v11, %v5200_v13  ;;  %v1153_v18 = vmax.f32 %v5197_v12, %v5203_v14  ;;  %v1124_v51 = vadd.f32 %v1123_v49, %v5200_v13 }
 0x4d7   : > { %v1133_v52 = vadd.f32 %v1132_v50, %v5203_v14 }
 0x4d8   : > { %v1146_v19 = vmax.f32 %v1144_v17, %v1145_v15  ;;  %v1155_v20 = vmax.f32 %v1153_v18, %v1154_v16  ;;  %v1125_v55 = vadd.f32 %v1124_v51, %v5182_v4 }
 0x4d9   : > { %v1134_v56 = vadd.f32 %v1133_v52, %v5185_v5 }
 0x4da   : > { %v1147_v21 = vrot.slane %v1146_v19, 4  ;;  %v1156_v8 = vrot.slane %v1155_v20, 4  ;;  %v1126_v59 = vrot.slane %v1125_v55, 4 }
 0x4db   : > { %v1135_v60 = vrot.slane %v1134_v56, 4 }
 0x4dc   : > { %v1148_v22 = vmax.f32 %v1146_v19, %v1147_v21  ;;  %v1157_v23 = vmax.f32 %v1155_v20, %v1156_v8  ;;  %v1127_v63 = vadd.f32 %v1126_v59, %v1125_v55 }
 0x4dd   : > { %v1136_v1 = vadd.f32 %v1135_v60, %v1134_v56 }
 0x4de   : > { %v1149_v6 = vrot.slane %v1148_v22, 2  ;;  %v1158_v24 = vrot.slane %v1157_v23, 2  ;;  %v1128_v10 = vrot.slane %v1127_v63, 2 }
 0x4df   : > { %v1137_v15 = vrot.slane %v1136_v1, 2 }
 0x4e0   : > { %v1150_v25 = vmax.f32 %v1148_v22, %v1149_v6  ;;  %v1159_v26 = vmax.f32 %v1157_v23, %v1158_v24  ;;  %v1129_v18 = vadd.f32 %v1128_v10, %v1127_v63 }
 0x4e1   : > { %v1138_v19 = vadd.f32 %v1137_v15, %v1136_v1 }
 0x4e2   : > { %v1151_v27 = vrot.slane %v1150_v25, 1  ;;  %v1160_v28 = vrot.slane %v1159_v26, 1  ;;  %v1130_v8 = vrot.slane %v1129_v18, 1 }
 0x4e3   : > { %v1139_v22 = vrot.slane %v1138_v19, 1 }
 0x4e4   : > { %v5213_v29 = vmax.f32 %v1150_v25, %v1151_v27  ;;  %v5215_v30 = vmax.f32 %v1159_v26, %v1160_v28  ;;  %v1131_v24 = vadd.f32 %v1130_v8, %v1129_v18 }
 0x4e5   : > { %v1140_v25 = vadd.f32 %v1139_v22, %v1138_v19 }
 0x4e6   : > { %7656 = vst [vmem:[#allocation28_spill] sm:$0xff] %v5213_v29  ;;  %7657 = vst [vmem:[#allocation29_spill] sm:$0xff] %v5215_v30  ;;  %1173 = vrot.lane.b32.xlu1 %v5215_v30, %s4854_s30  ;;  %1171 = vrot.lane.b32.xlu0 %v5213_v29, %s4854_s30  ;;  %v5477_v28 = vmul.f32 0.03125, %v1131_v24 }
 0x4e7   : > { %v5479_v49 = vmul.f32 0.03125, %v1140_v25 }
 0x4ea   : > { %1218 = vrot.lane.b32.xlu1 %v5215_v30, %s4855_s21  ;;  %1216 = vrot.lane.b32.xlu0 %v5213_v29, %s4855_s21 }
 0x4ee   : > { %1265 = vrot.lane.b32.xlu1 %v5215_v30, %s4856_s24  ;;  %1263 = vrot.lane.b32.xlu0 %v5213_v29, %s4856_s24 }
 0x4f2   : > { %1312 = vrot.lane.b32.xlu1 %v5215_v30, %s4857_s15  ;;  %1310 = vrot.lane.b32.xlu0 %v5213_v29, %s4857_s15 }
 0x4f6   : > { %1359 = vrot.lane.b32.xlu1 %v5215_v30, %s4858_s17  ;;  %1357 = vrot.lane.b32.xlu0 %v5213_v29, %s4858_s17 }
 0x4fa   : > { %1406 = vrot.lane.b32.xlu1 %v5215_v30, %s4859_s16  ;;  %1404 = vrot.lane.b32.xlu0 %v5213_v29, %s4859_s16 }
 0x4fe   : > { %1453 = vrot.lane.b32.xlu1 %v5215_v30, %s4860_s20  ;;  %1451 = vrot.lane.b32.xlu0 %v5213_v29, %s4860_s20 }
 0x502   : > { %1500 = vrot.lane.b32.xlu1 %v5215_v30, %s4861_s23  ;;  %1498 = vrot.lane.b32.xlu0 %v5213_v29, %s4861_s23 }
 0x506   : > { %1547 = vrot.lane.b32.xlu1 %v5215_v30, %s7488_s27  ;;  %1545 = vrot.lane.b32.xlu0 %v5213_v29, %s7488_s27  ;;  %s7496_s27 = smov 30  }
 0x50a   : > { %1594 = vrot.lane.b32.xlu1 %v5215_v30, %s7490_s14  ;;  %1592 = vrot.lane.b32.xlu0 %v5213_v29, %s7490_s14  ;;  %s7498_s14 = smov 29  }
 0x50e   : > { %1641 = vrot.lane.b32.xlu1 %v5215_v30, %s7492_s22  ;;  %1639 = vrot.lane.b32.xlu0 %v5213_v29, %s7492_s22  ;;  %s7500_s22 = smov 19  }
 0x512   : > { %1688 = vrot.lane.b32.xlu1 %v5215_v30, %s7494_s19  ;;  %1686 = vrot.lane.b32.xlu0 %v5213_v29, %s7494_s19  ;;  %s7502_s19 = smov 18  }
 0x516   : > { %1735 = vrot.lane.b32.xlu1 %v5215_v30, %s7496_s27  ;;  %1733 = vrot.lane.b32.xlu0 %v5213_v29, %s7496_s27  ;;  %s7504_s27 = smov 17  }
 0x51a   : > { %1782 = vrot.lane.b32.xlu1 %v5215_v30, %s7498_s14  ;;  %1780 = vrot.lane.b32.xlu0 %v5213_v29, %s7498_s14  ;;  %s7506_s14 = smov 16  }
 0x51e   : > { %1829 = vrot.lane.b32.xlu1 %v5215_v30, %s7500_s22  ;;  %1827 = vrot.lane.b32.xlu0 %v5213_v29, %s7500_s22  ;;  %s7508_s22 = smov 15  }
 0x522   : > { %1876 = vrot.lane.b32.xlu1 %v5215_v30, %s7502_s19  ;;  %1874 = vrot.lane.b32.xlu0 %v5213_v29, %s7502_s19  ;;  %s7510_s19 = smov 14  }
 0x526   : > { %1923 = vrot.lane.b32.xlu1 %v5215_v30, %s7504_s27  ;;  %1921 = vrot.lane.b32.xlu0 %v5213_v29, %s7504_s27  ;;  %s7512_s27 = smov 13  }
 0x52a   : > { %1970 = vrot.lane.b32.xlu1 %v5215_v30, %s7506_s14  ;;  %1968 = vrot.lane.b32.xlu0 %v5213_v29, %s7506_s14  ;;  %s7514_s14 = smov 3  }
 0x52e   : > { %2017 = vrot.lane.b32.xlu1 %v5215_v30, %s7508_s22  ;;  %2015 = vrot.lane.b32.xlu0 %v5213_v29, %s7508_s22  ;;  %s7516_s22 = smov 2  }
 0x532   : > { %2064 = vrot.lane.b32.xlu1 %v5215_v30, %s7510_s19  ;;  %2062 = vrot.lane.b32.xlu0 %v5213_v29, %s7510_s19  ;;  %s7518_s19 = smov 1  }
 0x536   : > { %2111 = vrot.lane.b32.xlu1 %v5215_v30, %s7512_s27  ;;  %2109 = vrot.lane.b32.xlu0 %v5213_v29, %s7512_s27  ;;  %s7520_s27 = smov 127  }
 0x53a   : > { %2158 = vrot.lane.b32.xlu1 %v5215_v30, %s7514_s14  ;;  %2156 = vrot.lane.b32.xlu0 %v5213_v29, %s7514_s14  ;;  %s7522_s14 = smov 126  }
 0x53e   : > { %2205 = vrot.lane.b32.xlu1 %v5215_v30, %s7516_s22  ;;  %2203 = vrot.lane.b32.xlu0 %v5213_v29, %s7516_s22  ;;  %s4880_s22 = smov 125  }
 0x542   : > { %2252 = vrot.lane.b32.xlu1 %v5215_v30, %s7518_s19  ;;  %2250 = vrot.lane.b32.xlu0 %v5213_v29, %s7518_s19  ;;  %s7524_s19 = smov 115  }
 0x546   : > { %2333 = vrot.lane.b32.xlu1 %v5215_v30, %s7520_s27  ;;  %2331 = vrot.lane.b32.xlu0 %v5213_v29, %s7520_s27  ;;  %s7526_s27 = smov 114  }
 0x54a   : > { %2380 = vrot.lane.b32.xlu1 %v5215_v30, %s7522_s14  ;;  %2378 = vrot.lane.b32.xlu0 %v5213_v29, %s7522_s14  ;;  %s7528_s14 = smov 113  }
 0x54e   : > { %2427 = vrot.lane.b32.xlu1 %v5215_v30, %s4880_s22  ;;  %2425 = vrot.lane.b32.xlu0 %v5213_v29, %s4880_s22 }
 0x552   : > { %2474 = vrot.lane.b32.xlu1 %v5215_v30, %s7524_s19  ;;  %2472 = vrot.lane.b32.xlu0 %v5213_v29, %s7524_s19  ;;  %s7530_s19 = smov 112  }
 0x556   : > { %2521 = vrot.lane.b32.xlu1 %v5215_v30, %s7526_s27  ;;  %2519 = vrot.lane.b32.xlu0 %v5213_v29, %s7526_s27  ;;  %s7532_s27 = smov 111  }
 0x558   : > { %v5333_v31 = vpop.permute.xlu1 %1173  ;;  %v5335_v32 = vpop.permute.xlu0 %1171 }
 0x55a   : > { %2568 = vrot.lane.b32.xlu1 %v5215_v30, %s7528_s14  ;;  %2566 = vrot.lane.b32.xlu0 %v5213_v29, %s7528_s14  ;;  %s7534_s14 = smov 110  }
 0x55c   : > { %v5341_v33 = vpop.permute.xlu1 %1218  ;;  %v5343_v34 = vpop.permute.xlu0 %1216 }
 0x55e   : > { %2615 = vrot.lane.b32.xlu1 %v5215_v30, %s7530_s19  ;;  %2613 = vrot.lane.b32.xlu0 %v5213_v29, %s7530_s19  ;;  %s7536_s19 = smov 109  }
 0x560   : > { %v5349_v35 = vpop.permute.xlu1 %1265  ;;  %v5351_v36 = vpop.permute.xlu0 %1263 }
 0x562   : > { %2662 = vrot.lane.b32.xlu1 %v5215_v30, %s7532_s27  ;;  %2660 = vrot.lane.b32.xlu0 %v5213_v29, %s7532_s27  ;;  %s4888_s27 = smov 99  }
 0x564   : > { %v5357_v37 = vpop.permute.xlu1 %1312  ;;  %v5359_v38 = vpop.permute.xlu0 %1310 }
 0x566   : > { %2709 = vrot.lane.b32.xlu1 %v5215_v30, %s7534_s14  ;;  %2707 = vrot.lane.b32.xlu0 %v5213_v29, %s7534_s14  ;;  %s7538_s14 = smov 98  }
 0x568   : > { %v5365_v39 = vpop.permute.xlu1 %1359  ;;  %v5367_v40 = vpop.permute.xlu0 %1357 }
 0x56a   : > { %2756 = vrot.lane.b32.xlu1 %v5215_v30, %s7536_s19  ;;  %2754 = vrot.lane.b32.xlu0 %v5213_v29, %s7536_s19  ;;  %s7540_s19 = smov 97  }
 0x56c   : > { %v5373_v41 = vpop.permute.xlu1 %1406  ;;  %v5375_v42 = vpop.permute.xlu0 %1404 }
 0x56e   : > { %2803 = vrot.lane.b32.xlu1 %v5215_v30, %s4888_s27  ;;  %2801 = vrot.lane.b32.xlu0 %v5213_v29, %s4888_s27 }
 0x570   : > { %v5381_v43 = vpop.permute.xlu1 %1453  ;;  %v5383_v44 = vpop.permute.xlu0 %1451 }
 0x572   : > { %2850 = vrot.lane.b32.xlu1 %v5215_v30, %s7538_s14  ;;  %2848 = vrot.lane.b32.xlu0 %v5213_v29, %s7538_s14  ;;  %s7542_s14 = smov 96  }
 0x574   : > { %v5389_v45 = vpop.permute.xlu1 %1500  ;;  %v5391_v46 = vpop.permute.xlu0 %1498 }
 0x576   : > { %2897 = vrot.lane.b32.xlu1 %v5215_v30, %s7540_s19  ;;  %2895 = vrot.lane.b32.xlu0 %v5213_v29, %s7540_s19  ;;  %s7544_s19 = smov 95  }
 0x578   : > { %v5397_v47 = vpop.permute.xlu1 %1547  ;;  %v5399_v48 = vpop.permute.xlu0 %1545 }
 0x57a   : > { %2944 = vrot.lane.b32.xlu1 %v5215_v30, %s7542_s14  ;;  %2942 = vrot.lane.b32.xlu0 %v5213_v29, %s7542_s14  ;;  %s7546_s14 = smov 94  }
 0x57c   : > { %v5411_v53 = vpop.permute.xlu1 %1594  ;;  %v5413_v54 = vpop.permute.xlu0 %1592 }
 0x57e   : > { %2991 = vrot.lane.b32.xlu1 %v5215_v30, %s7544_s19  ;;  %2989 = vrot.lane.b32.xlu0 %v5213_v29, %s7544_s19  ;;  %s7548_s19 = smov 93  }
 0x580   : > { %v5421_v57 = vpop.permute.xlu1 %1641  ;;  %v5423_v58 = vpop.permute.xlu0 %1639 }
 0x582   : > { %3038 = vrot.lane.b32.xlu1 %v5215_v30, %s7546_s14  ;;  %3036 = vrot.lane.b32.xlu0 %v5213_v29, %s7546_s14  ;;  %s7550_s14 = smov 83  }
 0x584   : > { %v5429_v61 = vpop.permute.xlu1 %1688  ;;  %v5431_v62 = vpop.permute.xlu0 %1686 }
 0x586   : > { %3085 = vrot.lane.b32.xlu1 %v5215_v30, %s7548_s19  ;;  %3083 = vrot.lane.b32.xlu0 %v5213_v29, %s7548_s19  ;;  %s7552_s19 = smov 82  }
 0x588   : > { %v5437_v2 = vpop.permute.xlu1 %1735  ;;  %v5439_v3 = vpop.permute.xlu0 %1733 }
 0x58a   : > { %3132 = vrot.lane.b32.xlu1 %v5215_v30, %s7550_s14  ;;  %3130 = vrot.lane.b32.xlu0 %v5213_v29, %s7550_s14  ;;  %s7554_s14 = smov 81  }
 0x58c   : > { %v5445_v16 = vpop.permute.xlu1 %1782  ;;  %v5447_v17 = vpop.permute.xlu0 %1780 }
 0x58e   : > { %3179 = vrot.lane.b32.xlu1 %v5215_v30, %s7552_s19  ;;  %3177 = vrot.lane.b32.xlu0 %v5213_v29, %s7552_s19  ;;  %s7632_s19 = smov 80  }
 0x590   : > { %v5453_v20 = vpop.permute.xlu1 %1829  ;;  %v5455_v21 = vpop.permute.xlu0 %1827 }
 0x592   : > { %3226 = vrot.lane.b32.xlu1 %v5215_v30, %s7554_s14  ;;  %3224 = vrot.lane.b32.xlu0 %v5213_v29, %s7554_s14  ;;  %s7605_s14 = smov 79  }
 0x594   : > { %v5461_v23 = vpop.permute.xlu1 %1876  ;;  %v5463_v6 = vpop.permute.xlu0 %1874 }
 0x596   : > { %3273 = vrot.lane.b32.xlu1 %v5215_v30, %s7632_s19  ;;  %3271 = vrot.lane.b32.xlu0 %v5213_v29, %s7632_s19  ;;  %s7743_s19 = smov 109  }
 0x598   : > { %v5469_v26 = vpop.permute.xlu1 %1923  ;;  %v5471_v27 = vpop.permute.xlu0 %1921 }
 0x59a   : > { %3320 = vrot.lane.b32.xlu1 %v5215_v30, %s7605_s14  ;;  %3318 = vrot.lane.b32.xlu0 %v5213_v29, %s7605_s14  ;;  %s7735_s14 = smov 113  }
 0x59c   : > { %v5481_v50 = vpop.permute.xlu1 %1970  ;;  %v5483_v51 = vpop.permute.xlu0 %1968 }
 0x59e   : > { %1164 = vrot.lane.b32.xlu1 %v5479_v49, %s4854_s30  ;;  %1162 = vrot.lane.b32.xlu0 %v5477_v28, %s4854_s30  ;;  %s7673_s30 = smov 34  }
 0x5a0   : > { %v5489_v52 = vpop.permute.xlu1 %2017  ;;  %v5491_v55 = vpop.permute.xlu0 %2015 }
 0x5a1   : > { %7658 = vst [vmem:[#allocation30_spill] sm:$0xff] %v5491_v55 }
 0x5a2   : > { %1211 = vrot.lane.b32.xlu1 %v5479_v49, %s4855_s21  ;;  %1209 = vrot.lane.b32.xlu0 %v5477_v28, %s4855_s21  ;;  %s7676_s21 = smov 33  }
 0x5a4   : > { %v5497_v56 = vpop.permute.xlu1 %2064  ;;  %v5499_v59 = vpop.permute.xlu0 %2062 }
 0x5a5   : > { %7659 = vst [vmem:[#allocation31_spill] sm:$0xff] %v5497_v56  ;;  %7660 = vst [vmem:[#allocation32_spill] sm:$0xff] %v5499_v59 }
 0x5a6   : > { %1258 = vrot.lane.b32.xlu1 %v5479_v49, %s4856_s24  ;;  %1256 = vrot.lane.b32.xlu0 %v5477_v28, %s4856_s24  ;;  %s7679_s24 = smov 32  }
 0x5a8   : > { %v5505_v60 = vpop.permute.xlu1 %2111  ;;  %v5507_v63 = vpop.permute.xlu0 %2109 }
 0x5a9   : > { %7661 = vst [vmem:[#allocation33_spill] sm:$0xff] %v5505_v60  ;;  %7662 = vst [vmem:[#allocation34_spill] sm:$0xff] %v5507_v63 }
 0x5aa   : > { %1305 = vrot.lane.b32.xlu1 %v5479_v49, %s4857_s15  ;;  %1303 = vrot.lane.b32.xlu0 %v5477_v28, %s4857_s15  ;;  %s7682_s15 = smov 31  }
 0x5ac   : > { %v5513_v1 = vpop.permute.xlu1 %2158  ;;  %v5515_v10 = vpop.permute.xlu0 %2156 }
 0x5ad   : > { %7663 = vst [vmem:[#allocation35_spill] sm:$0xff] %v5513_v1  ;;  %7664 = vst [vmem:[#allocation36_spill] sm:$0xff] %v5515_v10 }
 0x5ae   : > { %1352 = vrot.lane.b32.xlu1 %v5479_v49, %s4858_s17  ;;  %1350 = vrot.lane.b32.xlu0 %v5477_v28, %s4858_s17  ;;  %s7685_s17 = smov 30  }
 0x5b0   : > { %v5521_v15 = vpop.permute.xlu1 %2205  ;;  %v5523_v18 = vpop.permute.xlu0 %2203 }
 0x5b1   : > { %7665 = vst [vmem:[#allocation37_spill] sm:$0xff] %v5521_v15  ;;  %7666 = vst [vmem:[#allocation38_spill] sm:$0xff] %v5523_v18 }
 0x5b2   : > { %1399 = vrot.lane.b32.xlu1 %v5479_v49, %s4859_s16  ;;  %1397 = vrot.lane.b32.xlu0 %v5477_v28, %s4859_s16  ;;  %s7688_s16 = smov 29  }
 0x5b4   : > { %v5529_v19 = vpop.permute.xlu1 %2252  ;;  %v5531_v8 = vpop.permute.xlu0 %2250 }
 0x5b5   : > { %7667 = vst [vmem:[#allocation39_spill] sm:$0xff] %v5529_v19  ;;  %7668 = vst [vmem:[#allocation40_spill] sm:$0xff] %v5531_v8  ;;  %v4403_v19 = vld [vmem:[%s7471_s3 + $0x1] ss:$8 sm:$0x3] }
 0x5b6   : > { %1446 = vrot.lane.b32.xlu1 %v5479_v49, %s4860_s20  ;;  %1444 = vrot.lane.b32.xlu0 %v5477_v28, %s4860_s20  ;;  %s7691_s20 = smov 19  }
 0x5b8   : > { %v5537_v22 = vpop.permute.xlu1 %2333  ;;  %v5539_v24 = vpop.permute.xlu0 %2331 }
 0x5b9   : > { %7669 = vst [vmem:[#allocation41_spill] sm:$0xff] %v5537_v22  ;;  %7670 = vst [vmem:[#allocation42_spill] sm:$0xff] %v5539_v24  ;;  %v5726_v24 = vld [vmem:[#allocation6 + $0x2] ss:$8 sm:$0x3] }
 0x5ba   : > { %1493 = vrot.lane.b32.xlu1 %v5479_v49, %s4861_s23  ;;  %1491 = vrot.lane.b32.xlu0 %v5477_v28, %s4861_s23  ;;  %s7694_s23 = smov 18  }
 0x5bc   : > { %v5545_v25 = vpop.permute.xlu1 %2380  ;;  %v5547_v0 = vpop.permute.xlu0 %2378 }
 0x5bd   : > { %7671 = vst [vmem:[#allocation43_spill] sm:$0xff] %v5545_v25  ;;  %7672 = vst [vmem:[#allocation44_spill] sm:$0xff] %v5547_v0 }
 0x5be   : > { %1540 = vrot.lane.b32.xlu1 %v5479_v49, %s7673_s30  ;;  %1538 = vrot.lane.b32.xlu0 %v5477_v28, %s7673_s30  ;;  %s7697_s30 = smov 17  }
 0x5c0   : > { %v5553_v12 = vpop.permute.xlu1 %2427  ;;  %v5555_v11 = vpop.permute.xlu0 %2425 }
 0x5c1   : > { %7674 = vst [vmem:[#allocation45_spill] sm:$0xff] %v5553_v12  ;;  %7675 = vst [vmem:[#allocation46_spill] sm:$0xff] %v5555_v11 }
 0x5c2   : > { %1587 = vrot.lane.b32.xlu1 %v5479_v49, %s7676_s21  ;;  %1585 = vrot.lane.b32.xlu0 %v5477_v28, %s7676_s21  ;;  %s7700_s21 = smov 16  }
 0x5c4   : > { %v5561_v9 = vpop.permute.xlu1 %2474  ;;  %v5563_v7 = vpop.permute.xlu0 %2472 }
 0x5c5   : > { %7677 = vst [vmem:[#allocation47_spill] sm:$0xff] %v5561_v9  ;;  %7678 = vst [vmem:[#allocation48_spill] sm:$0xff] %v5563_v7 }
 0x5c6   : > { %1634 = vrot.lane.b32.xlu1 %v5479_v49, %s7679_s24  ;;  %1632 = vrot.lane.b32.xlu0 %v5477_v28, %s7679_s24  ;;  %s7703_s24 = smov 15  }
 0x5c8   : > { %v5569_v14 = vpop.permute.xlu1 %2521  ;;  %v5571_v13 = vpop.permute.xlu0 %2519 }
 0x5c9   : > { %7680 = vst [vmem:[#allocation49_spill] sm:$0xff] %v5569_v14  ;;  %7681 = vst [vmem:[#allocation50_spill] sm:$0xff] %v5571_v13 }
 0x5ca   : > { %1681 = vrot.lane.b32.xlu1 %v5479_v49, %s7682_s15  ;;  %1679 = vrot.lane.b32.xlu0 %v5477_v28, %s7682_s15  ;;  %s7706_s15 = smov 14  }
 0x5cc   : > { %v5577_v5 = vpop.permute.xlu1 %2568  ;;  %v5579_v4 = vpop.permute.xlu0 %2566 }
 0x5cd   : > { %7683 = vst [vmem:[#allocation51_spill] sm:$0xff] %v5577_v5  ;;  %7684 = vst [vmem:[#allocation52_spill] sm:$0xff] %v5579_v4 }
 0x5ce   : > { %1728 = vrot.lane.b32.xlu1 %v5479_v49, %s7685_s17  ;;  %1726 = vrot.lane.b32.xlu0 %v5477_v28, %s7685_s17  ;;  %s7709_s17 = smov 13  }
 0x5d0   : > { %v5585_v7 = vpop.permute.xlu1 %2615  ;;  %v5587_v14 = vpop.permute.xlu0 %2613 }
 0x5d1   : > { %7686 = vst [vmem:[#allocation53_spill] sm:$0xff] %v5585_v7  ;;  %7687 = vst [vmem:[#allocation54_spill] sm:$0xff] %v5587_v14 }
 0x5d2   : > { %1775 = vrot.lane.b32.xlu1 %v5479_v49, %s7688_s16  ;;  %1773 = vrot.lane.b32.xlu0 %v5477_v28, %s7688_s16  ;;  %s7712_s16 = smov 3  }
 0x5d4   : > { %v5593_v13 = vpop.permute.xlu1 %2662  ;;  %v5595_v5 = vpop.permute.xlu0 %2660 }
 0x5d5   : > { %7689 = vst [vmem:[#allocation55_spill] sm:$0xff] %v5593_v13  ;;  %7690 = vst [vmem:[#allocation56_spill] sm:$0xff] %v5595_v5 }
 0x5d6   : > { %1822 = vrot.lane.b32.xlu1 %v5479_v49, %s7691_s20  ;;  %1820 = vrot.lane.b32.xlu0 %v5477_v28, %s7691_s20  ;;  %s7715_s20 = smov 2  }
 0x5d8   : > { %v5601_v4 = vpop.permute.xlu1 %2709  ;;  %v5603_v7 = vpop.permute.xlu0 %2707 }
 0x5d9   : > { %7692 = vst [vmem:[#allocation57_spill] sm:$0xff] %v5601_v4  ;;  %7693 = vst [vmem:[#allocation58_spill] sm:$0xff] %v5603_v7 }
 0x5da   : > { %1869 = vrot.lane.b32.xlu1 %v5479_v49, %s7694_s23  ;;  %1867 = vrot.lane.b32.xlu0 %v5477_v28, %s7694_s23  ;;  %s7718_s23 = smov 1  }
 0x5dc   : > { %v5609_v14 = vpop.permute.xlu1 %2756  ;;  %v5611_v13 = vpop.permute.xlu0 %2754 }
 0x5dd   : > { %7695 = vst [vmem:[#allocation59_spill] sm:$0xff] %v5609_v14  ;;  %7696 = vst [vmem:[#allocation60_spill] sm:$0xff] %v5611_v13 }
 0x5de   : > { %1916 = vrot.lane.b32.xlu1 %v5479_v49, %s7697_s30  ;;  %1914 = vrot.lane.b32.xlu0 %v5477_v28, %s7697_s30 }
 0x5e0   : > { %v5617_v5 = vpop.permute.xlu1 %2803  ;;  %v5619_v4 = vpop.permute.xlu0 %2801 }
 0x5e1   : > { %7698 = vst [vmem:[#allocation61_spill] sm:$0xff] %v5617_v5  ;;  %7699 = vst [vmem:[#allocation62_spill] sm:$0xff] %v5619_v4 }
 0x5e2   : > { %1963 = vrot.lane.b32.xlu1 %v5479_v49, %s7700_s21  ;;  %1961 = vrot.lane.b32.xlu0 %v5477_v28, %s7700_s21 }
 0x5e4   : > { %v5625_v7 = vpop.permute.xlu1 %2850  ;;  %v5627_v14 = vpop.permute.xlu0 %2848 }
 0x5e5   : > { %7701 = vst [vmem:[#allocation63_spill] sm:$0xff] %v5625_v7  ;;  %7702 = vst [vmem:[#allocation64_spill] sm:$0xff] %v5627_v14 }
 0x5e6   : > { %2010 = vrot.lane.b32.xlu1 %v5479_v49, %s7703_s24  ;;  %2008 = vrot.lane.b32.xlu0 %v5477_v28, %s7703_s24 }
 0x5e8   : > { %v5633_v13 = vpop.permute.xlu1 %2897  ;;  %v5635_v5 = vpop.permute.xlu0 %2895 }
 0x5e9   : > { %7704 = vst [vmem:[#allocation65_spill] sm:$0xff] %v5633_v13  ;;  %7705 = vst [vmem:[#allocation66_spill] sm:$0xff] %v5635_v5 }
 0x5ea   : > { %2057 = vrot.lane.b32.xlu1 %v5479_v49, %s7706_s15  ;;  %2055 = vrot.lane.b32.xlu0 %v5477_v28, %s7706_s15  ;;  %s7603_s15 = smov 78  }
 0x5ec   : > { %v5641_v4 = vpop.permute.xlu1 %2944  ;;  %v5643_v7 = vpop.permute.xlu0 %2942 }
 0x5ed   : > { %7707 = vst [vmem:[#allocation67_spill] sm:$0xff] %v5641_v4  ;;  %7708 = vst [vmem:[#allocation68_spill] sm:$0xff] %v5643_v7 }
 0x5ee   : > { %2104 = vrot.lane.b32.xlu1 %v5479_v49, %s7709_s17  ;;  %2102 = vrot.lane.b32.xlu0 %v5477_v28, %s7709_s17  ;;  %s7723_s17 = smov 127  }
 0x5f0   : > { %v5649_v14 = vpop.permute.xlu1 %2991  ;;  %v5651_v13 = vpop.permute.xlu0 %2989 }
 0x5f1   : > { %7710 = vst [vmem:[#allocation69_spill] sm:$0xff] %v5649_v14  ;;  %7711 = vst [vmem:[#allocation70_spill] sm:$0xff] %v5651_v13 }
 0x5f2   : > { %2151 = vrot.lane.b32.xlu1 %v5479_v49, %s7712_s16  ;;  %2149 = vrot.lane.b32.xlu0 %v5477_v28, %s7712_s16  ;;  %s7726_s16 = smov 126  }
 0x5f4   : > { %v5657_v5 = vpop.permute.xlu1 %3038  ;;  %v5659_v4 = vpop.permute.xlu0 %3036 }
 0x5f5   : > { %7713 = vst [vmem:[#allocation71_spill] sm:$0xff] %v5657_v5  ;;  %7714 = vst [vmem:[#allocation72_spill] sm:$0xff] %v5659_v4  ;;  %v1166_v4 = vlaneseq }
 0x5f6   : > { %2198 = vrot.lane.b32.xlu1 %v5479_v49, %s7715_s20  ;;  %2196 = vrot.lane.b32.xlu0 %v5477_v28, %s7715_s20  ;;  %s7737_s20 = smov 111  }
 0x5f7   : > { %v1180_v9 = vshrl.u32 %v1166_v4, 7  ;;  %v5701_v11 = vand.u32 127, %v1166_v4  ;;  %v5719_v4 = vld [vmem:[%s7471_s3 + $0x30] ss:$8 sm:$0x3] }
 0x5f8   : > { %v5665_v7 = vpop.permute.xlu1 %3085  ;;  %v5667_v14 = vpop.permute.xlu0 %3083  ;;  %7730 = vst [vmem:[#allocation84_spill] sm:$0xff] %v5719_v4  ;;  %v5756_v4 = vld [vmem:[#allocation6 + $0x3] ss:$8 sm:$0x3] }
 0x5f9   : > { %7716 = vst [vmem:[#allocation73_spill] sm:$0xff] %v5665_v7  ;;  %7717 = vst [vmem:[#allocation74_spill] sm:$0xff] %v5667_v14  ;;  %v5703_v12 = vsub.s32 0, %v1180_v9  ;;  %v5705_v0 = vsub.s32 1, %v1180_v9  ;;  %vm1168_vm7 = vcmp.lt.s32.totalorder %v5701_v11, 51  ;;  %vm1213_vm8 = vcmp.lt.s32.totalorder %v5701_v11, 50 }
 0x5fa   : > { %2245 = vrot.lane.b32.xlu1 %v5479_v49, %s7718_s23  ;;  %2243 = vrot.lane.b32.xlu0 %v5477_v28, %s7718_s23  ;;  %v1240_v9 = vld [vmem:[#allocation6 + $0x1] ss:$8 sm:$0x3]  ;;  %vm1260_vm9 = vcmp.lt.s32.totalorder %v5701_v11, 49  ;;  %vm1307_vm10 = vcmp.lt.s32.totalorder %v5701_v11, 48  ;;  %vm1354_vm11 = vcmp.lt.s32.totalorder %v5701_v11, 47 }
 0x5fb   : > { %v1249_v15 = vrot.slane %v1240_v9, %v5705_v0  ;;  %v1292_v10 = vrot.slane %v5726_v24, %v5703_v12  ;;  %v1296_v22 = vrot.slane %v5726_v24, %v5705_v0  ;;  %v1228_v63 = vrot.slane %v4403_v19, %v5703_v12  ;;  %v4404_v24 = vld [vmem:[%s7471_s3 + $0x2] ss:$8 sm:$0x3] }
 0x5fc   : > { %v5673_v13 = vpop.permute.xlu1 %3132  ;;  %v5675_v5 = vpop.permute.xlu0 %3130  ;;  %vm1401_vm12 = vcmp.lt.s32.totalorder %v5701_v11, 46  ;;  %vm1448_vm13 = vcmp.lt.s32.totalorder %v5701_v11, 45  ;;  %vm1495_vm14 = vcmp.lt.s32.totalorder %v5701_v11, 35  ;;  %vm1542_vm15 = vcmp.lt.s32.totalorder %v5701_v11, 34 }
 0x5fd   : > { %7719 = vst [vmem:[#allocation75_spill] sm:$0xff] %v5673_v13  ;;  %7720 = vst [vmem:[#allocation76_spill] sm:$0xff] %v5675_v5  ;;  %vm1589_vm0 = vcmp.lt.s32.totalorder %v5701_v11, 33  ;;  %vm1636_vm1 = vcmp.lt.s32.totalorder %v5701_v11, 32  ;;  %vm1683_vm2 = vcmp.lt.s32.totalorder %v5701_v11, 31  ;;  %vm1730_vm3 = vcmp.lt.s32.totalorder %v5701_v11, 30 }
 0x5fe   : > { %3367 = vrot.lane.b32.xlu1 %v5215_v30, %s7603_s15  ;;  %3365 = vrot.lane.b32.xlu0 %v5213_v29, %s7603_s15  ;;  %v1175_v29 = vsel %vm1168_vm7, %v5335_v32, %v5333_v31  ;;  %vm1777_vm5 = vcmp.lt.s32.totalorder %v5701_v11, 29  ;;  %s7747_s15 = smov 95   ;;  %vm1824_vm6 = vcmp.lt.s32.totalorder %v5701_v11, 19 }
 0x600   : > { %v5681_v7 = vpop.permute.xlu1 %3179  ;;  %v5683_v14 = vpop.permute.xlu0 %3177 }
 0x601   : > { %7721 = vst [vmem:[#allocation77_spill] sm:$0xff] %v5681_v7  ;;  %7722 = vst [vmem:[#allocation78_spill] sm:$0xff] %v5683_v14 }
 0x602   : > { %2326 = vrot.lane.b32.xlu1 %v5479_v49, %s7723_s17  ;;  %2324 = vrot.lane.b32.xlu0 %v5477_v28, %s7723_s17 }
 0x604   : > { %v5689_v13 = vpop.permute.xlu1 %3226  ;;  %v5691_v5 = vpop.permute.xlu0 %3224 }
 0x605   : > { %7724 = vst [vmem:[#allocation79_spill] sm:$0xff] %v5689_v13  ;;  %7725 = vst [vmem:[#allocation80_spill] sm:$0xff] %v5691_v5  ;;  %v5711_v5 = vld [vmem:[#allocation6 + $0x30] ss:$8 sm:$0x3] }
 0x606   : > { %2373 = vrot.lane.b32.xlu1 %v5479_v49, %s7726_s16  ;;  %2371 = vrot.lane.b32.xlu0 %v5477_v28, %s7726_s16  ;;  %7729 = vst [vmem:[#allocation83_spill] sm:$0xff] %v5711_v5  ;;  %v1245_v5 = vrot.slane %v1240_v9, %v5703_v12  ;;  %s7736_s16 = smov 112  }
 0x608   : > { %v5697_v7 = vpop.permute.xlu1 %3273  ;;  %v5699_v14 = vpop.permute.xlu0 %3271 }
 0x609   : > { %7727 = vst [vmem:[#allocation81_spill] sm:$0xff] %v5697_v7  ;;  %7728 = vst [vmem:[#allocation82_spill] sm:$0xff] %v5699_v14  ;;  %v1177_v7 = vld [vmem:[%s7471_s3] ss:$8 sm:$0x3] }
 0x60a   : > { %2420 = vrot.lane.b32.xlu1 %v5479_v49, %s4880_s22  ;;  %2418 = vrot.lane.b32.xlu0 %v5477_v28, %s4880_s22  ;;  %v1193_v14 = vld [vmem:[#allocation6] ss:$8 sm:$0x3]  ;;  %s7733_s22 = smov 115  }
 0x60b   : > { %v1198_v18 = vrot.slane %v1193_v14, %v5703_v12  ;;  %v1202_v8 = vrot.slane %v1193_v14, %v5705_v0 }
 0x60c   : > { %v5721_v13 = vpop.permute.xlu1 %3320  ;;  %v5723_v25 = vpop.permute.xlu0 %3318 }
 0x60d   : > { %7731 = vst [vmem:[#allocation85_spill] sm:$0xff] %v5721_v13  ;;  %7732 = vst [vmem:[#allocation86_spill] sm:$0xff] %v5723_v25  ;;  %v1182_v13 = vrot.slane %v1177_v7, %v5703_v12  ;;  %v1186_v25 = vrot.slane %v1177_v7, %v5705_v0  ;;  %v1176_v7 = vsel %vm1168_vm7, %v5333_v31, %v5335_v32 }
 0x60e   : > { %2467 = vrot.lane.b32.xlu1 %v5479_v49, %s7733_s22  ;;  %2465 = vrot.lane.b32.xlu0 %v5477_v28, %s7733_s22  ;;  %s7734_s22 = smov 114   ;;  %v1232_v31 = vrot.slane %v4403_v19, %v5705_v0  ;;  %v1205_v32 = vmul.f32 %v1198_v18, %v1176_v7  ;;  %v1206_v56 = vmul.f32 %v1202_v8, %v1175_v29  ;;  %v5789_v18 = vld [vmem:[#allocation6 + $0x4] ss:$8 sm:$0x3] }
 0x60f   : > { %v1275_v7 = vrot.slane %v4404_v24, %v5703_v12 }
 0x610   : > { %v1165_v14 = vpop.permute.xlu1 %1164  ;;  %v1163_v1 = vpop.permute.xlu0 %1162 }
 0x611   : > { %v1169_v30 = vsel %vm1168_vm7, %v1163_v1, %v1165_v14  ;;  %v1170_v9 = vsel %vm1168_vm7, %v1165_v14, %v1163_v1  ;;  %v1279_v14 = vrot.slane %v4404_v24, %v5705_v0  ;;  %vm1871_vm7 = vcmp.lt.s32.totalorder %v5701_v11, 18 }
 0x612   : > { %v1189_v60 = vmul.f32 %v1182_v13, %v1170_v9  ;;  %v1190_v59 = vmul.f32 %v1186_v25, %v1169_v30  ;;  %2514 = vrot.lane.b32.xlu1 %v5479_v49, %s7734_s22  ;;  %2512 = vrot.lane.b32.xlu0 %v5477_v28, %s7734_s22  ;;  %v1220_v13 = vsel %vm1213_vm8, %v5343_v34, %v5341_v33  ;;  %s7740_s22 = smov 110  }
 0x613   : > { %v1221_v30 = vsel %vm1213_vm8, %v5341_v33, %v5343_v34  ;;  %v4405_v34 = vld [vmem:[%s7471_s3 + $0x3] ss:$8 sm:$0x3] }
 0x614   : > { %v1212_v19 = vpop.permute.xlu1 %1211  ;;  %v1210_v25 = vpop.permute.xlu0 %1209  ;;  %v1207_v9 = vadd.f32 %v1205_v32, %v1189_v60  ;;  %v1208_v1 = vadd.f32 %v1206_v56, %v1190_v59  ;;  %v1252_v60 = vmul.f32 %v1245_v5, %v1221_v30  ;;  %v1253_v32 = vmul.f32 %v1249_v15, %v1220_v13 }
 0x615   : > { %v1214_v29 = vsel %vm1213_vm8, %v1210_v25, %v1212_v19  ;;  %v1215_v8 = vsel %vm1213_vm8, %v1212_v19, %v1210_v25  ;;  %v1267_v59 = vsel %vm1260_vm9, %v5351_v36, %v5349_v35  ;;  %vm1918_vm8 = vcmp.lt.s32.totalorder %v5701_v11, 17 }
 0x616   : > { %v1235_v55 = vmul.f32 %v1228_v63, %v1215_v8  ;;  %v1236_v33 = vmul.f32 %v1232_v31, %v1214_v29  ;;  %2561 = vrot.lane.b32.xlu1 %v5479_v49, %s7735_s14  ;;  %2559 = vrot.lane.b32.xlu0 %v5477_v28, %s7735_s14  ;;  %v1268_v63 = vsel %vm1260_vm9, %v5349_v35, %v5351_v36  ;;  %v5817_v31 = vld [vmem:[#allocation6 + $0x5] ss:$8 sm:$0x3] }
 0x617   : > { %v1322_v29 = vrot.slane %v4405_v34, %v5703_v12  ;;  %v1326_v8 = vrot.slane %v4405_v34, %v5705_v0 }
 0x618   : > { %v1237_v5 = vadd.f32 %v1235_v55, %v1207_v9  ;;  %v1238_v15 = vadd.f32 %v1236_v33, %v1208_v1  ;;  %v1259_v13 = vpop.permute.xlu1 %1258  ;;  %v1257_v30 = vpop.permute.xlu0 %1256  ;;  %v4406_v55 = vld [vmem:[%s7471_s3 + $0x4] ss:$8 sm:$0x3]  ;;  %v1299_v1 = vmul.f32 %v1292_v10, %v1268_v63  ;;  %v1300_v9 = vmul.f32 %v1296_v22, %v1267_v59  ;;  %v5845_v22 = vld [vmem:[#allocation6 + $0x6] ss:$8 sm:$0x3] }
 0x619   : > { %v1261_v19 = vsel %vm1260_vm9, %v1257_v30, %v1259_v13  ;;  %v1262_v25 = vsel %vm1260_vm9, %v1259_v13, %v1257_v30  ;;  %v1433_v33 = vrot.slane %v5817_v31, %v5703_v12  ;;  %v1437_v13 = vrot.slane %v5817_v31, %v5705_v0 }
 0x61a   : > { %v1254_v56 = vadd.f32 %v1252_v60, %v1237_v5  ;;  %v1255_v35 = vadd.f32 %v1253_v32, %v1238_v15  ;;  %v1282_v36 = vmul.f32 %v1275_v7, %v1262_v25  ;;  %v1283_v24 = vmul.f32 %v1279_v14, %v1261_v19  ;;  %2608 = vrot.lane.b32.xlu1 %v5479_v49, %s7736_s16 }
 0x61b   : > { %2606 = vrot.lane.b32.xlu0 %v5477_v28, %s7736_s16  ;;  %v1314_v14 = vsel %vm1307_vm10, %v5359_v38, %v5357_v37  ;;  %v1315_v10 = vsel %vm1307_vm10, %v5357_v37, %v5359_v38  ;;  %v1369_v5 = vrot.slane %v4406_v55, %v5703_v12  ;;  %v1373_v15 = vrot.slane %v4406_v55, %v5705_v0 }
 0x61c   : > { %v1284_v7 = vadd.f32 %v1282_v36, %v1254_v56  ;;  %v1285_v34 = vadd.f32 %v1283_v24, %v1255_v35  ;;  %v1306_v60 = vpop.permute.xlu1 %1305  ;;  %v1304_v32 = vpop.permute.xlu0 %1303  ;;  %v4407_v24 = vld [vmem:[%s7471_s3 + $0x5] ss:$8 sm:$0x3]  ;;  %v7738_v56 = vrot.slane %v5756_v4, %v5703_v12  ;;  %v7739_v35 = vrot.slane %v5756_v4, %v5705_v0 }
 0x61d   : > { %v1308_v59 = vsel %vm1307_vm10, %v1304_v32, %v1306_v60  ;;  %v1309_v63 = vsel %vm1307_vm10, %v1306_v60, %v1304_v32  ;;  %v1480_v55 = vrot.slane %v5845_v22, %v5703_v12  ;;  %v1362_v4 = vsel %vm1354_vm11, %v5365_v39, %v5367_v40 }
 0x61e   : > { %v1301_v30 = vadd.f32 %v1299_v1, %v1284_v7  ;;  %v1302_v37 = vadd.f32 %v1300_v9, %v1285_v34  ;;  %v1329_v38 = vmul.f32 %v1322_v29, %v1309_v63  ;;  %v1330_v19 = vmul.f32 %v1326_v8, %v1308_v59  ;;  %2655 = vrot.lane.b32.xlu1 %v5479_v49, %s7737_s20  ;;  %v5879_v1 = vld [vmem:[#allocation6 + $0x7] ss:$8 sm:$0x3] }
 0x61f   : > { %v1346_v25 = vmul.f32 %v7738_v56, %v1315_v10  ;;  %v1347_v36 = vmul.f32 %v7739_v35, %v1314_v14  ;;  %v1484_v29 = vrot.slane %v5845_v22, %v5705_v0  ;;  %2653 = vrot.lane.b32.xlu0 %v5477_v28, %s7737_s20  ;;  %v1361_v8 = vsel %vm1354_vm11, %v5367_v40, %v5365_v39 }
 0x620   : > { %v1331_v9 = vadd.f32 %v1329_v38, %v1301_v30  ;;  %v1332_v14 = vadd.f32 %v1330_v19, %v1302_v37  ;;  %v1353_v10 = vpop.permute.xlu1 %1352  ;;  %v1351_v7 = vpop.permute.xlu0 %1350  ;;  %v1416_v32 = vrot.slane %v4407_v24, %v5703_v12  ;;  %v1420_v59 = vrot.slane %v4407_v24, %v5705_v0  ;;  %v4408_v30 = vld [vmem:[%s7471_s3 + $0x6] ss:$8 sm:$0x3] }
 0x621   : > { %v1355_v34 = vsel %vm1354_vm11, %v1351_v7, %v1353_v10  ;;  %v1356_v60 = vsel %vm1354_vm11, %v1353_v10, %v1351_v7  ;;  %v7741_v37 = vrot.slane %v5789_v18, %v5703_v12  ;;  %v7742_v19 = vrot.slane %v5789_v18, %v5705_v0 }
 0x622   : > { %v1348_v63 = vadd.f32 %v1346_v25, %v1331_v9  ;;  %v1349_v39 = vadd.f32 %v1347_v36, %v1332_v14  ;;  %v1376_v40 = vmul.f32 %v1369_v5, %v1356_v60  ;;  %v1377_v56 = vmul.f32 %v1373_v15, %v1355_v34  ;;  %2702 = vrot.lane.b32.xlu1 %v5479_v49, %s7740_s22  ;;  %v5913_v25 = vld [vmem:[#allocation6 + $0x10] ss:$8 sm:$0x3] }
 0x623   : > { %v1393_v38 = vmul.f32 %v7741_v37, %v1362_v4  ;;  %v1394_v35 = vmul.f32 %v7742_v19, %v1361_v8  ;;  %v1527_v24 = vrot.slane %v5879_v1, %v5703_v12  ;;  %v1531_v5 = vrot.slane %v5879_v1, %v5705_v0  ;;  %2700 = vrot.lane.b32.xlu0 %v5477_v28, %s7740_s22  ;;  %s7745_s22 = smov 97  }
 0x624   : > { %v1408_v15 = vsel %vm1401_vm12, %v5375_v42, %v5373_v41  ;;  %v1409_v18 = vsel %vm1401_vm12, %v5373_v41, %v5375_v42  ;;  %v1378_v36 = vadd.f32 %v1376_v40, %v1348_v63  ;;  %v1379_v8 = vadd.f32 %v1377_v56, %v1349_v39  ;;  %v1400_v4 = vpop.permute.xlu1 %1399  ;;  %v1398_v9 = vpop.permute.xlu0 %1397  ;;  %v4409_v63 = vld [vmem:[%s7471_s3 + $0x7] ss:$8 sm:$0x3] }
 0x625   : > { %v1402_v14 = vsel %vm1401_vm12, %v1398_v9, %v1400_v4  ;;  %v1403_v10 = vsel %vm1401_vm12, %v1400_v4, %v1398_v9  ;;  %v1463_v7 = vrot.slane %v4408_v30, %v5703_v12  ;;  %v1467_v34 = vrot.slane %v4408_v30, %v5705_v0  ;;  %v4410_v9 = vld [vmem:[%s7471_s3 + $0x10] ss:$8 sm:$0x3] }
 0x626   : > { %v1395_v60 = vadd.f32 %v1393_v38, %v1378_v36  ;;  %v1396_v41 = vadd.f32 %v1394_v35, %v1379_v8  ;;  %v1423_v42 = vmul.f32 %v1416_v32, %v1403_v10  ;;  %v1424_v37 = vmul.f32 %v1420_v59, %v1402_v14  ;;  %2749 = vrot.lane.b32.xlu1 %v5479_v49, %s7743_s19 }
 0x627   : > { %v1440_v39 = vmul.f32 %v1433_v33, %v1409_v18  ;;  %v1441_v40 = vmul.f32 %v1437_v13, %v1408_v15  ;;  %v1574_v56 = vrot.slane %v5913_v25, %v5703_v12  ;;  %v1578_v32 = vrot.slane %v5913_v25, %v5705_v0  ;;  %2747 = vrot.lane.b32.xlu0 %v5477_v28, %s7743_s19  ;;  %v5947_v33 = vld [vmem:[#allocation6 + $0x11] ss:$8 sm:$0x3]  ;;  %s7746_s19 = smov 96  }
 0x628   : > { %v1455_v59 = vsel %vm1448_vm13, %v5383_v44, %v5381_v43  ;;  %v1456_v31 = vsel %vm1448_vm13, %v5381_v43, %v5383_v44  ;;  %v1425_v13 = vadd.f32 %v1423_v42, %v1395_v60  ;;  %v1426_v30 = vadd.f32 %v1424_v37, %v1396_v41  ;;  %v1447_v38 = vpop.permute.xlu1 %1446  ;;  %v1445_v19 = vpop.permute.xlu0 %1444 }
 0x629   : > { %v1449_v35 = vsel %vm1448_vm13, %v1445_v19, %v1447_v38  ;;  %v1450_v15 = vsel %vm1448_vm13, %v1447_v38, %v1445_v19  ;;  %v1510_v18 = vrot.slane %v4409_v63, %v5703_v12  ;;  %v1514_v36 = vrot.slane %v4409_v63, %v5705_v0 }
 0x62a   : > { %v1442_v8 = vadd.f32 %v1440_v39, %v1425_v13  ;;  %v1443_v43 = vadd.f32 %v1441_v40, %v1426_v30  ;;  %v1470_v44 = vmul.f32 %v1463_v7, %v1450_v15  ;;  %v1471_v4 = vmul.f32 %v1467_v34, %v1449_v35  ;;  %2796 = vrot.lane.b32.xlu1 %v5479_v49, %s4888_s27  ;;  %v4411_v30 = vld [vmem:[%s7471_s3 + $0x11] ss:$8 sm:$0x3] }
 0x62b   : > { %v1487_v14 = vmul.f32 %v1480_v55, %v1456_v31  ;;  %v1488_v10 = vmul.f32 %v1484_v29, %v1455_v59  ;;  %v1621_v60 = vrot.slane %v5947_v33, %v5703_v12  ;;  %v1625_v7 = vrot.slane %v5947_v33, %v5705_v0  ;;  %2794 = vrot.lane.b32.xlu0 %v5477_v28, %s4888_s27  ;;  %v5981_v55 = vld [vmem:[#allocation6 + $0x12] ss:$8 sm:$0x3]  ;;  %s7744_s27 = smov 98  }
 0x62c   : > { %v1502_v34 = vsel %vm1495_vm14, %v5391_v46, %v5389_v45  ;;  %v1503_v22 = vsel %vm1495_vm14, %v5389_v45, %v5391_v46  ;;  %v1472_v29 = vadd.f32 %v1470_v44, %v1442_v8  ;;  %v1473_v41 = vadd.f32 %v1471_v4, %v1443_v43  ;;  %v1494_v42 = vpop.permute.xlu1 %1493  ;;  %v1492_v37 = vpop.permute.xlu0 %1491 }
 0x62d   : > { %v1496_v63 = vsel %vm1495_vm14, %v1492_v37, %v1494_v42  ;;  %v1497_v39 = vsel %vm1495_vm14, %v1494_v42, %v1492_v37  ;;  %v1557_v40 = vrot.slane %v4410_v9, %v5703_v12  ;;  %v1561_v59 = vrot.slane %v4410_v9, %v5705_v0 }
 0x62e   : > { %v1489_v31 = vadd.f32 %v1487_v14, %v1472_v29  ;;  %v1490_v45 = vadd.f32 %v1488_v10, %v1473_v41  ;;  %v1517_v46 = vmul.f32 %v1510_v18, %v1497_v39  ;;  %v1518_v13 = vmul.f32 %v1514_v36, %v1496_v63  ;;  %2843 = vrot.lane.b32.xlu1 %v5479_v49, %s7744_s27 }
 0x62f   : > { %v1534_v38 = vmul.f32 %v1527_v24, %v1503_v22  ;;  %v1535_v19 = vmul.f32 %v1531_v5, %v1502_v34  ;;  %v1668_v35 = vrot.slane %v5981_v55, %v5703_v12  ;;  %v1672_v15 = vrot.slane %v5981_v55, %v5705_v0  ;;  %2841 = vrot.lane.b32.xlu0 %v5477_v28, %s7744_s27  ;;  %v6015_v24 = vld [vmem:[#allocation6 + $0x13] ss:$8 sm:$0x3]  ;;  %v4412_v22 = vld [vmem:[%s7471_s3 + $0x12] ss:$8 sm:$0x3] }
 0x630   : > { %v1549_v18 = vsel %vm1542_vm15, %v5399_v48, %v5397_v47  ;;  %v1550_v1 = vsel %vm1542_vm15, %v5397_v47, %v5399_v48  ;;  %v1519_v5 = vadd.f32 %v1517_v46, %v1489_v31  ;;  %v1520_v36 = vadd.f32 %v1518_v13, %v1490_v45  ;;  %v1541_v8 = vpop.permute.xlu1 %1540  ;;  %v1539_v43 = vpop.permute.xlu0 %1538  ;;  %s7748_s27 = smov 94  }
 0x631   : > { %v1543_v44 = vsel %vm1542_vm15, %v1539_v43, %v1541_v8  ;;  %v1544_v4 = vsel %vm1542_vm15, %v1541_v8, %v1539_v43  ;;  %v1604_v9 = vrot.slane %v4411_v30, %v5703_v12  ;;  %v1608_v14 = vrot.slane %v4411_v30, %v5705_v0 }
 0x632   : > { %v1536_v10 = vadd.f32 %v1534_v38, %v1519_v5  ;;  %v1537_v47 = vadd.f32 %v1535_v19, %v1520_v36  ;;  %v1564_v48 = vmul.f32 %v1557_v40, %v1544_v4  ;;  %v1565_v34 = vmul.f32 %v1561_v59, %v1543_v44  ;;  %2890 = vrot.lane.b32.xlu1 %v5479_v49, %s7745_s22  ;;  %v4413_v19 = vld [vmem:[%s7471_s3 + $0x13] ss:$8 sm:$0x3] }
 0x633   : > { %v1581_v29 = vmul.f32 %v1574_v56, %v1550_v1  ;;  %v1582_v41 = vmul.f32 %v1578_v32, %v1549_v18  ;;  %v1715_v42 = vrot.slane %v6015_v24, %v5703_v12  ;;  %v1719_v37 = vrot.slane %v6015_v24, %v5705_v0  ;;  %2888 = vrot.lane.b32.xlu0 %v5477_v28, %s7745_s22  ;;  %v6049_v56 = vld [vmem:[#allocation6 + $0x14] ss:$8 sm:$0x3]  ;;  %s7749_s22 = smov 93  }
 0x634   : > { %v1596_v63 = vsel %vm1589_vm0, %v5413_v54, %v5411_v53  ;;  %v1597_v25 = vsel %vm1589_vm0, %v5411_v53, %v5413_v54  ;;  %v1566_v32 = vadd.f32 %v1564_v48, %v1536_v10  ;;  %v1567_v39 = vadd.f32 %v1565_v34, %v1537_v47  ;;  %v1588_v40 = vpop.permute.xlu1 %1587  ;;  %v1586_v59 = vpop.permute.xlu0 %1585 }
 0x635   : > { %v1590_v31 = vsel %vm1589_vm0, %v1586_v59, %v1588_v40  ;;  %v1591_v45 = vsel %vm1589_vm0, %v1588_v40, %v1586_v59  ;;  %v1651_v46 = vrot.slane %v4412_v22, %v5703_v12  ;;  %v1655_v13 = vrot.slane %v4412_v22, %v5705_v0  ;;  %v4414_v22 = vld [vmem:[%s7471_s3 + $0x14] ss:$8 sm:$0x3] }
 0x636   : > { %v1583_v30 = vadd.f32 %v1581_v29, %v1566_v32  ;;  %v1584_v53 = vadd.f32 %v1582_v41, %v1567_v39  ;;  %v1611_v54 = vmul.f32 %v1604_v9, %v1591_v45  ;;  %v1612_v38 = vmul.f32 %v1608_v14, %v1590_v31  ;;  %2937 = vrot.lane.b32.xlu1 %v5479_v49, %s7746_s19 }
 0x637   : > { %v1628_v18 = vmul.f32 %v1621_v60, %v1597_v25  ;;  %v1629_v1 = vmul.f32 %v1625_v7, %v1596_v63  ;;  %v1762_v5 = vrot.slane %v6049_v56, %v5703_v12  ;;  %v1766_v36 = vrot.slane %v6049_v56, %v5705_v0  ;;  %2935 = vrot.lane.b32.xlu0 %v5477_v28, %s7746_s19  ;;  %v6083_v60 = vld [vmem:[#allocation6 + $0x15] ss:$8 sm:$0x3]  ;;  %s7750_s19 = smov 83  }
 0x638   : > { %v1643_v8 = vsel %vm1636_vm1, %v5423_v58, %v5421_v57  ;;  %v1644_v33 = vsel %vm1636_vm1, %v5421_v57, %v5423_v58  ;;  %v1613_v7 = vadd.f32 %v1611_v54, %v1583_v30  ;;  %v1614_v43 = vadd.f32 %v1612_v38, %v1584_v53  ;;  %v1635_v44 = vpop.permute.xlu1 %1634  ;;  %v1633_v4 = vpop.permute.xlu0 %1632  ;;  %v4415_v54 = vld [vmem:[%s7471_s3 + $0x15] ss:$8 sm:$0x3] }
 0x639   : > { %v1637_v9 = vsel %vm1636_vm1, %v1633_v4, %v1635_v44  ;;  %v1638_v14 = vsel %vm1636_vm1, %v1635_v44, %v1633_v4  ;;  %v1698_v10 = vrot.slane %v4413_v19, %v5703_v12  ;;  %v1702_v47 = vrot.slane %v4413_v19, %v5705_v0 }
 0x63a   : > { %v1630_v48 = vadd.f32 %v1628_v18, %v1613_v7  ;;  %v1631_v57 = vadd.f32 %v1629_v1, %v1614_v43  ;;  %v1658_v58 = vmul.f32 %v1651_v46, %v1638_v14  ;;  %v1659_v34 = vmul.f32 %v1655_v13, %v1637_v9  ;;  %2984 = vrot.lane.b32.xlu1 %v5479_v49, %s7747_s15 }
 0x63b   : > { %v1675_v29 = vmul.f32 %v1668_v35, %v1644_v33  ;;  %v1676_v41 = vmul.f32 %v1672_v15, %v1643_v8  ;;  %v1809_v63 = vrot.slane %v6083_v60, %v5703_v12  ;;  %v1813_v25 = vrot.slane %v6083_v60, %v5705_v0  ;;  %2982 = vrot.lane.b32.xlu0 %v5477_v28, %s7747_s15  ;;  %v6117_v35 = vld [vmem:[#allocation6 + $0x16] ss:$8 sm:$0x3]  ;;  %s7751_s15 = smov 82  }
 0x63c   : > { %v1690_v32 = vsel %vm1683_vm2, %v5431_v62, %v5429_v61  ;;  %v1691_v55 = vsel %vm1683_vm2, %v5429_v61, %v5431_v62  ;;  %v1660_v15 = vadd.f32 %v1658_v58, %v1630_v48  ;;  %v1661_v39 = vadd.f32 %v1659_v34, %v1631_v57  ;;  %v1682_v40 = vpop.permute.xlu1 %1681  ;;  %v1680_v59 = vpop.permute.xlu0 %1679  ;;  %v4416_v48 = vld [vmem:[%s7471_s3 + $0x16] ss:$8 sm:$0x3] }
 0x63d   : > { %v1684_v31 = vsel %vm1683_vm2, %v1680_v59, %v1682_v40  ;;  %v1685_v45 = vsel %vm1683_vm2, %v1682_v40, %v1680_v59  ;;  %v1745_v46 = vrot.slane %v4414_v22, %v5703_v12  ;;  %v1749_v13 = vrot.slane %v4414_v22, %v5705_v0 }
 0x63e   : > { %v1677_v30 = vadd.f32 %v1675_v29, %v1660_v15  ;;  %v1678_v61 = vadd.f32 %v1676_v41, %v1661_v39  ;;  %v1705_v62 = vmul.f32 %v1698_v10, %v1685_v45  ;;  %v1706_v53 = vmul.f32 %v1702_v47, %v1684_v31  ;;  %3031 = vrot.lane.b32.xlu1 %v5479_v49, %s7748_s27 }
 0x63f   : > { %v1722_v38 = vmul.f32 %v1715_v42, %v1691_v55  ;;  %v1723_v19 = vmul.f32 %v1719_v37, %v1690_v32  ;;  %v1856_v18 = vrot.slane %v6117_v35, %v5703_v12  ;;  %v1860_v1 = vrot.slane %v6117_v35, %v5705_v0  ;;  %3029 = vrot.lane.b32.xlu0 %v5477_v28, %s7748_s27  ;;  %v6151_v42 = vld [vmem:[#allocation6 + $0x17] ss:$8 sm:$0x3]  ;;  %s7752_s27 = smov 81  }
 0x640   : > { %v1737_v8 = vsel %vm1730_vm3, %v5439_v3, %v5437_v2  ;;  %v1738_v24 = vsel %vm1730_vm3, %v5437_v2, %v5439_v3  ;;  %v1707_v37 = vadd.f32 %v1705_v62, %v1677_v30  ;;  %v1708_v33 = vadd.f32 %v1706_v53, %v1678_v61  ;;  %v1729_v7 = vpop.permute.xlu1 %1728  ;;  %v1727_v43 = vpop.permute.xlu0 %1726 }
 0x641   : > { %v1731_v44 = vsel %vm1730_vm3, %v1727_v43, %v1729_v7  ;;  %v1732_v4 = vsel %vm1730_vm3, %v1729_v7, %v1727_v43  ;;  %v1792_v9 = vrot.slane %v4415_v54, %v5703_v12  ;;  %v1796_v14 = vrot.slane %v4415_v54, %v5705_v0 }
 0x642   : > { %v1724_v10 = vadd.f32 %v1722_v38, %v1707_v37  ;;  %v1725_v2 = vadd.f32 %v1723_v19, %v1708_v33  ;;  %v1752_v3 = vmul.f32 %v1745_v46, %v1732_v4  ;;  %v1753_v47 = vmul.f32 %v1749_v13, %v1731_v44  ;;  %3078 = vrot.lane.b32.xlu1 %v5479_v49, %s7749_s22  ;;  %v4417_v46 = vld [vmem:[%s7471_s3 + $0x17] ss:$8 sm:$0x3]  ;;  %v4418_v44 = vld [vmem:[%s7471_s3 + $0x20] ss:$8 sm:$0x3] }
 0x643   : > { %v1769_v57 = vmul.f32 %v1762_v5, %v1738_v24  ;;  %v1770_v58 = vmul.f32 %v1766_v36, %v1737_v8  ;;  %v1903_v34 = vrot.slane %v6151_v42, %v5703_v12  ;;  %v1907_v22 = vrot.slane %v6151_v42, %v5705_v0  ;;  %3076 = vrot.lane.b32.xlu0 %v5477_v28, %s7749_s22  ;;  %v6185_v5 = vld [vmem:[#allocation6 + $0x20] ss:$8 sm:$0x3]  ;;  %s7753_s22 = smov 80  }
 0x644   : > { %v1784_v29 = vsel %vm1777_vm5, %v5447_v17, %v5445_v16  ;;  %v1785_v56 = vsel %vm1777_vm5, %v5445_v16, %v5447_v17  ;;  %v1754_v36 = vadd.f32 %v1752_v3, %v1724_v10  ;;  %v1755_v41 = vadd.f32 %v1753_v47, %v1725_v2  ;;  %v1776_v32 = vpop.permute.xlu1 %1775  ;;  %v1774_v55 = vpop.permute.xlu0 %1773 }
 0x645   : > { %v1778_v15 = vsel %vm1777_vm5, %v1774_v55, %v1776_v32  ;;  %v1779_v39 = vsel %vm1777_vm5, %v1776_v32, %v1774_v55  ;;  %v1839_v40 = vrot.slane %v4416_v48, %v5703_v12  ;;  %v1843_v59 = vrot.slane %v4416_v48, %v5705_v0  ;;  %v4419_v32 = vld [vmem:[%s7471_s3 + $0x21] ss:$8 sm:$0x3] }
 0x646   : > { %v1771_v31 = vadd.f32 %v1769_v57, %v1754_v36  ;;  %v1772_v16 = vadd.f32 %v1770_v58, %v1755_v41  ;;  %v1799_v17 = vmul.f32 %v1792_v9, %v1779_v39  ;;  %v1800_v45 = vmul.f32 %v1796_v14, %v1778_v15  ;;  %3125 = vrot.lane.b32.xlu1 %v5479_v49, %s7750_s19 }
 0x647   : > { %v1816_v13 = vmul.f32 %v1809_v63, %v1785_v56  ;;  %v1817_v30 = vmul.f32 %v1813_v25, %v1784_v29  ;;  %v1950_v61 = vrot.slane %v6185_v5, %v5703_v12  ;;  %v1954_v62 = vrot.slane %v6185_v5, %v5705_v0  ;;  %3123 = vrot.lane.b32.xlu0 %v5477_v28, %s7750_s19  ;;  %v6219_v63 = vld [vmem:[#allocation6 + $0x21] ss:$8 sm:$0x3]  ;;  %s7754_s19 = smov 79  }
 0x648   : > { %v1831_v53 = vsel %vm1824_vm6, %v5455_v21, %v5453_v20  ;;  %v1832_v60 = vsel %vm1824_vm6, %v5453_v20, %v5455_v21  ;;  %v1801_v25 = vadd.f32 %v1799_v17, %v1771_v31  ;;  %v1802_v54 = vadd.f32 %v1800_v45, %v1772_v16  ;;  %v1823_v38 = vpop.permute.xlu1 %1822  ;;  %v1821_v19 = vpop.permute.xlu0 %1820 }
 0x649   : > { %vm1965_vm9 = vcmp.lt.s32.totalorder %v5701_v11, 16  ;;  %v1825_v8 = vsel %vm1824_vm6, %v1821_v19, %v1823_v38  ;;  %v1826_v24 = vsel %vm1824_vm6, %v1823_v38, %v1821_v19  ;;  %v1886_v37 = vrot.slane %v4417_v46, %v5703_v12 }
 0x64a   : > { %v1890_v33 = vrot.slane %v4417_v46, %v5705_v0  ;;  %v1818_v7 = vadd.f32 %v1816_v13, %v1801_v25  ;;  %v1819_v20 = vadd.f32 %v1817_v30, %v1802_v54  ;;  %v1846_v21 = vmul.f32 %v1839_v40, %v1826_v24  ;;  %3172 = vrot.lane.b32.xlu1 %v5479_v49, %s7751_s15  ;;  %v4420_v25 = vld [vmem:[%s7471_s3 + $0x22] ss:$8 sm:$0x3] }
 0x64b   : > { %v1847_v43 = vmul.f32 %v1843_v59, %v1825_v8  ;;  %v1863_v4 = vmul.f32 %v1856_v18, %v1832_v60  ;;  %v1864_v9 = vmul.f32 %v1860_v1, %v1831_v53  ;;  %v1997_v14 = vrot.slane %v6219_v63, %v5703_v12  ;;  %3170 = vrot.lane.b32.xlu0 %v5477_v28, %s7751_s15  ;;  %v6253_v18 = vld [vmem:[#allocation6 + $0x22] ss:$8 sm:$0x3]  ;;  %s7756_s15 = smov 78  }
 0x64c   : > { %v2001_v10 = vrot.slane %v6219_v63, %v5705_v0  ;;  %v1878_v2 = vsel %vm1871_vm7, %v5463_v6, %v5461_v23  ;;  %v1879_v35 = vsel %vm1871_vm7, %v5461_v23, %v5463_v6  ;;  %v1848_v1 = vadd.f32 %v1846_v21, %v1818_v7  ;;  %v1870_v47 = vpop.permute.xlu1 %1869  ;;  %v1868_v48 = vpop.permute.xlu0 %1867 }
 0x64d   : > { %v1849_v3 = vadd.f32 %v1847_v43, %v1819_v20  ;;  %vm2012_vm10 = vcmp.lt.s32.totalorder %v5701_v11, 15  ;;  %v1872_v57 = vsel %vm1871_vm7, %v1868_v48, %v1870_v47  ;;  %v1873_v58 = vsel %vm1871_vm7, %v1870_v47, %v1868_v48  ;;  %v7755_v47 = vld [vmem:[#allocation30_spill] sm:$0xff] }
 0x64e   : > { %v1933_v29 = vrot.slane %v4418_v44, %v5703_v12  ;;  %v1937_v56 = vrot.slane %v4418_v44, %v5705_v0  ;;  %v1865_v36 = vadd.f32 %v1863_v4, %v1848_v1  ;;  %v1893_v6 = vmul.f32 %v1886_v37, %v1873_v58  ;;  %3219 = vrot.lane.b32.xlu1 %v5479_v49, %s7752_s27 }
 0x64f   : > { %v1866_v23 = vadd.f32 %v1864_v9, %v1849_v3  ;;  %v1894_v41 = vmul.f32 %v1890_v33, %v1872_v57  ;;  %v1910_v55 = vmul.f32 %v1903_v34, %v1879_v35  ;;  %v1911_v15 = vmul.f32 %v1907_v22, %v1878_v2  ;;  %3217 = vrot.lane.b32.xlu0 %v5477_v28, %s7752_s27  ;;  %v6287_v34 = vld [vmem:[#allocation6 + $0x23] ss:$8 sm:$0x3]  ;;  %s4901_s27 = smov 77  }
 0x650   : > { %v2044_v39 = vrot.slane %v6253_v18, %v5703_v12  ;;  %v2048_v40 = vrot.slane %v6253_v18, %v5705_v0  ;;  %v1925_v59 = vsel %vm1918_vm8, %v5471_v27, %v5469_v26  ;;  %v1926_v42 = vsel %vm1918_vm8, %v5469_v26, %v5471_v27  ;;  %v1917_v16 = vpop.permute.xlu1 %1916  ;;  %v1915_v17 = vpop.permute.xlu0 %1914  ;;  %v2180_v18 = vld [vmem:[#allocation6 + $0x25] ss:$8 sm:$0x3] }
 0x651   : > { %v1895_v22 = vadd.f32 %v1893_v6, %v1865_v36  ;;  %v1896_v31 = vadd.f32 %v1894_v41, %v1866_v23  ;;  %vm2059_vm11 = vcmp.lt.s32.totalorder %v5701_v11, 14  ;;  %v1919_v45 = vsel %vm1918_vm8, %v1915_v17, %v1917_v16 }
 0x652   : > { %v1920_v46 = vsel %vm1918_vm8, %v1917_v16, %v1915_v17  ;;  %v1980_v13 = vrot.slane %v4419_v32, %v5703_v12  ;;  %v1984_v30 = vrot.slane %v4419_v32, %v5705_v0  ;;  %v1941_v60 = vmul.f32 %v1937_v56, %v1919_v45  ;;  %3266 = vrot.lane.b32.xlu1 %v5479_v49, %s7753_s22 }
 0x653   : > { %v1912_v53 = vadd.f32 %v1910_v55, %v1895_v22  ;;  %v1913_v26 = vadd.f32 %v1911_v15, %v1896_v31  ;;  %v1940_v27 = vmul.f32 %v1933_v29, %v1920_v46  ;;  %v1957_v54 = vmul.f32 %v1950_v61, %v1926_v42  ;;  %3264 = vrot.lane.b32.xlu0 %v5477_v28, %s7753_s22  ;;  %v6321_v61 = vld [vmem:[#allocation6 + $0x24] ss:$8 sm:$0x3]  ;;  %v7758_v31 = vld [vmem:[#allocation32_spill] sm:$0xff] }
 0x654   : > { %v1958_v38 = vmul.f32 %v1954_v62, %v1925_v59  ;;  %v2091_v19 = vrot.slane %v6287_v34, %v5703_v12  ;;  %v2095_v8 = vrot.slane %v6287_v34, %v5705_v0  ;;  %v1972_v24 = vsel %vm1965_vm9, %v5483_v51, %v5481_v50  ;;  %v1964_v33 = vpop.permute.xlu1 %1963  ;;  %v1962_v7 = vpop.permute.xlu0 %1961  ;;  %v7757_v22 = vld [vmem:[#allocation31_spill] sm:$0xff] }
 0x655   : > { %v1973_v5 = vsel %vm1965_vm9, %v5481_v50, %v5483_v51  ;;  %v1942_v62 = vadd.f32 %v1940_v27, %v1912_v53  ;;  %v1943_v37 = vadd.f32 %v1941_v60, %v1913_v26  ;;  %v1966_v20 = vsel %vm1965_vm9, %v1962_v7, %v1964_v33  ;;  %v4421_v51 = vld [vmem:[%s7471_s3 + $0x23] ss:$8 sm:$0x3] }
 0x656   : > { %v1967_v21 = vsel %vm1965_vm9, %v1964_v33, %v1962_v7  ;;  %v2027_v43 = vrot.slane %v4420_v25, %v5703_v12  ;;  %v2031_v44 = vrot.slane %v4420_v25, %v5705_v0  ;;  %v1988_v50 = vmul.f32 %v1984_v30, %v1966_v20  ;;  %3313 = vrot.lane.b32.xlu1 %v5479_v49, %s7754_s19  ;;  %v7759_v33 = vld [vmem:[#allocation33_spill] sm:$0xff]  ;;  %v7760_v7 = vld [vmem:[#allocation34_spill] sm:$0xff] }
 0x657   : > { %v1959_v4 = vadd.f32 %v1957_v54, %v1942_v62  ;;  %v1960_v9 = vadd.f32 %v1958_v38, %v1943_v37  ;;  %v1987_v2 = vmul.f32 %v1980_v13, %v1967_v21  ;;  %v2004_v35 = vmul.f32 %v1997_v14, %v1973_v5  ;;  %3311 = vrot.lane.b32.xlu0 %v5477_v28, %s7754_s19  ;;  %v4423_v38 = vld [vmem:[%s7471_s3 + $0x25] ss:$8 sm:$0x3]  ;;  %v2227_v21 = vld [vmem:[#allocation6 + $0x26] ss:$8 sm:$0x3] }
 0x658   : > { %v2005_v1 = vmul.f32 %v2001_v10, %v1972_v24  ;;  %vm2106_vm12 = vcmp.lt.s32.totalorder %v5701_v11, 13  ;;  %v2138_v3 = vrot.slane %v6321_v61, %v5703_v12  ;;  %v2019_v48 = vsel %vm2012_vm10, %v7755_v47, %v5489_v52  ;;  %v2011_v57 = vpop.permute.xlu1 %2010  ;;  %v2009_v58 = vpop.permute.xlu0 %2008 }
 0x659   : > { %v2020_v14 = vsel %vm2012_vm10, %v5489_v52, %v7755_v47  ;;  %v1989_v63 = vadd.f32 %v1987_v2, %v1959_v4  ;;  %v1990_v10 = vadd.f32 %v1988_v50, %v1960_v9  ;;  %v2013_v29 = vsel %vm2012_vm10, %v2009_v58, %v2011_v57  ;;  %v4422_v52 = vld [vmem:[%s7471_s3 + $0x24] ss:$8 sm:$0x3] }
 0x65a   : > { %v2014_v56 = vsel %vm2012_vm10, %v2011_v57, %v2009_v58  ;;  %v2074_v36 = vrot.slane %v4421_v51, %v5703_v12  ;;  %v2078_v23 = vrot.slane %v4421_v51, %v5705_v0  ;;  %v2035_v55 = vmul.f32 %v2031_v44, %v2013_v29  ;;  %3360 = vrot.lane.b32.xlu1 %v5479_v49, %s7756_s15  ;;  %v7762_v58 = vld [vmem:[#allocation28_spill] sm:$0xff]  ;;  %v7763_v29 = vld [vmem:[#allocation35_spill] sm:$0xff] }
 0x65b   : > { %v2006_v6 = vadd.f32 %v2004_v35, %v1989_v63  ;;  %v2007_v41 = vadd.f32 %v2005_v1, %v1990_v10  ;;  %v2034_v32 = vmul.f32 %v2027_v43, %v2014_v56  ;;  %v2051_v15 = vmul.f32 %v2044_v39, %v2020_v14  ;;  %3358 = vrot.lane.b32.xlu0 %v5477_v28, %s7756_s15  ;;  %v4424_v14 = vld [vmem:[%s7471_s3 + $0x26] ss:$8 sm:$0x3]  ;;  %v7764_v56 = vld [vmem:[#allocation36_spill] sm:$0xff] }
 0x65c   : > { %v2052_v59 = vmul.f32 %v2048_v40, %v2019_v48  ;;  %v2142_v42 = vrot.slane %v6321_v61, %v5705_v0  ;;  %vm2153_vm13 = vcmp.lt.s32.totalorder %v5701_v11, 3  ;;  %v2066_v16 = vsel %vm2059_vm11, %v7758_v31, %v7757_v22  ;;  %v2058_v45 = vpop.permute.xlu1 %2057  ;;  %v2056_v46 = vpop.permute.xlu0 %2055  ;;  %v7761_v48 = vld [vmem:[#allocation29_spill] sm:$0xff] }
 0x65d   : > { %v2067_v39 = vsel %vm2059_vm11, %v7757_v22, %v7758_v31  ;;  %v2036_v40 = vadd.f32 %v2034_v32, %v2006_v6  ;;  %v2037_v17 = vadd.f32 %v2035_v55, %v2007_v41  ;;  %v2060_v13 = vsel %vm2059_vm11, %v2056_v46, %v2058_v45 }
 0x65e   : > { %v2061_v30 = vsel %vm2059_vm11, %v2058_v45, %v2056_v46  ;;  %v2121_v53 = vrot.slane %v4422_v52, %v5703_v12  ;;  %v2125_v26 = vrot.slane %v4422_v52, %v5705_v0  ;;  %v2082_v54 = vmul.f32 %v2078_v23, %v2060_v13  ;;  %3407 = vrot.lane.b32.xlu1 %v5479_v49, %s4901_s27  ;;  %v7766_v45 = vld [vmem:[#allocation38_spill] sm:$0xff] }
 0x65f   : > { %v2053_v27 = vadd.f32 %v2051_v15, %v2036_v40  ;;  %v2054_v60 = vadd.f32 %v2052_v59, %v2037_v17  ;;  %v2081_v25 = vmul.f32 %v2074_v36, %v2061_v30  ;;  %v2098_v24 = vmul.f32 %v2091_v19, %v2067_v39  ;;  %3405 = vrot.lane.b32.xlu0 %v5477_v28, %s4901_s27  ;;  %v7765_v17 = vld [vmem:[#allocation37_spill] sm:$0xff]  ;;  %v2274_v30 = vld [vmem:[#allocation6 + $0x27] ss:$8 sm:$0x3] }
 0x660   : > { %v2099_v5 = vmul.f32 %v2095_v8, %v2066_v16  ;;  %v2185_v62 = vrot.slane %v2180_v18, %v5703_v12  ;;  %v2189_v37 = vrot.slane %v2180_v18, %v5705_v0  ;;  %v2113_v20 = vsel %vm2106_vm12, %v7760_v7, %v7759_v33  ;;  %v2105_v8 = vpop.permute.xlu1 %2104  ;;  %v2103_v44 = vpop.permute.xlu0 %2102  ;;  %v4425_v16 = vld [vmem:[%s7471_s3 + $0x27] ss:$8 sm:$0x3] }
 0x661   : > { %v2114_v19 = vsel %vm2106_vm12, %v7759_v33, %v7760_v7  ;;  %v2083_v43 = vadd.f32 %v2081_v25, %v2053_v27  ;;  %v2084_v34 = vadd.f32 %v2082_v54, %v2054_v60  ;;  %v2107_v4 = vsel %vm2106_vm12, %v2103_v44, %v2105_v8 }
 0x662   : > { %v2108_v9 = vsel %vm2106_vm12, %v2105_v8, %v2103_v44  ;;  %v2168_v2 = vrot.slane %v4423_v38, %v5703_v12  ;;  %v2172_v50 = vrot.slane %v4423_v38, %v5705_v0  ;;  %v2129_v47 = vmul.f32 %v2125_v26, %v2107_v4  ;;  %3414 = vrot.lane.b32.xlu1 %v7761_v48, %s4901_s27 }
 0x663   : > { %v2100_v51 = vadd.f32 %v2098_v24, %v2083_v43  ;;  %v2101_v35 = vadd.f32 %v2099_v5, %v2084_v34  ;;  %v2128_v1 = vmul.f32 %v2121_v53, %v2108_v9  ;;  %v2145_v63 = vmul.f32 %v2138_v3, %v2114_v19  ;;  %3412 = vrot.lane.b32.xlu0 %v7762_v58, %s4901_s27  ;;  %v4664_v19 = vld [vmem:[%s7471_s3 + $0x30] ss:$8 sm:$0x3] }
 0x664   : > { %v2146_v10 = vmul.f32 %v2142_v42, %v2113_v20  ;;  %vm2200_vm14 = vcmp.lt.s32.totalorder %v5701_v11, 2  ;;  %v2232_v57 = vrot.slane %v2227_v21, %v5703_v12  ;;  %v2160_v36 = vsel %vm2153_vm13, %v7764_v56, %v7763_v29  ;;  %v2152_v3 = vpop.permute.xlu1 %2151  ;;  %v2150_v41 = vpop.permute.xlu0 %2149  ;;  %v7767_v43 = vld [vmem:[#allocation83_spill] sm:$0xff] }
 0x665   : > { %v2161_v23 = vsel %vm2153_vm13, %v7763_v29, %v7764_v56  ;;  %v2130_v6 = vadd.f32 %v2128_v1, %v2100_v51  ;;  %v2131_v61 = vadd.f32 %v2129_v47, %v2101_v35  ;;  %v2154_v32 = vsel %vm2153_vm13, %v2150_v41, %v2152_v3  ;;  %v7769_v35 = vld [vmem:[#allocation39_spill] sm:$0xff]  ;;  %v7770_v1 = vld [vmem:[#allocation40_spill] sm:$0xff] }
 0x666   : > { %v2155_v55 = vsel %vm2153_vm13, %v2152_v3, %v2150_v41  ;;  %v2215_v52 = vrot.slane %v4424_v14, %v5703_v12  ;;  %v2219_v15 = vrot.slane %v4424_v14, %v5705_v0  ;;  %v2176_v31 = vmul.f32 %v2172_v50, %v2154_v32  ;;  %v4427_v41 = vld [vmem:[%s7471_s3 + $0x31] ss:$8 sm:$0x3] }
 0x667   : > { %v2147_v59 = vadd.f32 %v2145_v63, %v2130_v6  ;;  %v2148_v42 = vadd.f32 %v2146_v10, %v2131_v61  ;;  %v2175_v22 = vmul.f32 %v2168_v2, %v2155_v55  ;;  %v2192_v39 = vmul.f32 %v2185_v62, %v2161_v23  ;;  %v7772_v32 = vld [vmem:[#allocation84_spill] sm:$0xff] }
 0x668   : > { %v2193_v18 = vmul.f32 %v2189_v37, %v2160_v36  ;;  %v2236_v40 = vrot.slane %v2227_v21, %v5705_v0  ;;  %vm2247_vm15 = vcmp.lt.s32.totalorder %v5701_v11, 1  ;;  %v2207_v46 = vsel %vm2200_vm14, %v7766_v45, %v7765_v17  ;;  %v2199_v27 = vpop.permute.xlu1 %2198  ;;  %v2197_v60 = vpop.permute.xlu0 %2196 }
 0x669   : > { %v2208_v13 = vsel %vm2200_vm14, %v7765_v17, %v7766_v45  ;;  %v2177_v53 = vadd.f32 %v2175_v22, %v2147_v59  ;;  %v2178_v26 = vadd.f32 %v2176_v31, %v2148_v42  ;;  %v2201_v25 = vsel %vm2200_vm14, %v2197_v60, %v2199_v27  ;;  %v6496_v42 = vld [vmem:[#allocation6 + $0x33] ss:$8 sm:$0x3] }
 0x66a   : > { %v2202_v54 = vsel %vm2200_vm14, %v2199_v27, %v2197_v60  ;;  %v2262_v38 = vrot.slane %v4425_v16, %v5703_v12  ;;  %v2266_v24 = vrot.slane %v4425_v16, %v5705_v0  ;;  %v2223_v33 = vmul.f32 %v2219_v15, %v2201_v25  ;;  %v7775_v27 = vld [vmem:[#allocation42_spill] sm:$0xff] }
 0x66b   : > { %v2194_v5 = vadd.f32 %v2192_v39, %v2177_v53  ;;  %v2195_v62 = vadd.f32 %v2193_v18, %v2178_v26  ;;  %v2222_v37 = vmul.f32 %v2215_v52, %v2202_v54  ;;  %v2279_v7 = vrot.slane %v2274_v30, %v5703_v12  ;;  %v7774_v26 = vld [vmem:[#allocation41_spill] sm:$0xff] }
 0x66c   : > { %v2283_v20 = vrot.slane %v2274_v30, %v5705_v0  ;;  %v2300_v21 = vrot.slane %v4664_v19, %v5705_v0  ;;  %v7768_v34 = vrot.slane %v7767_v43, %v5703_v12  ;;  %v2239_v44 = vmul.f32 %v2232_v57, %v2208_v13  ;;  %v2246_v50 = vpop.permute.xlu1 %2245  ;;  %v2244_v51 = vpop.permute.xlu0 %2243  ;;  %v2355_v57 = vld [vmem:[#allocation6 + $0x31] ss:$8 sm:$0x3]  ;;  %v6527_v54 = vld [vmem:[#allocation6 + $0x34] ss:$8 sm:$0x3] }
 0x66d   : > { %v2240_v4 = vmul.f32 %v2236_v40, %v2207_v46  ;;  %v2224_v9 = vadd.f32 %v2222_v37, %v2194_v5  ;;  %v2225_v2 = vadd.f32 %v2223_v33, %v2195_v62  ;;  %v2254_v47 = vsel %vm2247_vm15, %v7770_v1, %v7769_v35  ;;  %v4428_v46 = vld [vmem:[%s7471_s3 + $0x32] ss:$8 sm:$0x3] }
 0x66e   : > { %v2320_v8 = vmul.f32 %v7768_v34, %v7762_v58  ;;  %v2255_v14 = vsel %vm2247_vm15, %v7769_v35, %v7770_v1  ;;  %v2248_v63 = vsel %vm2247_vm15, %v2244_v51, %v2246_v50  ;;  %v2249_v10 = vsel %vm2247_vm15, %v2246_v50, %v2244_v51  ;;  %v6481_v58 = vld [vmem:[#allocation6 + $0x32] ss:$8 sm:$0x3]  ;;  %v7776_v51 = vld [vmem:[#allocation43_spill] sm:$0xff] }
 0x66f   : > { %v2241_v29 = vadd.f32 %v2239_v44, %v2224_v9  ;;  %v2242_v56 = vadd.f32 %v2240_v4, %v2225_v2  ;;  %v2269_v36 = vmul.f32 %v2262_v38, %v2249_v10  ;;  %v2270_v23 = vmul.f32 %v2266_v24, %v2248_v63  ;;  %v4429_v44 = vld [vmem:[%s7471_s3 + $0x33] ss:$8 sm:$0x3] }
 0x670   : > { %vm2328_vm0 = vcmp.lt.s32.totalorder %v5701_v11, 127  ;;  %v2304_v6 = vmul.f32 %v2300_v21, %v5479_v49  ;;  %v7771_v61 = vrot.slane %v7767_v43, %v5705_v0  ;;  %v7773_v55 = vrot.slane %v7772_v32, %v5703_v12  ;;  %v6498_v31 = vpop.permute.xlu1 %3367  ;;  %v6500_v16 = vpop.permute.xlu0 %3365  ;;  %v7777_v35 = vld [vmem:[#allocation44_spill] sm:$0xff] }
 0x671   : > { %v2286_v15 = vmul.f32 %v2279_v7, %v2255_v14  ;;  %v2287_v59 = vmul.f32 %v2283_v20, %v2254_v47  ;;  %v2271_v22 = vadd.f32 %v2269_v36, %v2241_v29  ;;  %v2272_v49 = vadd.f32 %v2270_v23, %v2242_v56  ;;  %v6551_v47 = vld [vmem:[#allocation6 + $0x35] ss:$8 sm:$0x3] }
 0x672   : > { %v2321_v3 = vmul.f32 %v7771_v61, %v7761_v48  ;;  %v2303_v52 = vmul.f32 %v7773_v55, %v5477_v28  ;;  %v2360_v48 = vrot.slane %v2355_v57, %v5703_v12  ;;  %v2364_v39 = vrot.slane %v2355_v57, %v5705_v0 }
 0x673   : > { %vm2375_vm1 = vcmp.lt.s32.totalorder %v5701_v11, 126  ;;  %v2407_v18 = vrot.slane %v6481_v58, %v5703_v12  ;;  %v2288_v28 = vadd.f32 %v2286_v15, %v2271_v22  ;;  %v2289_v40 = vadd.f32 %v2287_v59, %v2272_v49  ;;  %v7778_v59 = vld [vmem:[#allocation45_spill] sm:$0xff] }
 0x674   : > { %v2343_v17 = vrot.slane %v4427_v41, %v5703_v12  ;;  %v2347_v45 = vrot.slane %v4427_v41, %v5705_v0  ;;  %v2411_v13 = vrot.slane %v6481_v58, %v5705_v0  ;;  %vm2422_vm2 = vcmp.lt.s32.totalorder %v5701_v11, 125  ;;  %v2327_v38 = vpop.permute.xlu1 %2326  ;;  %v2325_v5 = vpop.permute.xlu0 %2324  ;;  %v4430_v41 = vld [vmem:[%s7471_s3 + $0x34] ss:$8 sm:$0x3] }
 0x675   : > { %v2454_v30 = vrot.slane %v6496_v42, %v5703_v12  ;;  %v2458_v53 = vrot.slane %v6496_v42, %v5705_v0  ;;  %v2335_v60 = vsel %vm2328_vm0, %v7775_v27, %v7774_v26  ;;  %v2336_v25 = vsel %vm2328_vm0, %v7774_v26, %v7775_v27  ;;  %v7779_v42 = vld [vmem:[#allocation46_spill] sm:$0xff] }
 0x676   : > { %v2306_v24 = vadd.f32 %v2304_v6, %v2289_v40  ;;  %v2305_v62 = vadd.f32 %v2303_v52, %v2288_v28  ;;  %vm2469_vm3 = vcmp.lt.s32.totalorder %v5701_v11, 115  ;;  %v2329_v37 = vsel %vm2328_vm0, %v2325_v5, %v2327_v38 }
 0x677   : > { %v2330_v33 = vsel %vm2328_vm0, %v2327_v38, %v2325_v5  ;;  %v2390_v7 = vrot.slane %v4428_v46, %v5703_v12  ;;  %v2394_v20 = vrot.slane %v4428_v46, %v5705_v0  ;;  %v2350_v43 = vmul.f32 %v2343_v17, %v2329_v37  ;;  %v7781_v37 = vld [vmem:[#allocation48_spill] sm:$0xff] }
 0x678   : > { %v2323_v19 = vadd.f32 %v2321_v3, %v2306_v24  ;;  %v2322_v21 = vadd.f32 %v2320_v8, %v2305_v62  ;;  %v2351_v34 = vmul.f32 %v2347_v45, %v2330_v33  ;;  %v2367_v4 = vmul.f32 %v2360_v48, %v2335_v60  ;;  %v2374_v10 = vpop.permute.xlu1 %2373  ;;  %v2372_v57 = vpop.permute.xlu0 %2371  ;;  %v6575_v48 = vld [vmem:[#allocation6 + $0x36] ss:$8 sm:$0x3]  ;;  %v7780_v62 = vld [vmem:[#allocation47_spill] sm:$0xff] }
 0x679   : > { %v2368_v9 = vmul.f32 %v2364_v39, %v2336_v25  ;;  %v2501_v2 = vrot.slane %v6527_v54, %v5703_v12  ;;  %v2505_v50 = vrot.slane %v6527_v54, %v5705_v0  ;;  %v2382_v1 = vsel %vm2375_vm1, %v7777_v35, %v7776_v51  ;;  %v4431_v54 = vld [vmem:[%s7471_s3 + $0x35] ss:$8 sm:$0x3] }
 0x67a   : > { %v2383_v8 = vsel %vm2375_vm1, %v7776_v51, %v7777_v35  ;;  %v2352_v14 = vadd.f32 %v2350_v43, %v2322_v21  ;;  %v2353_v63 = vadd.f32 %v2351_v34, %v2323_v19  ;;  %vm2516_vm5 = vcmp.lt.s32.totalorder %v5701_v11, 114 }
 0x67b   : > { %v2376_v58 = vsel %vm2375_vm1, %v2372_v57, %v2374_v10  ;;  %v2377_v29 = vsel %vm2375_vm1, %v2374_v10, %v2372_v57  ;;  %v2437_v56 = vrot.slane %v4429_v44, %v5703_v12  ;;  %v2441_v36 = vrot.slane %v4429_v44, %v5705_v0  ;;  %v7783_v10 = vld [vmem:[#allocation50_spill] sm:$0xff] }
 0x67c   : > { %v2370_v23 = vadd.f32 %v2368_v9, %v2353_v63  ;;  %v2369_v6 = vadd.f32 %v2367_v4, %v2352_v14  ;;  %v2397_v61 = vmul.f32 %v2390_v7, %v2376_v58  ;;  %v2398_v3 = vmul.f32 %v2394_v20, %v2377_v29  ;;  %v2421_v28 = vpop.permute.xlu1 %2420  ;;  %v2419_v40 = vpop.permute.xlu0 %2418  ;;  %v7782_v63 = vld [vmem:[#allocation49_spill] sm:$0xff] }
 0x67d   : > { %v2414_v32 = vmul.f32 %v2407_v18, %v2382_v1  ;;  %v2415_v55 = vmul.f32 %v2411_v13, %v2383_v8  ;;  %v2548_v52 = vrot.slane %v6551_v47, %v5703_v12  ;;  %v2552_v15 = vrot.slane %v6551_v47, %v5705_v0  ;;  %v4432_v1 = vld [vmem:[%s7471_s3 + $0x36] ss:$8 sm:$0x3]  ;;  %v2637_v29 = vld [vmem:[#allocation6 + $0x37] ss:$8 sm:$0x3] }
 0x67e   : > { %v2429_v22 = vsel %vm2422_vm2, %v7779_v42, %v7778_v59  ;;  %v2430_v49 = vsel %vm2422_vm2, %v7778_v59, %v7779_v42  ;;  %v2399_v39 = vadd.f32 %v2397_v61, %v2369_v6  ;;  %v2400_v18 = vadd.f32 %v2398_v3, %v2370_v23 }
 0x67f   : > { %v2423_v17 = vsel %vm2422_vm2, %v2419_v40, %v2421_v28  ;;  %v2424_v45 = vsel %vm2422_vm2, %v2421_v28, %v2419_v40  ;;  %v2484_v46 = vrot.slane %v4430_v41, %v5703_v12  ;;  %v2488_v13 = vrot.slane %v4430_v41, %v5705_v0 }
 0x680   : > { %v2417_v26 = vadd.f32 %v2415_v55, %v2400_v18  ;;  %v2416_v27 = vadd.f32 %v2414_v32, %v2399_v39  ;;  %v2444_v60 = vmul.f32 %v2437_v56, %v2423_v17  ;;  %v2445_v25 = vmul.f32 %v2441_v36, %v2424_v45  ;;  %v2468_v21 = vpop.permute.xlu1 %2467  ;;  %v6617_v56 = vld [vmem:[#allocation6 + $0x40] ss:$8 sm:$0x3] }
 0x681   : > { %v2461_v38 = vmul.f32 %v2454_v30, %v2429_v22  ;;  %v2462_v24 = vmul.f32 %v2458_v53, %v2430_v49  ;;  %vm2563_vm6 = vcmp.lt.s32.totalorder %v5701_v11, 113  ;;  %v2595_v5 = vrot.slane %v6575_v48, %v5703_v12  ;;  %v2466_v30 = vpop.permute.xlu0 %2465 }
 0x682   : > { %v2476_v33 = vsel %vm2469_vm3, %v7781_v37, %v7780_v62  ;;  %v2477_v7 = vsel %vm2469_vm3, %v7780_v62, %v7781_v37  ;;  %v2446_v20 = vadd.f32 %v2444_v60, %v2416_v27  ;;  %v2447_v19 = vadd.f32 %v2445_v25, %v2417_v26  ;;  %v7785_v26 = vld [vmem:[#allocation52_spill] sm:$0xff]  ;;  %v6645_v25 = vld [vmem:[#allocation6 + $0x41] ss:$8 sm:$0x3] }
 0x683   : > { %v2470_v53 = vsel %vm2469_vm3, %v2466_v30, %v2468_v21  ;;  %v2471_v43 = vsel %vm2469_vm3, %v2468_v21, %v2466_v30  ;;  %v2531_v34 = vrot.slane %v4431_v54, %v5703_v12  ;;  %v2535_v44 = vrot.slane %v4431_v54, %v5705_v0 }
 0x684   : > { %v2464_v4 = vadd.f32 %v2462_v24, %v2447_v19  ;;  %v2463_v9 = vadd.f32 %v2461_v38, %v2446_v20  ;;  %v2491_v51 = vmul.f32 %v2484_v46, %v2470_v53  ;;  %v2492_v35 = vmul.f32 %v2488_v13, %v2471_v43  ;;  %v2515_v36 = vpop.permute.xlu1 %2514  ;;  %v4433_v46 = vld [vmem:[%s7471_s3 + $0x37] ss:$8 sm:$0x3]  ;;  %v7784_v13 = vld [vmem:[#allocation51_spill] sm:$0xff] }
 0x685   : > { %v2508_v8 = vmul.f32 %v2501_v2, %v2476_v33  ;;  %v2509_v47 = vmul.f32 %v2505_v50, %v2477_v7  ;;  %v2599_v14 = vrot.slane %v6575_v48, %v5705_v0  ;;  %vm2610_vm7 = vcmp.lt.s32.totalorder %v5701_v11, 112  ;;  %v2513_v23 = vpop.permute.xlu0 %2512  ;;  %v4434_v43 = vld [vmem:[%s7471_s3 + $0x40] ss:$8 sm:$0x3] }
 0x686   : > { %v2523_v57 = vsel %vm2516_vm5, %v7783_v10, %v7782_v63  ;;  %v2524_v58 = vsel %vm2516_vm5, %v7782_v63, %v7783_v10  ;;  %v2493_v2 = vadd.f32 %v2491_v51, %v2463_v9  ;;  %v2494_v50 = vadd.f32 %v2492_v35, %v2464_v4  ;;  %v6667_v35 = vld [vmem:[#allocation6 + $0x42] ss:$8 sm:$0x3] }
 0x687   : > { %v2517_v6 = vsel %vm2516_vm5, %v2513_v23, %v2515_v36  ;;  %v2518_v61 = vsel %vm2516_vm5, %v2515_v36, %v2513_v23  ;;  %v2578_v3 = vrot.slane %v4432_v1, %v5703_v12  ;;  %v2582_v41 = vrot.slane %v4432_v1, %v5705_v0 }
 0x688   : > { %v2511_v32 = vadd.f32 %v2509_v47, %v2494_v50  ;;  %v2510_v55 = vadd.f32 %v2508_v8, %v2493_v2  ;;  %v2538_v59 = vmul.f32 %v2531_v34, %v2517_v6  ;;  %v2539_v42 = vmul.f32 %v2535_v44, %v2518_v61  ;;  %v2562_v17 = vpop.permute.xlu1 %2561  ;;  %v7786_v34 = vld [vmem:[#allocation53_spill] sm:$0xff]  ;;  %v7787_v44 = vld [vmem:[#allocation54_spill] sm:$0xff] }
 0x689   : > { %v2642_v22 = vrot.slane %v2637_v29, %v5703_v12  ;;  %v2646_v49 = vrot.slane %v2637_v29, %v5705_v0  ;;  %vm2657_vm11 = vcmp.lt.s32.totalorder %v5701_v11, 111  ;;  %v2689_v48 = vrot.slane %v6617_v56, %v5703_v12  ;;  %v2560_v45 = vpop.permute.xlu0 %2559  ;;  %v4435_v2 = vld [vmem:[%s7471_s3 + $0x41] ss:$8 sm:$0x3] }
 0x68a   : > { %v2555_v39 = vmul.f32 %v2548_v52, %v2523_v57  ;;  %v2556_v18 = vmul.f32 %v2552_v15, %v2524_v58  ;;  %v2540_v28 = vadd.f32 %v2538_v59, %v2510_v55  ;;  %v2541_v40 = vadd.f32 %v2539_v42, %v2511_v32  ;;  %v6691_v59 = vld [vmem:[#allocation6 + $0x43] ss:$8 sm:$0x3] }
 0x68b   : > { %v2570_v27 = vsel %vm2563_vm6, %v7785_v26, %v7784_v13  ;;  %v2571_v60 = vsel %vm2563_vm6, %v7784_v13, %v7785_v26  ;;  %v2564_v52 = vsel %vm2563_vm6, %v2560_v45, %v2562_v17  ;;  %v2565_v15 = vsel %vm2563_vm6, %v2562_v17, %v2560_v45  ;;  %v4436_v26 = vld [vmem:[%s7471_s3 + $0x42] ss:$8 sm:$0x3] }
 0x68c   : > { %v2558_v54 = vadd.f32 %v2556_v18, %v2541_v40  ;;  %v2557_v38 = vadd.f32 %v2555_v39, %v2540_v28  ;;  %v2585_v24 = vmul.f32 %v2578_v3, %v2564_v52  ;;  %v2586_v62 = vmul.f32 %v2582_v41, %v2565_v15  ;;  %v2609_v53 = vpop.permute.xlu1 %2608  ;;  %v7788_v3 = vld [vmem:[#allocation55_spill] sm:$0xff]  ;;  %v7789_v41 = vld [vmem:[#allocation56_spill] sm:$0xff] }
 0x68d   : > { %v2693_v37 = vrot.slane %v6617_v56, %v5705_v0  ;;  %vm2704_vm12 = vcmp.lt.s32.totalorder %v5701_v11, 110  ;;  %v2625_v33 = vrot.slane %v4433_v46, %v5703_v12  ;;  %v2629_v7 = vrot.slane %v4433_v46, %v5705_v0  ;;  %v2607_v1 = vpop.permute.xlu0 %2606  ;;  %v6718_v56 = vld [vmem:[#allocation6 + $0x44] ss:$8 sm:$0x3] }
 0x68e   : > { %v2602_v20 = vmul.f32 %v2595_v5, %v2570_v27  ;;  %v2603_v19 = vmul.f32 %v2599_v14, %v2571_v60  ;;  %v2587_v21 = vadd.f32 %v2585_v24, %v2557_v38  ;;  %v2588_v30 = vadd.f32 %v2586_v62, %v2558_v54  ;;  %v7790_v54 = vld [vmem:[#allocation57_spill] sm:$0xff]  ;;  %v7791_v38 = vld [vmem:[#allocation58_spill] sm:$0xff] }
 0x68f   : > { %v2617_v4 = vsel %vm2610_vm7, %v7787_v44, %v7786_v34  ;;  %v2618_v9 = vsel %vm2610_vm7, %v7786_v34, %v7787_v44  ;;  %v2736_v5 = vrot.slane %v6645_v25, %v5703_v12  ;;  %v2740_v51 = vrot.slane %v6645_v25, %v5705_v0  ;;  %v4437_v44 = vld [vmem:[%s7471_s3 + $0x43] ss:$8 sm:$0x3] }
 0x690   : > { %vm2751_vm13 = vcmp.lt.s32.totalorder %v5701_v11, 109  ;;  %v2605_v8 = vadd.f32 %v2603_v19, %v2588_v30  ;;  %v2604_v47 = vadd.f32 %v2602_v20, %v2587_v21  ;;  %v2611_v14 = vsel %vm2610_vm7, %v2607_v1, %v2609_v53  ;;  %v2656_v61 = vpop.permute.xlu1 %2655 }
 0x691   : > { %v2612_v63 = vsel %vm2610_vm7, %v2609_v53, %v2607_v1  ;;  %v2632_v10 = vmul.f32 %v2625_v33, %v2611_v14  ;;  %v2672_v58 = vrot.slane %v4434_v43, %v5703_v12  ;;  %v2676_v29 = vrot.slane %v4434_v43, %v5705_v0  ;;  %v7793_v14 = vld [vmem:[#allocation60_spill] sm:$0xff] }
 0x692   : > { %v2633_v57 = vmul.f32 %v2629_v7, %v2612_v63  ;;  %v2649_v50 = vmul.f32 %v2642_v22, %v2617_v4  ;;  %v2650_v36 = vmul.f32 %v2646_v49, %v2618_v9  ;;  %v2783_v23 = vrot.slane %v6667_v35, %v5703_v12  ;;  %v2654_v49 = vpop.permute.xlu0 %2653 }
 0x693   : > { %v2787_v6 = vrot.slane %v6667_v35, %v5705_v0  ;;  %v2664_v32 = vsel %vm2657_vm11, %v7789_v41, %v7788_v3  ;;  %v2665_v55 = vsel %vm2657_vm11, %v7788_v3, %v7789_v41  ;;  %v2634_v42 = vadd.f32 %v2632_v10, %v2604_v47  ;;  %v7792_v47 = vld [vmem:[#allocation59_spill] sm:$0xff] }
 0x694   : > { %v2635_v22 = vadd.f32 %v2633_v57, %v2605_v8  ;;  %vm2798_vm14 = vcmp.lt.s32.totalorder %v5701_v11, 99  ;;  %v2658_v39 = vsel %vm2657_vm11, %v2654_v49, %v2656_v61  ;;  %v2659_v18 = vsel %vm2657_vm11, %v2656_v61, %v2654_v49  ;;  %v2703_v25 = vpop.permute.xlu1 %2702  ;;  %v6742_v57 = vld [vmem:[#allocation6 + $0x45] ss:$8 sm:$0x3] }
 0x695   : > { %v2719_v28 = vrot.slane %v4435_v2, %v5703_v12  ;;  %v2723_v40 = vrot.slane %v4435_v2, %v5705_v0  ;;  %v2651_v45 = vadd.f32 %v2649_v50, %v2634_v42  ;;  %v2679_v46 = vmul.f32 %v2672_v58, %v2658_v39 }
 0x696   : > { %v2652_v17 = vadd.f32 %v2650_v36, %v2635_v22  ;;  %v2680_v13 = vmul.f32 %v2676_v29, %v2659_v18  ;;  %v2696_v27 = vmul.f32 %v2689_v48, %v2664_v32  ;;  %v2697_v60 = vmul.f32 %v2693_v37, %v2665_v55  ;;  %v2701_v33 = vpop.permute.xlu0 %2700  ;;  %v4438_v55 = vld [vmem:[%s7471_s3 + $0x44] ss:$8 sm:$0x3]  ;;  %v7794_v18 = vld [vmem:[#allocation61_spill] sm:$0xff] }
 0x697   : > { %v2830_v52 = vrot.slane %v6691_v59, %v5703_v12  ;;  %v2834_v15 = vrot.slane %v6691_v59, %v5705_v0  ;;  %v2711_v24 = vsel %vm2704_vm12, %v7791_v38, %v7790_v54  ;;  %v2712_v62 = vsel %vm2704_vm12, %v7790_v54, %v7791_v38 }
 0x698   : > { %v2681_v48 = vadd.f32 %v2679_v46, %v2651_v45  ;;  %v2682_v37 = vadd.f32 %v2680_v13, %v2652_v17  ;;  %vm2845_vm1 = vcmp.lt.s32.totalorder %v5701_v11, 98  ;;  %v2705_v7 = vsel %vm2704_vm12, %v2701_v33, %v2703_v25  ;;  %v2750_v8 = vpop.permute.xlu1 %2749  ;;  %v6766_v45 = vld [vmem:[#allocation6 + $0x46] ss:$8 sm:$0x3] }
 0x699   : > { %v2706_v20 = vsel %vm2704_vm12, %v2703_v25, %v2701_v33  ;;  %v2766_v19 = vrot.slane %v4436_v26, %v5703_v12  ;;  %v2770_v21 = vrot.slane %v4436_v26, %v5705_v0  ;;  %v2726_v43 = vmul.f32 %v2719_v28, %v2705_v7  ;;  %v7795_v28 = vld [vmem:[#allocation62_spill] sm:$0xff] }
 0x69a   : > { %v2699_v30 = vadd.f32 %v2697_v60, %v2682_v37  ;;  %v2698_v53 = vadd.f32 %v2696_v27, %v2681_v48  ;;  %v2727_v34 = vmul.f32 %v2723_v40, %v2706_v20  ;;  %v2743_v4 = vmul.f32 %v2736_v5, %v2711_v24  ;;  %v2748_v58 = vpop.permute.xlu0 %2747  ;;  %v7796_v20 = vld [vmem:[#allocation63_spill] sm:$0xff] }
 0x69b   : > { %v2744_v9 = vmul.f32 %v2740_v51, %v2712_v62  ;;  %v2877_v35 = vrot.slane %v6718_v56, %v5703_v12  ;;  %v2881_v1 = vrot.slane %v6718_v56, %v5705_v0  ;;  %v2758_v63 = vsel %vm2751_vm13, %v7793_v14, %v7792_v47  ;;  %v4439_v62 = vld [vmem:[%s7471_s3 + $0x45] ss:$8 sm:$0x3] }
 0x69c   : > { %v2759_v10 = vsel %vm2751_vm13, %v7792_v47, %v7793_v14  ;;  %v2728_v5 = vadd.f32 %v2726_v43, %v2698_v53  ;;  %v2729_v51 = vadd.f32 %v2727_v34, %v2699_v30  ;;  %vm2892_vm2 = vcmp.lt.s32.totalorder %v5701_v11, 97  ;;  %v2797_v39 = vpop.permute.xlu1 %2796  ;;  %v6790_v53 = vld [vmem:[#allocation6 + $0x47] ss:$8 sm:$0x3] }
 0x69d   : > { %v2752_v29 = vsel %vm2751_vm13, %v2748_v58, %v2750_v8  ;;  %v2753_v2 = vsel %vm2751_vm13, %v2750_v8, %v2748_v58  ;;  %v2813_v50 = vrot.slane %v4437_v44, %v5703_v12  ;;  %v2817_v36 = vrot.slane %v4437_v44, %v5705_v0 }
 0x69e   : > { %v2746_v61 = vadd.f32 %v2744_v9, %v2729_v51  ;;  %v2745_v3 = vadd.f32 %v2743_v4, %v2728_v5  ;;  %v2773_v41 = vmul.f32 %v2766_v19, %v2752_v29  ;;  %v2774_v32 = vmul.f32 %v2770_v21, %v2753_v2  ;;  %v2795_v46 = vpop.permute.xlu0 %2794  ;;  %v7797_v19 = vld [vmem:[#allocation64_spill] sm:$0xff]  ;;  %v7798_v2 = vld [vmem:[#allocation65_spill] sm:$0xff] }
 0x69f   : > { %v2790_v59 = vmul.f32 %v2783_v23, %v2758_v63  ;;  %v2791_v42 = vmul.f32 %v2787_v6, %v2759_v10  ;;  %v2924_v22 = vrot.slane %v6742_v57, %v5703_v12  ;;  %v2928_v49 = vrot.slane %v6742_v57, %v5705_v0  ;;  %v4440_v10 = vld [vmem:[%s7471_s3 + $0x46] ss:$8 sm:$0x3] }
 0x6a0   : > { %v2805_v40 = vsel %vm2798_vm14, %v7795_v28, %v7794_v18  ;;  %v2806_v17 = vsel %vm2798_vm14, %v7794_v18, %v7795_v28  ;;  %v2775_v23 = vadd.f32 %v2773_v41, %v2745_v3  ;;  %v2776_v6 = vadd.f32 %v2774_v32, %v2746_v61  ;;  %v2844_v7 = vpop.permute.xlu1 %2843  ;;  %v6814_v3 = vld [vmem:[#allocation6 + $0x50] ss:$8 sm:$0x3] }
 0x6a1   : > { %vm2939_vm3 = vcmp.lt.s32.totalorder %v5701_v11, 96  ;;  %v2799_v13 = vsel %vm2798_vm14, %v2795_v46, %v2797_v39  ;;  %v2800_v26 = vsel %vm2798_vm14, %v2797_v39, %v2795_v46  ;;  %v2860_v27 = vrot.slane %v4438_v55, %v5703_v12 }
 0x6a2   : > { %v2864_v60 = vrot.slane %v4438_v55, %v5705_v0  ;;  %v2793_v25 = vadd.f32 %v2791_v42, %v2776_v6  ;;  %v2792_v54 = vadd.f32 %v2790_v59, %v2775_v23  ;;  %v2820_v38 = vmul.f32 %v2813_v50, %v2799_v13  ;;  %v2842_v43 = vpop.permute.xlu0 %2841  ;;  %v7799_v50 = vld [vmem:[#allocation66_spill] sm:$0xff] }
 0x6a3   : > { %v2821_v24 = vmul.f32 %v2817_v36, %v2800_v26  ;;  %v2837_v56 = vmul.f32 %v2830_v52, %v2805_v40  ;;  %v2838_v48 = vmul.f32 %v2834_v15, %v2806_v17  ;;  %v2971_v37 = vrot.slane %v6766_v45, %v5703_v12  ;;  %v4441_v17 = vld [vmem:[%s7471_s3 + $0x47] ss:$8 sm:$0x3] }
 0x6a4   : > { %v2975_v33 = vrot.slane %v6766_v45, %v5705_v0  ;;  %v2852_v21 = vsel %vm2845_vm1, %v7797_v19, %v7796_v20  ;;  %v2853_v30 = vsel %vm2845_vm1, %v7796_v20, %v7797_v19  ;;  %v2822_v52 = vadd.f32 %v2820_v38, %v2792_v54  ;;  %v2891_v29 = vpop.permute.xlu1 %2890  ;;  %v7800_v26 = vld [vmem:[#allocation67_spill] sm:$0xff] }
 0x6a5   : > { %v2823_v15 = vadd.f32 %v2821_v24, %v2793_v25  ;;  %vm2986_vm5 = vcmp.lt.s32.totalorder %v5701_v11, 95  ;;  %v2846_v34 = vsel %vm2845_vm1, %v2842_v43, %v2844_v7  ;;  %v2847_v44 = vsel %vm2845_vm1, %v2844_v7, %v2842_v43  ;;  %v6838_v54 = vld [vmem:[#allocation6 + $0x51] ss:$8 sm:$0x3] }
 0x6a6   : > { %v2907_v4 = vrot.slane %v4439_v62, %v5703_v12  ;;  %v2911_v9 = vrot.slane %v4439_v62, %v5705_v0  ;;  %v2839_v47 = vadd.f32 %v2837_v56, %v2822_v52  ;;  %v2867_v14 = vmul.f32 %v2860_v27, %v2846_v34  ;;  %v2889_v41 = vpop.permute.xlu0 %2888  ;;  %v7801_v27 = vld [vmem:[#allocation68_spill] sm:$0xff] }
 0x6a7   : > { %v2840_v8 = vadd.f32 %v2838_v48, %v2823_v15  ;;  %v2868_v63 = vmul.f32 %v2864_v60, %v2847_v44  ;;  %v2884_v57 = vmul.f32 %v2877_v35, %v2852_v21  ;;  %v2885_v5 = vmul.f32 %v2881_v1, %v2853_v30  ;;  %v4442_v30 = vld [vmem:[%s7471_s3 + $0x50] ss:$8 sm:$0x3]  ;;  %v7802_v44 = vld [vmem:[#allocation69_spill] sm:$0xff] }
 0x6a8   : > { %v3018_v51 = vrot.slane %v6790_v53, %v5703_v12  ;;  %v3022_v58 = vrot.slane %v6790_v53, %v5705_v0  ;;  %v2899_v36 = vsel %vm2892_vm2, %v7799_v50, %v7798_v2  ;;  %v2900_v61 = vsel %vm2892_vm2, %v7798_v2, %v7799_v50  ;;  %v2938_v13 = vpop.permute.xlu1 %2937 }
 0x6a9   : > { %v2869_v35 = vadd.f32 %v2867_v14, %v2839_v47  ;;  %v2870_v1 = vadd.f32 %v2868_v63, %v2840_v8  ;;  %vm3033_vm12 = vcmp.lt.s32.totalorder %v5701_v11, 94  ;;  %v2893_v32 = vsel %vm2892_vm2, %v2889_v41, %v2891_v29  ;;  %v6862_v47 = vld [vmem:[#allocation6 + $0x52] ss:$8 sm:$0x3] }
 0x6aa   : > { %v2894_v55 = vsel %vm2892_vm2, %v2891_v29, %v2889_v41  ;;  %v2954_v59 = vrot.slane %v4440_v10, %v5703_v12  ;;  %v2958_v42 = vrot.slane %v4440_v10, %v5705_v0  ;;  %v2914_v28 = vmul.f32 %v2907_v4, %v2893_v32  ;;  %v2936_v38 = vpop.permute.xlu0 %2935  ;;  %v7803_v4 = vld [vmem:[#allocation70_spill] sm:$0xff] }
 0x6ab   : > { %v2887_v39 = vadd.f32 %v2885_v5, %v2870_v1  ;;  %v2886_v18 = vadd.f32 %v2884_v57, %v2869_v35  ;;  %v2915_v40 = vmul.f32 %v2911_v9, %v2894_v55  ;;  %v2931_v45 = vmul.f32 %v2924_v22, %v2899_v36  ;;  %v7804_v55 = vld [vmem:[#allocation71_spill] sm:$0xff] }
 0x6ac   : > { %v2932_v23 = vmul.f32 %v2928_v49, %v2900_v61  ;;  %v3065_v6 = vrot.slane %v6814_v3, %v5703_v12  ;;  %v3069_v46 = vrot.slane %v6814_v3, %v5705_v0  ;;  %v2946_v60 = vsel %vm2939_vm3, %v7801_v27, %v7800_v26  ;;  %v2985_v34 = vpop.permute.xlu1 %2984  ;;  %v4443_v61 = vld [vmem:[%s7471_s3 + $0x51] ss:$8 sm:$0x3] }
 0x6ad   : > { %v2947_v25 = vsel %vm2939_vm3, %v7800_v26, %v7801_v27  ;;  %v2916_v22 = vadd.f32 %v2914_v28, %v2886_v18  ;;  %v2917_v49 = vadd.f32 %v2915_v40, %v2887_v39  ;;  %vm3080_vm13 = vcmp.lt.s32.totalorder %v5701_v11, 93  ;;  %v6886_v18 = vld [vmem:[#allocation6 + $0x53] ss:$8 sm:$0x3] }
 0x6ae   : > { %v2940_v24 = vsel %vm2939_vm3, %v2936_v38, %v2938_v13  ;;  %v2941_v62 = vsel %vm2939_vm3, %v2938_v13, %v2936_v38  ;;  %v3001_v56 = vrot.slane %v4441_v17, %v5703_v12  ;;  %v3005_v48 = vrot.slane %v4441_v17, %v5705_v0  ;;  %v2983_v14 = vpop.permute.xlu0 %2982 }
 0x6af   : > { %v2934_v7 = vadd.f32 %v2932_v23, %v2917_v49  ;;  %v2933_v20 = vadd.f32 %v2931_v45, %v2916_v22  ;;  %v2961_v19 = vmul.f32 %v2954_v59, %v2940_v24  ;;  %v2962_v21 = vmul.f32 %v2958_v42, %v2941_v62  ;;  %v7805_v59 = vld [vmem:[#allocation72_spill] sm:$0xff]  ;;  %v7806_v62 = vld [vmem:[#allocation73_spill] sm:$0xff] }
 0x6b0   : > { %v2978_v53 = vmul.f32 %v2971_v37, %v2946_v60  ;;  %v2979_v52 = vmul.f32 %v2975_v33, %v2947_v25  ;;  %v3112_v15 = vrot.slane %v6838_v54, %v5703_v12  ;;  %v3116_v43 = vrot.slane %v6838_v54, %v5705_v0  ;;  %v3032_v32 = vpop.permute.xlu1 %3031  ;;  %v4444_v25 = vld [vmem:[%s7471_s3 + $0x52] ss:$8 sm:$0x3] }
 0x6b1   : > { %v2993_v9 = vsel %vm2986_vm5, %v7803_v4, %v7802_v44  ;;  %v2994_v8 = vsel %vm2986_vm5, %v7802_v44, %v7803_v4  ;;  %v2963_v37 = vadd.f32 %v2961_v19, %v2933_v20  ;;  %v2964_v33 = vadd.f32 %v2962_v21, %v2934_v7  ;;  %v6910_v20 = vld [vmem:[#allocation6 + $0x54] ss:$8 sm:$0x3] }
 0x6b2   : > { %vm3127_vm14 = vcmp.lt.s32.totalorder %v5701_v11, 83  ;;  %v2987_v63 = vsel %vm2986_vm5, %v2983_v14, %v2985_v34  ;;  %v2988_v10 = vsel %vm2986_vm5, %v2985_v34, %v2983_v14  ;;  %v3048_v57 = vrot.slane %v4442_v30, %v5703_v12  ;;  %v3030_v28 = vpop.permute.xlu0 %3029 }
 0x6b3   : > { %v3052_v5 = vrot.slane %v4442_v30, %v5705_v0  ;;  %v2981_v29 = vadd.f32 %v2979_v52, %v2964_v33  ;;  %v2980_v2 = vadd.f32 %v2978_v53, %v2963_v37  ;;  %v3008_v50 = vmul.f32 %v3001_v56, %v2987_v63  ;;  %v7807_v56 = vld [vmem:[#allocation74_spill] sm:$0xff] }
 0x6b4   : > { %v3009_v36 = vmul.f32 %v3005_v48, %v2988_v10  ;;  %v3025_v3 = vmul.f32 %v3018_v51, %v2993_v9  ;;  %v3026_v35 = vmul.f32 %v3022_v58, %v2994_v8  ;;  %v3159_v1 = vrot.slane %v6862_v47, %v5703_v12  ;;  %v3079_v24 = vpop.permute.xlu1 %3078  ;;  %v4445_v8 = vld [vmem:[%s7471_s3 + $0x53] ss:$8 sm:$0x3]  ;;  %v7808_v10 = vld [vmem:[#allocation75_spill] sm:$0xff] }
 0x6b5   : > { %v3163_v41 = vrot.slane %v6862_v47, %v5705_v0  ;;  %v3040_v42 = vsel %vm3033_vm12, %v7805_v59, %v7804_v55  ;;  %v3041_v39 = vsel %vm3033_vm12, %v7804_v55, %v7805_v59  ;;  %v3010_v51 = vadd.f32 %v3008_v50, %v2980_v2  ;;  %v6934_v2 = vld [vmem:[#allocation6 + $0x55] ss:$8 sm:$0x3] }
 0x6b6   : > { %v3011_v58 = vadd.f32 %v3009_v36, %v2981_v29  ;;  %vm3174_vm1 = vcmp.lt.s32.totalorder %v5701_v11, 82  ;;  %v3034_v40 = vsel %vm3033_vm12, %v3030_v28, %v3032_v32  ;;  %v3035_v17 = vsel %vm3033_vm12, %v3032_v32, %v3030_v28  ;;  %v3077_v19 = vpop.permute.xlu0 %3076 }
 0x6b7   : > { %v3095_v45 = vrot.slane %v4443_v61, %v5703_v12  ;;  %v3099_v23 = vrot.slane %v4443_v61, %v5705_v0  ;;  %v3027_v26 = vadd.f32 %v3025_v3, %v3010_v51  ;;  %v3055_v27 = vmul.f32 %v3048_v57, %v3034_v40  ;;  %v7809_v57 = vld [vmem:[#allocation76_spill] sm:$0xff]  ;;  %v7810_v40 = vld [vmem:[#allocation77_spill] sm:$0xff] }
 0x6b8   : > { %v3028_v13 = vadd.f32 %v3026_v35, %v3011_v58  ;;  %v3056_v60 = vmul.f32 %v3052_v5, %v3035_v17  ;;  %v3072_v54 = vmul.f32 %v3065_v6, %v3040_v42  ;;  %v3073_v22 = vmul.f32 %v3069_v46, %v3041_v39  ;;  %v3126_v63 = vpop.permute.xlu1 %3125  ;;  %v4446_v39 = vld [vmem:[%s7471_s3 + $0x54] ss:$8 sm:$0x3]  ;;  %v7811_v17 = vld [vmem:[#allocation78_spill] sm:$0xff] }
 0x6b9   : > { %v3206_v49 = vrot.slane %v6886_v18, %v5703_v12  ;;  %v3210_v38 = vrot.slane %v6886_v18, %v5705_v0  ;;  %v3087_v48 = vsel %vm3080_vm13, %v7807_v56, %v7806_v62  ;;  %v3088_v7 = vsel %vm3080_vm13, %v7806_v62, %v7807_v56  ;;  %v4447_v56 = vld [vmem:[%s7471_s3 + $0x55] ss:$8 sm:$0x3] }
 0x6ba   : > { %v3057_v6 = vadd.f32 %v3055_v27, %v3027_v26  ;;  %v3058_v46 = vadd.f32 %v3056_v60, %v3028_v13  ;;  %vm3221_vm2 = vcmp.lt.s32.totalorder %v5701_v11, 81  ;;  %v3081_v21 = vsel %vm3080_vm13, %v3077_v19, %v3079_v24  ;;  %v3124_v50 = vpop.permute.xlu0 %3123 }
 0x6bb   : > { %v3082_v30 = vsel %vm3080_vm13, %v3079_v24, %v3077_v19  ;;  %v3142_v53 = vrot.slane %v4444_v25, %v5703_v12  ;;  %v3146_v52 = vrot.slane %v4444_v25, %v5705_v0  ;;  %v3102_v4 = vmul.f32 %v3095_v45, %v3081_v21  ;;  %v7813_v19 = vld [vmem:[#allocation80_spill] sm:$0xff] }
 0x6bc   : > { %v3075_v34 = vadd.f32 %v3073_v22, %v3058_v46  ;;  %v3074_v44 = vadd.f32 %v3072_v54, %v3057_v6  ;;  %v3103_v9 = vmul.f32 %v3099_v23, %v3082_v30  ;;  %v3119_v47 = vmul.f32 %v3112_v15, %v3087_v48  ;;  %v3173_v28 = vpop.permute.xlu1 %3172  ;;  %v7812_v46 = vld [vmem:[#allocation79_spill] sm:$0xff] }
 0x6bd   : > { %v3120_v37 = vmul.f32 %v3116_v43, %v3088_v7  ;;  %v3253_v33 = vrot.slane %v6910_v20, %v5703_v12  ;;  %v3257_v14 = vrot.slane %v6910_v20, %v5705_v0  ;;  %v3134_v5 = vsel %vm3127_vm14, %v7809_v57, %v7808_v10 }
 0x6be   : > { %v3135_v29 = vsel %vm3127_vm14, %v7808_v10, %v7809_v57  ;;  %v3104_v15 = vadd.f32 %v3102_v4, %v3074_v44  ;;  %v3105_v43 = vadd.f32 %v3103_v9, %v3075_v34  ;;  %v3128_v36 = vsel %vm3127_vm14, %v3124_v50, %v3126_v63  ;;  %v4448_v10 = vld [vmem:[%s7471_s3 + $0x56] ss:$8 sm:$0x3] }
 0x6bf   : > { %v3129_v61 = vsel %vm3127_vm14, %v3126_v63, %v3124_v50  ;;  %v3189_v3 = vrot.slane %v4445_v8, %v5703_v12  ;;  %v3193_v35 = vrot.slane %v4445_v8, %v5705_v0  ;;  %v3149_v59 = vmul.f32 %v3142_v53, %v3128_v36  ;;  %v3342_v53 = vld [vmem:[#allocation6 + $0x56] ss:$8 sm:$0x3]  ;;  %v7815_v50 = vld [vmem:[#allocation82_spill] sm:$0xff] }
 0x6c0   : > { %v3122_v32 = vadd.f32 %v3120_v37, %v3105_v43  ;;  %v3121_v55 = vadd.f32 %v3119_v47, %v3104_v15  ;;  %v3150_v42 = vmul.f32 %v3146_v52, %v3129_v61  ;;  %v3166_v18 = vmul.f32 %v3159_v1, %v3134_v5  ;;  %v3171_v1 = vpop.permute.xlu0 %3170  ;;  %v3220_v6 = vpop.permute.xlu1 %3219  ;;  %v7814_v43 = vld [vmem:[#allocation81_spill] sm:$0xff] }
 0x6c1   : > { %v3167_v51 = vmul.f32 %v3163_v41, %v3135_v29  ;;  %vm3268_vm3 = vcmp.lt.s32.totalorder %v5701_v11, 80  ;;  %v3300_v58 = vrot.slane %v6934_v2, %v5703_v12  ;;  %v3181_v45 = vsel %vm3174_vm1, %v7811_v17, %v7810_v40 }
 0x6c2   : > { %v3182_v23 = vsel %vm3174_vm1, %v7810_v40, %v7811_v17  ;;  %v3151_v13 = vadd.f32 %v3149_v59, %v3121_v55  ;;  %v3152_v26 = vadd.f32 %v3150_v42, %v3122_v32  ;;  %v3175_v41 = vsel %vm3174_vm1, %v3171_v1, %v3173_v28  ;;  %v4449_v40 = vld [vmem:[%s7471_s3 + $0x57] ss:$8 sm:$0x3] }
 0x6c3   : > { %v3176_v27 = vsel %vm3174_vm1, %v3173_v28, %v3171_v1  ;;  %v3236_v60 = vrot.slane %v4446_v39, %v5703_v12  ;;  %v3240_v25 = vrot.slane %v4446_v39, %v5705_v0  ;;  %v3196_v24 = vmul.f32 %v3189_v3, %v3175_v41  ;;  %v3389_v3 = vld [vmem:[#allocation6 + $0x57] ss:$8 sm:$0x3]  ;;  %v7817_v1 = vld [vmem:[#allocation86_spill] sm:$0xff] }
 0x6c4   : > { %v3169_v54 = vadd.f32 %v3167_v51, %v3152_v26  ;;  %v3168_v22 = vadd.f32 %v3166_v18, %v3151_v13  ;;  %v3197_v62 = vmul.f32 %v3193_v35, %v3176_v27  ;;  %v3213_v48 = vmul.f32 %v3206_v49, %v3181_v45  ;;  %v3267_v15 = vpop.permute.xlu1 %3266  ;;  %v7816_v26 = vld [vmem:[#allocation85_spill] sm:$0xff] }
 0x6c5   : > { %v3214_v7 = vmul.f32 %v3210_v38, %v3182_v23  ;;  %v3304_v20 = vrot.slane %v6934_v2, %v5705_v0  ;;  %vm3315_vm5 = vcmp.lt.s32.totalorder %v5701_v11, 79  ;;  %v3228_v21 = vsel %vm3221_vm2, %v7813_v19, %v7812_v46  ;;  %v3218_v38 = vpop.permute.xlu0 %3217 }
 0x6c6   : > { %v3229_v30 = vsel %vm3221_vm2, %v7812_v46, %v7813_v19  ;;  %v3198_v52 = vadd.f32 %v3196_v24, %v3168_v22  ;;  %v3199_v49 = vadd.f32 %v3197_v62, %v3169_v54  ;;  %v3222_v34 = vsel %vm3221_vm2, %v3218_v38, %v3220_v6 }
 0x6c7   : > { %v3223_v44 = vsel %vm3221_vm2, %v3220_v6, %v3218_v38  ;;  %v3283_v4 = vrot.slane %v4447_v56, %v5703_v12  ;;  %v3287_v9 = vrot.slane %v4447_v56, %v5705_v0  ;;  %v3243_v37 = vmul.f32 %v3236_v60, %v3222_v34  ;;  %v4450_v56 = vld [vmem:[%s7471_s3 + $0x60] ss:$8 sm:$0x3] }
 0x6c8   : > { %v3216_v8 = vadd.f32 %v3214_v7, %v3199_v49  ;;  %v3215_v47 = vadd.f32 %v3213_v48, %v3198_v52  ;;  %v3244_v63 = vmul.f32 %v3240_v25, %v3223_v44  ;;  %v3260_v57 = vmul.f32 %v3253_v33, %v3228_v21  ;;  %v3314_v13 = vpop.permute.xlu1 %3313 }
 0x6c9   : > { %v3261_v5 = vmul.f32 %v3257_v14, %v3229_v30  ;;  %v3347_v29 = vrot.slane %v3342_v53, %v5703_v12  ;;  %v3351_v2 = vrot.slane %v3342_v53, %v5705_v0  ;;  %v3275_v36 = vsel %vm3268_vm3, %v7815_v50, %v7814_v43  ;;  %v3265_v33 = vpop.permute.xlu0 %3264 }
 0x6ca   : > { %v3276_v61 = vsel %vm3268_vm3, %v7814_v43, %v7815_v50  ;;  %v3245_v35 = vadd.f32 %v3243_v37, %v3215_v47  ;;  %v3246_v32 = vadd.f32 %v3244_v63, %v3216_v8  ;;  %v3269_v14 = vsel %vm3268_vm3, %v3265_v33, %v3267_v15 }
 0x6cb   : > { %v3270_v55 = vsel %vm3268_vm3, %v3267_v15, %v3265_v33  ;;  %v3330_v59 = vrot.slane %v4448_v10, %v5703_v12  ;;  %v3334_v42 = vrot.slane %v4448_v10, %v5705_v0  ;;  %v3290_v51 = vmul.f32 %v3283_v4, %v3269_v14 }
 0x6cc   : > { %v3263_v39 = vadd.f32 %v3261_v5, %v3246_v32  ;;  %v3262_v18 = vadd.f32 %v3260_v57, %v3245_v35  ;;  %v3291_v28 = vmul.f32 %v3287_v9, %v3270_v55  ;;  %v3307_v17 = vmul.f32 %v3300_v58, %v3275_v36  ;;  %v3361_v30 = vpop.permute.xlu1 %3360  ;;  %v3436_v57 = vld [vmem:[#allocation6 + $0x60] ss:$8 sm:$0x3] }
 0x6cd   : > { %v3308_v45 = vmul.f32 %v3304_v20, %v3276_v61  ;;  %vm3362_vm12 = vcmp.lt.s32.totalorder %v5701_v11, 78  ;;  %v3394_v23 = vrot.slane %v3389_v3, %v5703_v12  ;;  %v3322_v41 = vsel %vm3315_vm5, %v7817_v1, %v7816_v26  ;;  %v3312_v54 = vpop.permute.xlu0 %3311 }
 0x6ce   : > { %v3323_v27 = vsel %vm3315_vm5, %v7816_v26, %v7817_v1  ;;  %v3292_v60 = vadd.f32 %v3290_v51, %v3262_v18  ;;  %v3293_v25 = vadd.f32 %v3291_v28, %v3263_v39  ;;  %v3316_v58 = vsel %vm3315_vm5, %v3312_v54, %v3314_v13 }
 0x6cf   : > { %v3317_v22 = vsel %vm3315_vm5, %v3314_v13, %v3312_v54  ;;  %v3377_v24 = vrot.slane %v4449_v40, %v5703_v12  ;;  %v3381_v62 = vrot.slane %v4449_v40, %v5705_v0  ;;  %v3337_v20 = vmul.f32 %v3330_v59, %v3316_v58  ;;  %v7818_v58 = vld [vmem:[#allocation20_spill] sm:$0xff] }
 0x6d0   : > { %v3310_v48 = vadd.f32 %v3308_v45, %v3293_v25  ;;  %v3309_v7 = vadd.f32 %v3307_v17, %v3292_v60  ;;  %v3338_v6 = vmul.f32 %v3334_v42, %v3317_v22  ;;  %v3354_v46 = vmul.f32 %v3347_v29, %v3322_v41  ;;  %v3408_v5 = vpop.permute.xlu1 %3407 }
 0x6d1   : > { %v3355_v19 = vmul.f32 %v3351_v2, %v3323_v27  ;;  %v3398_v21 = vrot.slane %v3389_v3, %v5705_v0  ;;  %vm3409_vm13 = vcmp.lt.s32.totalorder %v5701_v11, 77  ;;  %v3359_v49 = vpop.permute.xlu0 %3358  ;;  %v3424_v38 = vrot.slane %v4450_v56, %v5703_v12  ;;  %v3941_v11 = vld [vmem:[#allocation9 + $0x48] sm:$0xff] }
 0x6d2   : > { %v3339_v53 = vadd.f32 %v3337_v20, %v3309_v7  ;;  %v3340_v52 = vadd.f32 %v3338_v6, %v3310_v48  ;;  %v3428_v34 = vrot.slane %v4450_v56, %v5705_v0  ;;  %v3369_v44 = vsel %vm3362_vm12, %v6500_v16, %v6498_v31  ;;  %v7820_v56 = vld [vmem:[#allocation26_spill] sm:$0xff]  ;;  %v7821_v7 = vld [vmem:[#allocation27_spill] sm:$0xff] }
 0x6d3   : > { %v3370_v4 = vsel %vm3362_vm12, %v6498_v31, %v6500_v16  ;;  %v3363_v9 = vsel %vm3362_vm12, %v3359_v49, %v3361_v30  ;;  %v3364_v8 = vsel %vm3362_vm12, %v3361_v30, %v3359_v49  ;;  %v3401_v29 = vmul.f32 %v3394_v23, %v3369_v44  ;;  %v7822_v6 = vld [vmem:[#allocation22_spill] sm:$0xff]  ;;  %v7824_v30 = vld [vmem:[#allocation24_spill] sm:$0xff] }
 0x6d4   : > { %v3357_v47 = vadd.f32 %v3355_v19, %v3340_v52  ;;  %v3356_v37 = vadd.f32 %v3354_v46, %v3339_v53  ;;  %v3384_v63 = vmul.f32 %v3377_v24, %v3363_v9  ;;  %v3385_v10 = vmul.f32 %v3381_v62, %v3364_v8  ;;  %v3415_v14 = vpop.permute.xlu1 %3414  ;;  %v7819_v24 = vld [vmem:[#allocation21_spill] sm:$0xff]  ;;  %v7823_v19 = vld [vmem:[#allocation23_spill] sm:$0xff] }
 0x6d5   : > { %v3402_v2 = vmul.f32 %v3398_v21, %v3370_v4  ;;  %v3406_v50 = vpop.permute.xlu0 %3405  ;;  %v3441_v36 = vrot.slane %v3436_v57, %v5703_v12  ;;  %v3445_v61 = vrot.slane %v3436_v57, %v5705_v0  ;;  %v7825_v52 = vld [vmem:[#allocation25_spill] sm:$0xff] }
 0x6d6   : > { %v3386_v15 = vadd.f32 %v3384_v63, %v3356_v37  ;;  %v3387_v43 = vadd.f32 %v3385_v10, %v3357_v47  ;;  %v3410_v31 = vsel %vm3409_vm13, %v3406_v50, %v3408_v5  ;;  %v3411_v16 = vsel %vm3409_vm13, %v3408_v5, %v3406_v50 }
 0x6d7   : > { %v3431_v32 = vmul.f32 %v3424_v38, %v3410_v31  ;;  %v3432_v33 = vmul.f32 %v3428_v34, %v3411_v16  ;;  %v3933_v38 = vld [vmem:[#allocation9 + $0x8] sm:$0xff]  ;;  %v4455_v34 = vld [vmem:[%s7473_s5 + $0x3] ss:$8 sm:$0x3] }
 0x6d8   : > { %v3404_v3 = vadd.f32 %v3402_v2, %v3387_v43  ;;  %v3403_v35 = vadd.f32 %v3401_v29, %v3386_v15  ;;  %4116 = vmatprep.mubr.f32.mxu1 %v3933_v38  ;;  %v3668_v44 = vrot.slane %v4455_v34, %v5703_v12  ;;  %v3672_v4 = vrot.slane %v4455_v34, %v5705_v0  ;;  %v4453_v34 = vld [vmem:[%s7473_s5 + $0x1] ss:$8 sm:$0x3] }
 0x6d9   : > { %v3413_v55 = vpop.permute.xlu0 %3412 }
 0x6da   : > { %v3416_v59 = vsel %vm3409_vm13, %v3413_v55, %v3415_v14  ;;  %v3417_v42 = vsel %vm3409_vm13, %v3415_v14, %v3413_v55  ;;  %v3433_v39 = vadd.f32 %v3431_v32, %v3403_v35  ;;  %v3434_v18 = vadd.f32 %v3432_v33, %v3404_v3  ;;  %v4016_v35 = vld [vmem:[%s7480_s12] sm:$0xff]  ;;  %v4017_v33 = vld [vmem:[%s7480_s12 + $0x8] sm:$0xff] }
 0x6db   : > { %v3448_v51 = vmul.f32 %v3441_v36, %v3416_v59  ;;  %v3449_v28 = vmul.f32 %v3445_v61, %v3417_v42  ;;  %v4454_v14 = vld [vmem:[%s7473_s5 + $0x2] ss:$8 sm:$0x3] }
 0x6dd   : > { %v3450_v40 = vadd.f32 %v3448_v51, %v3433_v39  ;;  %v3451_v17 = vadd.f32 %v3449_v28, %v3434_v18  ;;  %v3615_v51 = vrot.slane %v4454_v14, %v5703_v12  ;;  %v3619_v28 = vrot.slane %v4454_v14, %v5705_v0 }
 0x6df   : > { %v4451_v45 = vmul.f32 -1.442695, %v3450_v40  ;;  %v4452_v23 = vmul.f32 -1.442695, %v3451_v17  ;;  %v4018_v40 = vld [vmem:[%s7480_s12 + $0x10] sm:$0xff] }
 0x6e1   : > { %4656 = vpow2.f32 %v4451_v45  ;;  %v4019_v45 = vld [vmem:[%s7480_s12 + $0x18] sm:$0xff] }
 0x6e2   : > { %4658 = vpow2.f32 %v4452_v23 }
 0x6ee   : > { %v4657_v13 = vpop.eup %4656 }
 0x6ef   : > { %v4659_v26 = vpop.eup %4658  ;;  %v3458_v1 = vadd.f32 1.0, %v4657_v13 }
 0x6f0   : > { %v3459_v41 = vadd.f32 1.0, %v4659_v26 }
 0x6f1   : > { %4660 = vrcp.f32 %v3458_v1 }
 0x6f2   : > { %4662 = vrcp.f32 %v3459_v41 }
 0x6fe   : > { %v4661_v27 = vpop.eup %4660 }
 0x6ff   : > { %v4663_v60 = vpop.eup %4662  ;;  %v3467_v25 = vrot.slane %v4661_v27, %v5703_v12 }
 0x700   : > { %v3471_v54 = vrot.slane %v4663_v60, %v5703_v12 }
 0x701   : > { %v7052_v22 = vmul.f32 %v3467_v25, %v7818_v58  ;;  %v7062_v48 = vmul.f32 %v3467_v25, %v7820_v56  ;;  %v7072_v46 = vmul.f32 %v3467_v25, %v7822_v6  ;;  %v7082_v53 = vmul.f32 %v3467_v25, %v7824_v30 }
 0x702   : > { %v7055_v62 = vmul.f32 %v3471_v54, %v7819_v24  ;;  %v7065_v20 = vmul.f32 %v3471_v54, %v7821_v7  ;;  %v7075_v21 = vmul.f32 %v3471_v54, %v7823_v19  ;;  %v7085_v49 = vmul.f32 %v3471_v54, %v7825_v52 }
 0x703   : > { %3644 = vrot.lane.b32.xlu0 %v7052_v22, %s7718_s23 }
 0x704   : > { %3652 = vrot.lane.b32.xlu1 %v7055_v62, %s7718_s23 }
 0x707   : > { %3642 = vrot.lane.b32.xlu0 %v7062_v48, %s7718_s23 }
 0x708   : > { %3650 = vrot.lane.b32.xlu1 %v7065_v20, %s7718_s23 }
 0x70b   : > { %3640 = vrot.lane.b32.xlu0 %v7072_v46, %s7718_s23 }
 0x70c   : > { %3648 = vrot.lane.b32.xlu1 %v7075_v21, %s7718_s23 }
 0x70f   : > { %3638 = vrot.lane.b32.xlu0 %v7082_v53, %s7718_s23 }
 0x710   : > { %3646 = vrot.lane.b32.xlu1 %v7085_v49, %s7718_s23  ;;  %s4902_s23 = smov [#allocation11]  }
 0x713   : > { %3591 = vrot.lane.b32.xlu0 %v7052_v22, %s7703_s24 }
 0x714   : > { %3599 = vrot.lane.b32.xlu1 %v7055_v62, %s7703_s24 }
 0x717   : > { %3589 = vrot.lane.b32.xlu0 %v7062_v48, %s7703_s24 }
 0x718   : > { %3597 = vrot.lane.b32.xlu1 %v7065_v20, %s7703_s24 }
 0x71b   : > { %3587 = vrot.lane.b32.xlu0 %v7072_v46, %s7703_s24 }
 0x71c   : > { %3595 = vrot.lane.b32.xlu1 %v7075_v21, %s7703_s24 }
 0x71f   : > { %3585 = vrot.lane.b32.xlu0 %v7082_v53, %s7703_s24 }
 0x720   : > { %3593 = vrot.lane.b32.xlu1 %v7085_v49, %s7703_s24 }
 0x723   : > { %3538 = vrot.lane.b32.xlu0 %v7052_v22, %s7700_s21 }
 0x724   : > { %3546 = vrot.lane.b32.xlu1 %v7055_v62, %s7700_s21 }
 0x727   : > { %3536 = vrot.lane.b32.xlu0 %v7062_v48, %s7700_s21 }
 0x728   : > { %3544 = vrot.lane.b32.xlu1 %v7065_v20, %s7700_s21 }
 0x72b   : > { %3534 = vrot.lane.b32.xlu0 %v7072_v46, %s7700_s21 }
 0x72c   : > { %3542 = vrot.lane.b32.xlu1 %v7075_v21, %s7700_s21 }
 0x72f   : > { %3532 = vrot.lane.b32.xlu0 %v7082_v53, %s7700_s21 }
 0x730   : > { %3540 = vrot.lane.b32.xlu1 %v7085_v49, %s7700_s21 }
 0x733   : > { %3486 = vrot.lane.b32.xlu0 %v7052_v22, %s7697_s30 }
 0x734   : > { %3494 = vrot.lane.b32.xlu1 %v7055_v62, %s7697_s30 }
 0x737   : > { %3484 = vrot.lane.b32.xlu0 %v7062_v48, %s7697_s30 }
 0x738   : > { %3492 = vrot.lane.b32.xlu1 %v7065_v20, %s7697_s30 }
 0x73b   : > { %3482 = vrot.lane.b32.xlu0 %v7072_v46, %s7697_s30 }
 0x73c   : > { %3490 = vrot.lane.b32.xlu1 %v7075_v21, %s7697_s30 }
 0x73f   : > { %3480 = vrot.lane.b32.xlu0 %v7082_v53, %s7697_s30 }
 0x740   : > { %3488 = vrot.lane.b32.xlu1 %v7085_v49, %s7697_s30 }
 0x743   : > { %3832 = vrot.lane.b32.xlu0 %v7052_v22, %s7736_s16 }
 0x744   : > { %3840 = vrot.lane.b32.xlu1 %v7055_v62, %s7736_s16 }
 0x747   : > { %3830 = vrot.lane.b32.xlu0 %v7062_v48, %s7736_s16 }
 0x748   : > { %3838 = vrot.lane.b32.xlu1 %v7065_v20, %s7736_s16 }
 0x74b   : > { %3828 = vrot.lane.b32.xlu0 %v7072_v46, %s7736_s16 }
 0x74c   : > { %3836 = vrot.lane.b32.xlu1 %v7075_v21, %s7736_s16 }
 0x74f   : > { %3826 = vrot.lane.b32.xlu0 %v7082_v53, %s7736_s16 }
 0x750   : > { %3834 = vrot.lane.b32.xlu1 %v7085_v49, %s7736_s16 }
 0x753   : > { %3779 = vrot.lane.b32.xlu0 %v7052_v22, %s7735_s14 }
 0x754   : > { %3787 = vrot.lane.b32.xlu1 %v7055_v62, %s7735_s14 }
 0x757   : > { %3777 = vrot.lane.b32.xlu0 %v7062_v48, %s7735_s14 }
 0x758   : > { %3785 = vrot.lane.b32.xlu1 %v7065_v20, %s7735_s14 }
 0x75b   : > { %3775 = vrot.lane.b32.xlu0 %v7072_v46, %s7735_s14 }
 0x75c   : > { %3783 = vrot.lane.b32.xlu1 %v7075_v21, %s7735_s14 }
 0x75f   : > { %3773 = vrot.lane.b32.xlu0 %v7082_v53, %s7735_s14 }
 0x760   : > { %3781 = vrot.lane.b32.xlu1 %v7085_v49, %s7735_s14  ;;  %s502_s14 = sand.u32 1, %s4833_s26  }
 0x761   : > { %s4379_s16 = sshll.u32 %s502_s14, 6 }
 0x762   : > { %s7406_s27 = scalar_lea.vmem [#allocation11], %s4379_s16 }
 0x763   : > { %3726 = vrot.lane.b32.xlu0 %v7052_v22, %s7723_s17  ;;  %s4252_s19 = sshll.u32 %s7406_s27, 4  ;;  %s7416_s19 = int_to_ptr.vmem [resolvable:$true] %s4252_s19 }
 0x764   : > { %3734 = vrot.lane.b32.xlu1 %v7055_v62, %s7723_s17  ;;  %s4769_s24 = scalar_lea.vmem %s7416_s19, 1024 }
 0x765   : > { %p4770_p1 = scmp.ne.s32.totalorder %s7416_s19, %s4769_s24 }
 0x767   : > { %3724 = vrot.lane.b32.xlu0 %v7062_v48, %s7723_s17  ;;  %p4771_p2 = pnand %p4770_p1, %p7827_p3 }
 0x768   : > { %3732 = vrot.lane.b32.xlu1 %v7065_v20, %s7723_s17 }
 0x769   : > { %p4772_p4 = pneg %p4771_p2 }
 0x76b   : > { %3722 = vrot.lane.b32.xlu0 %v7072_v46, %s7723_s17 }
 0x76c   : > { %3730 = vrot.lane.b32.xlu1 %v7075_v21, %s7723_s17 }
 0x76f   : > { %3720 = vrot.lane.b32.xlu0 %v7082_v53, %s7723_s17 }
 0x770   : > { %3728 = vrot.lane.b32.xlu1 %v7085_v49, %s7723_s17  ;;  %s4773_s17 = sshll.u32 %s4902_s23, 4  ;;  %s4774_s17 = int_to_ptr.vmem [resolvable:$false] %s4773_s17 }
 0x771   : > { %s4775_s16 = scalar_lea.vmem %s4774_s17, 2048  ;;  %p4776_p5 = scmp.lt.s32.totalorder %s7416_s19, %s4774_s17 }
 0x772   : > { %p4777_p7 = scmp.lt.s32.totalorder %s4775_s16, %s4769_s24 }
 0x773   : > { %3885 = vrot.lane.b32.xlu0 %v7052_v22, %s7737_s20 }
 0x774   : > { %3893 = vrot.lane.b32.xlu1 %v7055_v62, %s7737_s20  ;;  %p4778_p8 = por %p4777_p7, %p4776_p5 }
 0x775   : > { %v3645_v9 = vpop.permute.xlu0 %3644 }
 0x776   : > { %v3653_v8 = vpop.permute.xlu1 %3652  ;;  %p4779_p13 = pnand %p4778_p8, %p4772_p4 }
 0x777   : > { %v3657_v47 = vsel %vm2247_vm15, %v3645_v9, %v3653_v8  ;;  %v3661_v37 = vsel %vm2247_vm15, %v3653_v8, %v3645_v9  ;;  %3883 = vrot.lane.b32.xlu0 %v7062_v48, %s7737_s20 }
 0x778   : > { %v3681_v63 = vmul.f32 %v3668_v44, %v3661_v37  ;;  %v3682_v10 = vmul.f32 %v3672_v4, %v3657_v47  ;;  %3891 = vrot.lane.b32.xlu1 %v7065_v20, %s7737_s20  ;;  %v3562_v37 = vrot.slane %v4453_v34, %v5703_v12 }
 0x779   : > { %v3643_v57 = vpop.permute.xlu0 %3642 }
 0x77a   : > { %v3651_v5 = vpop.permute.xlu1 %3650  ;;  %4052 = vmatprep.subr.mxu1 %v3682_v10 }
 0x77b   : > { %v3656_v29 = vsel %vm2247_vm15, %v3643_v57, %v3651_v5  ;;  %v3660_v2 = vsel %vm2247_vm15, %v3651_v5, %v3643_v57  ;;  %4053 = vmatpush1.msra.mxu1 %v3681_v63  ;;  %3881 = vrot.lane.b32.xlu0 %v7072_v46, %s7737_s20  ;;  %v3566_v63 = vrot.slane %v4453_v34, %v5705_v0 }
 0x77c   : > { %v3679_v15 = vmul.f32 %v3668_v44, %v3660_v2  ;;  %v3680_v43 = vmul.f32 %v3672_v4, %v3656_v29  ;;  %3889 = vrot.lane.b32.xlu1 %v7075_v21, %s7737_s20 }
 0x77d   : > { %v3641_v50 = vpop.permute.xlu0 %3640 }
 0x77e   : > { %v3649_v31 = vpop.permute.xlu1 %3648  ;;  %4054 = vmatprep.subr.mxu1 %v3680_v43 }
 0x77f   : > { %v3655_v16 = vsel %vm2247_vm15, %v3641_v50, %v3649_v31  ;;  %v3659_v36 = vsel %vm2247_vm15, %v3649_v31, %v3641_v50  ;;  %4055 = vmatpush1.msra.mxu1 %v3679_v15  ;;  %3879 = vrot.lane.b32.xlu0 %v7082_v53, %s7737_s20 }
 0x780   : > { %v3677_v61 = vmul.f32 %v3668_v44, %v3659_v36  ;;  %v3678_v3 = vmul.f32 %v3672_v4, %v3655_v16  ;;  %3887 = vrot.lane.b32.xlu1 %v7085_v49, %s7737_s20  ;;  %s4470_s20 = sshll.u32 %s4996_s29, 8  ;;  %s7427_s29 = scalar_lea.sflag [#allocation5], %s502_s14 }
 0x781   : > { %v3639_v32 = vpop.permute.xlu0 %3638  ;;  %s7421_s30 = scalar_lea.hbm %s7481_s13, %s4470_s20 }
 0x782   : > { %v3647_v55 = vpop.permute.xlu1 %3646  ;;  %4056 = vmatprep.subr.mxu1 %v3678_v3 }
 0x783   : > { %v3654_v59 = vsel %vm2247_vm15, %v3639_v32, %v3647_v55  ;;  %v3658_v42 = vsel %vm2247_vm15, %v3647_v55, %v3639_v32  ;;  %4057 = vmatpush1.msra.mxu1 %v3677_v61  ;;  %4022 = vperm.xlu0 %4637, %v4016_v35  }
 0x784   : > { %v3675_v39 = vmul.f32 %v3668_v44, %v3658_v42  ;;  %v3676_v18 = vmul.f32 %v3672_v4, %v3654_v59  ;;  %4027 = vperm.xlu1 %4638, %v4017_v33   ;;  %v3504_v42 = vld [vmem:[%s7473_s5] ss:$8 sm:$0x3] }
 0x785   : > { %v3592_v17 = vpop.permute.xlu0 %3591 }
 0x786   : > { %v3600_v23 = vpop.permute.xlu1 %3599  ;;  %4058 = vmatprep.subr.mxu1 %v3676_v18 }
 0x787   : > { %v3604_v13 = vsel %vm2012_vm10, %v3592_v17, %v3600_v23  ;;  %v3608_v26 = vsel %vm2012_vm10, %v3600_v23, %v3592_v17  ;;  %4059 = vmatpush1.msra.mxu1 %v3675_v39  ;;  %4032 = vperm.xlu0 %4637, %v4018_v40   ;;  %v3509_v17 = vrot.slane %v3504_v42, %v5703_v12 }
 0x788   : > { %v3628_v1 = vmul.f32 %v3615_v51, %v3608_v26  ;;  %v3629_v41 = vmul.f32 %v3619_v28, %v3604_v13  ;;  %4037 = vperm.xlu1 %4638, %v4019_v45   ;;  %v3513_v45 = vrot.slane %v3504_v42, %v5705_v0 }
 0x789   : > { %v3590_v27 = vpop.permute.xlu0 %3589 }
 0x78a   : > { %v3598_v60 = vpop.permute.xlu1 %3597  ;;  %4060 = vmatprep.subr.mxu1 %v3629_v41 }
 0x78b   : > { %v3603_v25 = vsel %vm2012_vm10, %v3590_v27, %v3598_v60  ;;  %v3607_v54 = vsel %vm2012_vm10, %v3598_v60, %v3590_v27  ;;  %4061 = vmatpush1.msra.mxu1 %v3628_v1 }
 0x78c   : > { %v3626_v58 = vmul.f32 %v3615_v51, %v3607_v54  ;;  %v3627_v24 = vmul.f32 %v3619_v28, %v3603_v25 }
 0x78d   : > { %v3588_v56 = vpop.permute.xlu0 %3587 }
 0x78e   : > { %v3596_v7 = vpop.permute.xlu1 %3595  ;;  %4062 = vmatprep.subr.mxu1 %v3627_v24 }
 0x78f   : > { %v3602_v6 = vsel %vm2012_vm10, %v3588_v56, %v3596_v7  ;;  %v3606_v19 = vsel %vm2012_vm10, %v3596_v7, %v3588_v56  ;;  %4063 = vmatpush1.msra.mxu1 %v3626_v58 }
 0x790   : > { %v3624_v30 = vmul.f32 %v3615_v51, %v3606_v19  ;;  %v3625_v52 = vmul.f32 %v3619_v28, %v3602_v6 }
 0x791   : > { %v3586_v38 = vpop.permute.xlu0 %3585 }
 0x792   : > { %v3594_v44 = vpop.permute.xlu1 %3593  ;;  %4064 = vmatprep.subr.mxu1 %v3625_v52 }
 0x793   : > { %v3601_v4 = vsel %vm2012_vm10, %v3586_v38, %v3594_v44  ;;  %v3605_v9 = vsel %vm2012_vm10, %v3594_v44, %v3586_v38  ;;  %4065 = vmatpush1.msra.mxu1 %v3624_v30  ;;  %v4459_v44 = vld [vmem:[%s7473_s5 + $0x7] ss:$8 sm:$0x3] }
 0x794   : > { %v3622_v8 = vmul.f32 %v3615_v51, %v3605_v9  ;;  %v3623_v47 = vmul.f32 %v3619_v28, %v3601_v4 }
 0x795   : > { %v3539_v10 = vpop.permute.xlu0 %3538 }
 0x796   : > { %v3547_v57 = vpop.permute.xlu1 %3546  ;;  %4066 = vmatprep.subr.mxu1 %v3623_v47 }
 0x797   : > { %v3551_v5 = vsel %vm1965_vm9, %v3539_v10, %v3547_v57  ;;  %v3555_v29 = vsel %vm1965_vm9, %v3547_v57, %v3539_v10  ;;  %4067 = vmatpush1.msra.mxu1 %v3622_v8  ;;  %v3860_v10 = vrot.slane %v4459_v44, %v5705_v0 }
 0x798   : > { %v3575_v2 = vmul.f32 %v3562_v37, %v3555_v29  ;;  %v3576_v15 = vmul.f32 %v3566_v63, %v3551_v5 }
 0x799   : > { %v3537_v43 = vpop.permute.xlu0 %3536 }
 0x79a   : > { %v3545_v50 = vpop.permute.xlu1 %3544  ;;  %4068 = vmatprep.subr.mxu1 %v3576_v15 }
 0x79b   : > { %v3550_v31 = vsel %vm1965_vm9, %v3537_v43, %v3545_v50  ;;  %v3554_v16 = vsel %vm1965_vm9, %v3545_v50, %v3537_v43  ;;  %4069 = vmatpush1.msra.mxu1 %v3575_v2 }
 0x79c   : > { %v3573_v36 = vmul.f32 %v3562_v37, %v3554_v16  ;;  %v3574_v61 = vmul.f32 %v3566_v63, %v3550_v31 }
 0x79d   : > { %v3535_v3 = vpop.permute.xlu0 %3534 }
 0x79e   : > { %v3543_v35 = vpop.permute.xlu1 %3542  ;;  %4070 = vmatprep.subr.mxu1 %v3574_v61 }
 0x79f   : > { %v3549_v32 = vsel %vm1965_vm9, %v3535_v3, %v3543_v35  ;;  %v3553_v33 = vsel %vm1965_vm9, %v3543_v35, %v3535_v3  ;;  %4071 = vmatpush1.msra.mxu1 %v3573_v36 }
 0x7a0   : > { %v3571_v14 = vmul.f32 %v3562_v37, %v3553_v33  ;;  %v3572_v55 = vmul.f32 %v3566_v63, %v3549_v32 }
 0x7a1   : > { %v3533_v59 = vpop.permute.xlu0 %3532 }
 0x7a2   : > { %v3541_v39 = vpop.permute.xlu1 %3540  ;;  %4072 = vmatprep.subr.mxu1 %v3572_v55 }
 0x7a3   : > { %v3548_v18 = vsel %vm1965_vm9, %v3533_v59, %v3541_v39  ;;  %v3552_v51 = vsel %vm1965_vm9, %v3541_v39, %v3533_v59  ;;  %4073 = vmatpush1.msra.mxu1 %v3571_v14  ;;  %v4458_v39 = vld [vmem:[%s7473_s5 + $0x6] ss:$8 sm:$0x3] }
 0x7a4   : > { %v3569_v28 = vmul.f32 %v3562_v37, %v3552_v51  ;;  %v3570_v40 = vmul.f32 %v3566_v63, %v3548_v18  ;;  %v3856_v63 = vrot.slane %v4459_v44, %v5703_v12 }
 0x7a5   : > { %v3487_v23 = vpop.permute.xlu0 %3486 }
 0x7a6   : > { %v3495_v13 = vpop.permute.xlu1 %3494  ;;  %4074 = vmatprep.subr.mxu1 %v3570_v40 }
 0x7a7   : > { %v3499_v26 = vsel %vm1918_vm8, %v3487_v23, %v3495_v13  ;;  %v3503_v1 = vsel %vm1918_vm8, %v3495_v13, %v3487_v23  ;;  %4075 = vmatpush1.msra.mxu1 %v3569_v28  ;;  %v3807_v23 = vrot.slane %v4458_v39, %v5705_v0 }
 0x7a8   : > { %v3522_v41 = vmul.f32 %v3509_v17, %v3503_v1  ;;  %v3523_v27 = vmul.f32 %v3513_v45, %v3499_v26 }
 0x7a9   : > { %v3485_v60 = vpop.permute.xlu0 %3484 }
 0x7aa   : > { %v3493_v25 = vpop.permute.xlu1 %3492  ;;  %4076 = vmatprep.subr.mxu1 %v3523_v27 }
 0x7ab   : > { %v3498_v54 = vsel %vm1918_vm8, %v3485_v60, %v3493_v25  ;;  %v3502_v58 = vsel %vm1918_vm8, %v3493_v25, %v3485_v60  ;;  %4077 = vmatpush1.msra.mxu1 %v3522_v41 }
 0x7ac   : > { %v3520_v24 = vmul.f32 %v3509_v17, %v3502_v58  ;;  %v3521_v56 = vmul.f32 %v3513_v45, %v3498_v54 }
 0x7ad   : > { %v3483_v7 = vpop.permute.xlu0 %3482 }
 0x7ae   : > { %v3491_v6 = vpop.permute.xlu1 %3490  ;;  %4078 = vmatprep.subr.mxu1 %v3521_v56 }
 0x7af   : > { %v3497_v19 = vsel %vm1918_vm8, %v3483_v7, %v3491_v6  ;;  %v3501_v30 = vsel %vm1918_vm8, %v3491_v6, %v3483_v7  ;;  %4079 = vmatpush1.msra.mxu1 %v3520_v24 }
 0x7b0   : > { %v3518_v52 = vmul.f32 %v3509_v17, %v3501_v30  ;;  %v3519_v38 = vmul.f32 %v3513_v45, %v3497_v19 }
 0x7b1   : > { %v3481_v34 = vpop.permute.xlu0 %3480 }
 0x7b2   : > { %v3489_v4 = vpop.permute.xlu1 %3488  ;;  %4080 = vmatprep.subr.mxu1 %v3519_v38 }
 0x7b3   : > { %v3496_v9 = vsel %vm1918_vm8, %v3481_v34, %v3489_v4  ;;  %v3500_v8 = vsel %vm1918_vm8, %v3489_v4, %v3481_v34  ;;  %4081 = vmatpush1.msra.mxu1 %v3518_v52  ;;  %v4457_v4 = vld [vmem:[%s7473_s5 + $0x5] ss:$8 sm:$0x3] }
 0x7b4   : > { %v3516_v47 = vmul.f32 %v3509_v17, %v3500_v8  ;;  %v3517_v37 = vmul.f32 %v3513_v45, %v3496_v9  ;;  %v3803_v45 = vrot.slane %v4458_v39, %v5703_v12 }
 0x7b5   : > { %v3833_v57 = vpop.permute.xlu0 %3832 }
 0x7b6   : > { %v3841_v5 = vpop.permute.xlu1 %3840  ;;  %4082 = vmatprep.subr.mxu1 %v3517_v37 }
 0x7b7   : > { %v3845_v29 = vsel %vm2610_vm7, %v3833_v57, %v3841_v5  ;;  %v3849_v2 = vsel %vm2610_vm7, %v3841_v5, %v3833_v57  ;;  %4083 = vmatpush1.msra.mxu1 %v3516_v47  ;;  %v3754_v57 = vrot.slane %v4457_v4, %v5705_v0 }
 0x7b8   : > { %v3869_v15 = vmul.f32 %v3856_v63, %v3845_v29  ;;  %v3870_v43 = vmul.f32 %v3860_v10, %v3849_v2 }
 0x7b9   : > { %v3831_v50 = vpop.permute.xlu0 %3830 }
 0x7ba   : > { %v3839_v31 = vpop.permute.xlu1 %3838  ;;  %4084 = vmatprep.subr.mxu1 %v3870_v43 }
 0x7bb   : > { %v3844_v16 = vsel %vm2610_vm7, %v3831_v50, %v3839_v31  ;;  %v3848_v36 = vsel %vm2610_vm7, %v3839_v31, %v3831_v50  ;;  %4085 = vmatpush2.msra.mxu1 %v3869_v15 }
 0x7bc   : > { %v3867_v61 = vmul.f32 %v3856_v63, %v3844_v16  ;;  %v3868_v3 = vmul.f32 %v3860_v10, %v3848_v36 }
 0x7bd   : > { %v3829_v35 = vpop.permute.xlu0 %3828 }
 0x7be   : > { %v3837_v32 = vpop.permute.xlu1 %3836  ;;  %4086 = vmatprep.subr.mxu1 %v3868_v3 }
 0x7bf   : > { %v3843_v33 = vsel %vm2610_vm7, %v3829_v35, %v3837_v32  ;;  %v3847_v14 = vsel %vm2610_vm7, %v3837_v32, %v3829_v35  ;;  %4087 = vmatpush2.msra.mxu1 %v3867_v61 }
 0x7c0   : > { %v3865_v55 = vmul.f32 %v3856_v63, %v3843_v33  ;;  %v3866_v59 = vmul.f32 %v3860_v10, %v3847_v14 }
 0x7c1   : > { %v3827_v42 = vpop.permute.xlu0 %3826 }
 0x7c2   : > { %v3835_v18 = vpop.permute.xlu1 %3834  ;;  %4088 = vmatprep.subr.mxu1 %v3866_v59  ;;  %v4456_v59 = vld [vmem:[%s7473_s5 + $0x4] ss:$8 sm:$0x3] }
 0x7c3   : > { %v3842_v51 = vsel %vm2610_vm7, %v3827_v42, %v3835_v18  ;;  %v3846_v28 = vsel %vm2610_vm7, %v3835_v18, %v3827_v42  ;;  %4089 = vmatpush2.msra.mxu1 %v3865_v55 }
 0x7c4   : > { %v3863_v40 = vmul.f32 %v3856_v63, %v3842_v51  ;;  %v3864_v17 = vmul.f32 %v3860_v10, %v3846_v28  ;;  %v3750_v10 = vrot.slane %v4457_v4, %v5703_v12  ;;  %v4460_v51 = vld [vmem:[%s7473_s5 + $0x10] ss:$8 sm:$0x3] }
 0x7c5   : > { %v3780_v13 = vpop.permute.xlu0 %3779 }
 0x7c6   : > { %v3788_v26 = vpop.permute.xlu1 %3787  ;;  %4090 = vmatprep.subr.mxu1 %v3864_v17 }
 0x7c7   : > { %v3792_v1 = vsel %vm2563_vm6, %v3780_v13, %v3788_v26  ;;  %v3796_v41 = vsel %vm2563_vm6, %v3788_v26, %v3780_v13  ;;  %4091 = vmatpush2.msra.mxu1 %v3863_v40  ;;  %v3701_v40 = vrot.slane %v4456_v59, %v5705_v0 }
 0x7c8   : > { %v3816_v27 = vmul.f32 %v3803_v45, %v3792_v1  ;;  %v3817_v60 = vmul.f32 %v3807_v23, %v3796_v41  ;;  %v3909_v1 = vrot.slane %v4460_v51, %v5703_v12  ;;  %v3913_v41 = vrot.slane %v4460_v51, %v5705_v0 }
 0x7c9   : > { %v3778_v25 = vpop.permute.xlu0 %3777 }
 0x7ca   : > { %v3786_v54 = vpop.permute.xlu1 %3785  ;;  %4092 = vmatprep.subr.mxu1 %v3817_v60 }
 0x7cb   : > { %v3791_v58 = vsel %vm2563_vm6, %v3778_v25, %v3786_v54  ;;  %v3795_v24 = vsel %vm2563_vm6, %v3786_v54, %v3778_v25  ;;  %4093 = vmatpush2.msra.mxu1 %v3816_v27  ;;  %v3711_v25 = vmul.f32 %v3701_v40, %v7055_v62  ;;  %v3707_v62 = vmul.f32 %v3701_v40, %v7075_v21  ;;  %v3932_v21 = vld [vmem:[#allocation9] sm:$0xff] }
 0x7cc   : > { %v3814_v56 = vmul.f32 %v3803_v45, %v3791_v58  ;;  %v3815_v7 = vmul.f32 %v3807_v23, %v3795_v24 }
 0x7cd   : > { %v3776_v6 = vpop.permute.xlu0 %3775 }
 0x7ce   : > { %v3784_v19 = vpop.permute.xlu1 %3783  ;;  %4094 = vmatprep.subr.mxu1 %v3815_v7 }
 0x7cf   : > { %v3790_v30 = vsel %vm2563_vm6, %v3776_v6, %v3784_v19  ;;  %v3794_v52 = vsel %vm2563_vm6, %v3784_v19, %v3776_v6  ;;  %4095 = vmatpush2.msra.mxu1 %v3814_v56 }
 0x7d0   : > { %v3812_v38 = vmul.f32 %v3803_v45, %v3790_v30  ;;  %v3813_v34 = vmul.f32 %v3807_v23, %v3794_v52 }
 0x7d1   : > { %v3774_v44 = vpop.permute.xlu0 %3773 }
 0x7d2   : > { %v3782_v9 = vpop.permute.xlu1 %3781  ;;  %4096 = vmatprep.subr.mxu1 %v3813_v34 }
 0x7d3   : > { %v3789_v8 = vsel %vm2563_vm6, %v3774_v44, %v3782_v9  ;;  %v3793_v47 = vsel %vm2563_vm6, %v3782_v9, %v3774_v44  ;;  %4097 = vmatpush2.msra.mxu1 %v3812_v38  ;;  %v3936_v9 = vld [vmem:[#allocation9 + $0x20] sm:$0xff] }
 0x7d4   : > { %v3810_v37 = vmul.f32 %v3803_v45, %v3789_v8  ;;  %v3811_v63 = vmul.f32 %v3807_v23, %v3793_v47  ;;  %v3697_v23 = vrot.slane %v4456_v59, %v5703_v12  ;;  %v3709_v12 = vmul.f32 %v3701_v40, %v7065_v20 }
 0x7d5   : > { %v3727_v5 = vpop.permute.xlu0 %3726 }
 0x7d6   : > { %v3735_v29 = vpop.permute.xlu1 %3734  ;;  %4098 = vmatprep.subr.mxu1 %v3811_v63  ;;  %v3710_v24 = vmul.f32 %v3697_v23, %v7052_v22  ;;  %v3708_v6 = vmul.f32 %v3697_v23, %v7062_v48  ;;  %v3706_v52 = vmul.f32 %v3697_v23, %v7072_v46  ;;  %v3705_v48 = vmul.f32 %v3701_v40, %v7085_v49  ;;  %v3935_v63 = vld [vmem:[#allocation9 + $0x18] sm:$0xff] }
 0x7d7   : > { %v3739_v2 = vsel %vm2328_vm0, %v3727_v5, %v3735_v29  ;;  %v3743_v15 = vsel %vm2328_vm0, %v3735_v29, %v3727_v5  ;;  %4099 = vmatpush2.msra.mxu1 %v3810_v37  ;;  %v3704_v44 = vmul.f32 %v3697_v23, %v7082_v53 }
 0x7d8   : > { %v3763_v43 = vmul.f32 %v3750_v10, %v3739_v2  ;;  %v3764_v50 = vmul.f32 %v3754_v57, %v3743_v15  ;;  %v3938_v15 = vld [vmem:[#allocation9 + $0x30] sm:$0xff] }
 0x7d9   : > { %v3725_v31 = vpop.permute.xlu0 %3724 }
 0x7da   : > { %v3733_v16 = vpop.permute.xlu1 %3732  ;;  %4100 = vmatprep.subr.mxu1 %v3764_v50  ;;  %v3942_v50 = vld [vmem:[#allocation9 + $0x50] sm:$0xff] }
 0x7db   : > { %v3738_v36 = vsel %vm2328_vm0, %v3725_v31, %v3733_v16  ;;  %v3742_v61 = vsel %vm2328_vm0, %v3733_v16, %v3725_v31  ;;  %4101 = vmatpush2.msra.mxu1 %v3763_v43  ;;  %v3934_v43 = vld [vmem:[#allocation9 + $0x10] sm:$0xff]  ;;  %v7826_v31 = vmov 0.0   ;;  %v3937_v16 = vld [vmem:[#allocation9 + $0x28] sm:$0xff] }
 0x7dc   : > { %v3761_v3 = vmul.f32 %v3750_v10, %v3738_v36  ;;  %v3762_v35 = vmul.f32 %v3754_v57, %v3742_v61  ;;  %v3940_v36 = vld [vmem:[#allocation9 + $0x40] sm:$0xff]  ;;  %v3943_v61 = vld [vmem:[#allocation9 + $0x58] sm:$0xff] }
 0x7dd   : > { %v3723_v32 = vpop.permute.xlu0 %3722 }
 0x7de   : > { %v3731_v33 = vpop.permute.xlu1 %3730  ;;  %4102 = vmatprep.subr.mxu1 %v3762_v35 }
 0x7df   : > { %v3737_v14 = vsel %vm2328_vm0, %v3723_v32, %v3731_v33  ;;  %v3741_v55 = vsel %vm2328_vm0, %v3731_v33, %v3723_v32  ;;  %4103 = vmatpush2.msra.mxu1 %v3761_v3 }
 0x7e0   : > { %v3759_v42 = vmul.f32 %v3750_v10, %v3737_v14  ;;  %v3760_v39 = vmul.f32 %v3754_v57, %v3741_v55 }
 0x7e1   : > { %v3721_v18 = vpop.permute.xlu0 %3720 }
 0x7e2   : > { %v3729_v28 = vpop.permute.xlu1 %3728  ;;  %4104 = vmatprep.subr.mxu1 %v3760_v39 }
 0x7e3   : > { %v3736_v17 = vsel %vm2328_vm0, %v3721_v18, %v3729_v28  ;;  %v3740_v45 = vsel %vm2328_vm0, %v3729_v28, %v3721_v18  ;;  %4105 = vmatpush2.msra.mxu1 %v3759_v42 }
 0x7e4   : > { %v3757_v13 = vmul.f32 %v3750_v10, %v3736_v17  ;;  %v3758_v26 = vmul.f32 %v3754_v57, %v3740_v45  ;;  %v3939_v10 = vld [vmem:[#allocation9 + $0x38] sm:$0xff] }
 0x7e5   : > { %v3886_v27 = vpop.permute.xlu0 %3885 }
 0x7e6   : > { %v3894_v60 = vpop.permute.xlu1 %3893  ;;  %4106 = vmatprep.subr.mxu1 %v3758_v26 }
 0x7e7   : > { %v3898_v54 = vsel %vm2657_vm11, %v3886_v27, %v3894_v60  ;;  %v3902_v58 = vsel %vm2657_vm11, %v3894_v60, %v3886_v27  ;;  %4107 = vmatpush2.msra.mxu1 %v3757_v13 }
 0x7e8   : > { %v3922_v56 = vmul.f32 %v3909_v1, %v3898_v54  ;;  %v3923_v7 = vmul.f32 %v3913_v41, %v3902_v58  ;;  %4108 = vmatprep.subr.mxu1 %v3711_v25 }
 0x7e9   : > { %4109 = vmatpush2.msra.mxu1 %v3710_v24  ;;  %v3884_v0 = vpop.permute.xlu0 %3883 }
 0x7ea   : > { %v3892_v19 = vpop.permute.xlu1 %3891  ;;  %4110 = vmatprep.subr.mxu1 %v3709_v12  ;;  %4165 = vmatprep.subr.mxu0 %v3923_v7 }
 0x7eb   : > { %v3897_v30 = vsel %vm2657_vm11, %v3884_v0, %v3892_v19  ;;  %v3901_v22 = vsel %vm2657_vm11, %v3892_v19, %v3884_v0  ;;  %4111 = vmatpush2.msra.mxu1 %v3708_v6  ;;  %4166 = vmatpush1.msra.mxu0 %v3922_v56 }
 0x7ec   : > { %v3920_v20 = vmul.f32 %v3909_v1, %v3897_v30  ;;  %v3921_v38 = vmul.f32 %v3913_v41, %v3901_v22  ;;  %4112 = vmatprep.subr.mxu1 %v3707_v62 }
 0x7ed   : > { %4113 = vmatpush2.msra.mxu1 %v3706_v52  ;;  %v3882_v34 = vpop.permute.xlu0 %3881 }
 0x7ee   : > { %v3890_v4 = vpop.permute.xlu1 %3889  ;;  %4114 = vmatprep.subr.mxu1 %v3705_v48  ;;  %4167 = vmatprep.subr.mxu0 %v3921_v38 }
 0x7ef   : > { %v3896_v8 = vsel %vm2657_vm11, %v3882_v34, %v3890_v4  ;;  %v3900_v46 = vsel %vm2657_vm11, %v3890_v4, %v3882_v34  ;;  %4115 = vmatpush2.msra.mxu1 %v3704_v44  ;;  %4168 = vmatpush1.msra.mxu0 %v3920_v20 }
 0x7f0   : > { %v3918_v47 = vmul.f32 %v3909_v1, %v3896_v8  ;;  %v3919_v37 = vmul.f32 %v3913_v41, %v3900_v46  ;;  %4117 = vmatmul.mubr.f32.vlgmr.msra.gmra.mxu1 %v3932_v21 }
 0x7f1   : > { %v3880_v49 = vpop.permute.xlu0 %3879  ;;  %4122 = vmatprep.mubr.f32.mxu1 %v3936_v9 }
 0x7f2   : > { %v3888_v53 = vpop.permute.xlu1 %3887  ;;  %4169 = vmatprep.subr.mxu0 %v3919_v37 }
 0x7f3   : > { %v3895_v57 = vsel %vm2657_vm11, %v3880_v49, %v3888_v53  ;;  %v3899_v5 = vsel %vm2657_vm11, %v3888_v53, %v3880_v49  ;;  %4170 = vmatpush1.msra.mxu0 %v3918_v47 }
 0x7f4   : > { %v3916_v29 = vmul.f32 %v3909_v1, %v3895_v57  ;;  %v3917_v2 = vmul.f32 %v3913_v41, %v3899_v5  ;;  %4123 = vmatmul.mubr.f32.gmra.mxu1 %v3935_v63 }
 0x7f5   : > { %4128 = vmatprep.mubr.f32.mxu1 %v3939_v10 }
 0x7f6   : > { %4171 = vmatprep.subr.mxu0 %v3917_v2 }
 0x7f7   : > { %4172 = vmatpush1.msra.mxu0 %v3916_v29 }
 0x7f8   : > { %4129 = vmatmul.mubr.f32.gmra.mxu1 %v3938_v15  ;;  %4461 = vmatmul.mubr.msk.f32.vlgmr.msra.gmra.mxu0 %vm890_vm4, %v3934_v43 }
 0x7f9   : > { %4134 = vmatprep.mubr.f32.mxu1 %v3942_v50  ;;  %4211 = vmatprep.mubr.f32.mxu0 %v7826_v31 }
 0x7fc   : > { %4135 = vmatmul.mubr.f32.gmra.mxu1 %v3941_v11  ;;  %4462 = vmatmul.mubr.msk.f32.gmra.mxu0 %vm890_vm4, %v3937_v16 }
 0x7fd   : > { %4217 = vmatprep.mubr.f32.mxu0 %v7826_v31 }
 0x7fe   : > { %v4023_v33 = vpop.permute.xlu0 %4022 }
 0x7ff   : > { %v4028_v39 = vpop.permute.xlu1 %4027 }
 0x800   : > { %4463 = vmatmul.mubr.msk.f32.gmra.mxu0 %vm890_vm4, %v3940_v36 }
 0x801   : > { %4223 = vmatprep.mubr.f32.mxu0 %v7826_v31 }
 0x802   : > { %v4033_v13 = vpop.permute.xlu0 %4032 }
 0x803   : > { %v4038_v58 = vpop.permute.xlu1 %4037 }
 0x804   : > { %4464 = vmatmul.mubr.msk.f32.gmra.mxu0 %vm890_vm4, %v3943_v61 }
 0x8b0   : > { %v4118_v3 = vpop.f32.mrf.mxu1 }
 0x8b1   : > { %v4119_v55 = vadd.f32 %v4118_v3, %v4023_v33 }
 0x8b2   : > { %v4120_v35 = vpop.f32.mrf.mxu1 }
 0x8b3   : > { %v4121_v18 = vadd.f32 %v4120_v35, %v4023_v33 }
 0x8b4   : > { %v4124_v32 = vpop.f32.mrf.mxu1 }
 0x8b5   : > { %v4125_v17 = vadd.f32 %v4124_v32, %v4028_v39 }
 0x8b6   : > { %v4126_v14 = vpop.f32.mrf.mxu1 }
 0x8b7   : > { %v4127_v26 = vadd.f32 %v4126_v14, %v4028_v39 }
 0x8b8   : > { %v4130_v59 = vpop.f32.mrf.mxu1  ;;  %v4207_v42 = vpop.f32.mrf.mxu0 }
 0x8b9   : > { %v4208_v51 = vadd.f32 %v4207_v42, %v4119_v55  ;;  %v4131_v60 = vadd.f32 %v4130_v59, %v4033_v13 }
 0x8ba   : > { %v4132_v28 = vpop.f32.mrf.mxu1  ;;  %v4209_v40 = vpop.f32.mrf.mxu0 }
 0x8bb   : > { %4230 = vst [vmem:[%s7406_s27] sm:$0xff] %v4208_v51  ;;  %v4210_v45 = vadd.f32 %v4209_v40, %v4121_v18  ;;  %v4133_v24 = vadd.f32 %v4132_v28, %v4033_v13 }
 0x8bc   : > { %v4213_v23 = vpop.f32.mrf.mxu0  ;;  %v4136_v41 = vpop.f32.mrf.mxu1 }
 0x8bd   : > { %4231 = vst [vmem:[%s7406_s27 + $0x8] sm:$0xff] %v4210_v45  ;;  %v4214_v1 = vadd.f32 %v4213_v23, %v4125_v17  ;;  %v4137_v0 = vadd.f32 %v4136_v41, %v4038_v58 }
 0x8be   : > { %v4215_v27 = vpop.f32.mrf.mxu0  ;;  %v4138_v7 = vpop.f32.mrf.mxu1 }
 0x8bf   : > { %4232 = vst [vmem:[%s7406_s27 + $0x10] sm:$0xff] %v4214_v1  ;;  %v4216_v25 = vadd.f32 %v4215_v27, %v4127_v26  ;;  %v4139_v62 = vadd.f32 %v4138_v7, %v4038_v58 }
 0x8c0   : > { %v4219_v54 = vpop.f32.mrf.mxu0 }
 0x8c1   : > { %4233 = vst [vmem:[%s7406_s27 + $0x18] sm:$0xff] %v4216_v25  ;;  %v4220_v56 = vadd.f32 %v4219_v54, %v4131_v60 }
 0x8c2   : > { %v4221_v12 = vpop.f32.mrf.mxu0 }
 0x8c3   : > { %4234 = vst [vmem:[%s7406_s27 + $0x20] sm:$0xff] %v4220_v56  ;;  %v4222_v6 = vadd.f32 %v4221_v12, %v4133_v24 }
 0x8c4   : > { %v4225_v19 = vpop.f32.mrf.mxu0 }
 0x8c5   : > { %4235 = vst [vmem:[%s7406_s27 + $0x28] sm:$0xff] %v4222_v6  ;;  %v4226_v30 = vadd.f32 %v4225_v19, %v4137_v0 }
 0x8c6   : > { %v4227_v22 = vpop.f32.mrf.mxu0 }
 0x8c7   : > { %4236 = vst [vmem:[%s7406_s27 + $0x30] sm:$0xff] %v4226_v30  ;;  %v4228_v52 = vadd.f32 %v4227_v22, %v4139_v62 }
 0x8c9   : > { %4237 = vst [vmem:[%s7406_s27 + $0x38] sm:$0xff] %v4228_v52 }
 0x8ca   : > { %4782 = shalt.err (!%p4779_p13)
}
 0x8cb   : > { %s4783_s14 = scalar_lea.hbm %s7421_s30, 1024  ;;  %s4787_s22 = scalar_lea.hbm %s7481_s13, 2048 }
 0x8cc   : > { %p4784_p11 = scmp.ne.s32.totalorder %s7421_s30, %s4783_s14  ;;  %p4788_p12 = scmp.lt.s32.totalorder %s7421_s30, %s7481_s13 }
 0x8cd   : > { %p4789_p10 = scmp.lt.s32.totalorder %s4787_s22, %s4783_s14 }
 0x8ce   : > { %p4785_p0 = pnand %p4784_p11, %p7827_p3 }
 0x8cf   : > { %p4790_p9 = por %p4789_p10, %p4788_p12 }
 0x8d0   : > { %p4786_p6 = pneg %p4785_p0 }
 0x8d2   : > { %p4791_p1 = pnand %p4790_p9, %p4786_p6 }
 0x8d4   : > { %4794 = shalt.err (!%p4791_p1)
}
 0x8d5   : > { %s4903_s24 = smov 256   ;;  %s4904_s17 = smov 512  }
 0x8d6   : > { %4516 = dma.vmem_to_hbm [thread:$0]  (%p7827_p3), %s7416_s19, 1024, %s7421_s30, %s7427_s29, %s4903_s24, %s4904_s17, %s7700_s21  }
 0x8d7 PF: > { %s7828_s16 = sld [smem:[#allocation19_spill]]  ;;  %p4543_p2 = scmp.ge.s32.totalorder %s4841_s28, 2 }
 0x8d8   : > { %s4267_s27 = sand.u32 1, %s4829_s25  }
 0x8d9   : > { %s4268_s14 = scalar_lea.sflag [#allocation5], %s4267_s27 }
 0x8dd   : > { %p7829_p4 = scmp.ne.s32.totalorder %s7828_s16, 0 }
 0x8df   : > { %p4532_p5 = pnand %p4543_p2, %p7829_p4 }
 0x8e1   : > { %p4533_p7 = pneg %p4532_p5 }
 0x8e3   : > { %4824 = dma.done.wait (%p4533_p7), %s4268_s14, 1024  }
 0x8e4   : > { %4826 = vsyncadd (%p4533_p7), %s4268_s14, 4294966272  ;;  %s7830_s28 = sld [smem:[#allocation17_spill]]  ;;  %s7833_s25 = smov %s4833_s26 }
 0x8e5   : > { %s7831_s20 = sld [smem:[#allocation16_spill]] }
 0x8e6   : > { %s7832_s27 = sld [smem:[#allocation18_spill]] }
 0x8ea   : > { %p26_p8 = scmp.ge.s32.totalorder %s7830_s28, 4  }
 0x8eb   : > { %s7834_s26 = smov %s7831_s20 }
 0x8ec   :  { %28 = sbr.rel (!%p26_p8) target bundleno = 6 (0x6), region = 231 }
 0x8f1   :  { %4273 = vsyncpa [#allocation4], 1 }
 0x8f2   :  { %4275 = vsyncpa [#allocation4 + $0x1], 1 }
 0x8f3   :  { %4276 = vsyncpa [#allocation7], 1 }
 0x8f4   :  { %4277 = vsyncpa [#allocation10], 1 }
 0x8f5   :  { %4278 = vsyncpa [#allocation5], 1 }
 0x8f6   :  { %4280 = vsyncpa [#allocation5 + $0x1], 1 }

</bundles_post_ra>
